<compile_context>
chip_gen: v7x
topology: tpu7x:2x2x1
jax: 0.10.0
libtpu: 0.0.40
codegen_flags: <defaults>
</compile_context>

<pallas_src>
import functools

import numpy as np

import jax
import jax.numpy as jnp
from jax import lax
from jax.experimental import pallas as pl
from jax.experimental.pallas import tpu as pltpu


# ---------------------------------------------------------------------------
# Host-side construction of per-stage kernel operands (done once at init).
# ---------------------------------------------------------------------------
def _build_stage_mats(w_oihw, bias, scale_c, shift_c, w_in, c_in, c_out,
                      chan_major):
    """Fused im2col conv+shuffle matrix for one stage.

    Column layout (per output row, i = vertical sub-pixel phase, j = horizontal
    sub-pixel phase, x = input column, c = output channel), L = 2*w_in*c_out:
      chan_major=False: col = i*L + (2*x + j)*c_out + c     (feeds next stage)
      chan_major=True : col = i*L + c*(2*w_in) + (2*x + j)  (final NCHW split)
    The conv output channel feeding (c, i, j) is c*4 + i*2 + j (PyTorch
    PixelShuffle order).

    Row layout: rows [dy*w_in*c_in : (dy+1)*w_in*c_in) hold kernel row dy,
    matching the im2col buffer built from the three row-shifted slabs.

    Returns:
      M   (3*w_in*c_in, 4*w_in*c_out) f32 : fused banded matrix.
      aff (3, 4*w_in*c_out)           f32 : rows = (bias, scale, shift).
    """
    w = np.asarray(w_oihw, np.float32)          # (4*c_out, c_in, 3, 3)
    b = np.asarray(bias, np.float32)            # (4*c_out,)
    scale_c = np.asarray(scale_c, np.float32)
    shift_c = np.asarray(shift_c, np.float32)
    L = 2 * w_in * c_out
    M = np.zeros((3, w_in * c_in, 2 * L), np.float32)
    bvec = np.zeros((2 * L,), np.float32)
    svec = np.zeros((2 * L,), np.float32)
    tvec = np.zeros((2 * L,), np.float32)
    for i in range(2):
        for j in range(2):
            for c in range(c_out):
                oc = c * 4 + i * 2 + j          # PixelShuffle(2) channel order
                for x in range(w_in):
                    if chan_major:
                        col = i * L + c * (2 * w_in) + (2 * x + j)
                    else:
                        col = i * L + (2 * x + j) * c_out + c
                    bvec[col] = b[oc]
                    svec[col] = scale_c[c]
                    tvec[col] = shift_c[c]
                    for kx in range(3):
                        q = x + kx - 1          # input column feeding tap kx
                        if q < 0 or q >= w_in:
                            continue            # zero 'same' padding column
                        for dy in range(3):
                            M[dy, q * c_in:(q + 1) * c_in, col] = w[oc, :, dy, kx]
    M_fused = M.reshape(3 * w_in * c_in, 2 * L)   # rows: [dy=0 | dy=1 | dy=2]
    aff = np.stack([bvec, svec, tvec], axis=0)
    return M_fused, aff


def _build_interleave(h_in):
    """0/1 matrices P[i] with P[i][2*y + i, y] = 1 (pixel-shuffle row interleave)."""
    P = np.zeros((2, 2 * h_in, h_in), np.float32)
    for y in range(h_in):
        P[0, 2 * y, y] = 1.0
        P[1, 2 * y + 1, y] = 1.0
    return P


def init_params(key, dec_kernel, H, W, eps=1e-5):
    """Kernel operands (arrays only -> jit friendly) + pure-JAX reference params."""
    kp = {}
    ref = []
    h_in, w_in = H, W
    for k in range(3):
        c_in = dec_kernel[k]
        c_out = dec_kernel[k + 1]
        co4 = 4 * c_out
        key, kw, kb = jax.random.split(key, 3)
        bound = 1.0 / float(np.sqrt(c_in * 9.0))
        w = jax.random.uniform(kw, (co4, c_in, 3, 3), jnp.float32, -bound, bound)
        b = jax.random.uniform(kb, (co4,), jnp.float32, -bound, bound)
        # The kernel feeds the MXU in bf16 -> bake that rounding into the weights.
        w = w.astype(jnp.bfloat16).astype(jnp.float32)
        if k < 2:
            # BatchNorm2d(c_out) eval-mode defaults: gamma=1, beta=0, mean=0, var=1.
            gamma = np.ones((c_out,), np.float32)
            beta = np.zeros((c_out,), np.float32)
            rmean = np.zeros((c_out,), np.float32)
            rvar = np.ones((c_out,), np.float32)
            inv = gamma / np.sqrt(rvar + eps)
            scale_c = inv
            shift_c = beta - rmean * inv
        else:
            scale_c = np.ones((c_out,), np.float32)
            shift_c = np.zeros((c_out,), np.float32)
        M, aff = _build_stage_mats(np.asarray(w), np.asarray(b), scale_c, shift_c,
                                   w_in, c_in, c_out, chan_major=(k == 2))
        P = _build_interleave(h_in)
        kp[f"m{k + 1}"] = jnp.asarray(M, jnp.bfloat16)
        # Interleave matrices: bf16 for stages 1-2 (exact, next stage is bf16
        # anyway), f32 for the final stage so the sigmoid output stays f32.
        kp[f"p{k + 1}"] = jnp.asarray(P, jnp.bfloat16 if k < 2 else jnp.float32)
        kp[f"aff{k + 1}"] = jnp.asarray(aff, jnp.float32)
        ref.append(dict(w=w, b=b, scale=jnp.asarray(scale_c, jnp.float32),
                        shift=jnp.asarray(shift_c, jnp.float32)))
        h_in, w_in = 2 * h_in, 2 * w_in
    return kp, ref


# ---------------------------------------------------------------------------
# Pallas kernel.
# ---------------------------------------------------------------------------
def _dec_branch_kernel(x_ref, m1_ref, m2_ref, m3_ref, p1_ref, p2_ref, p3_ref,
                       aff1_ref, aff2_ref, aff3_ref, o_ref,
                       a1, a2, a3, i1, i2, i3, *,
                       B, SEP, H, W, C0, C1, C2, C3):
    """Three fused stages: Conv3x3('same') + bias + (ReLU+BN | Sigmoid) + PixelShuffle(2).

    Buffer row layout (per stage, height h per image):
      A = [1 zero row] + B * ([h image rows] + [SEP zero rows])
    im2col I row r concatenates A[r], A[r+1], A[r+2] along lanes; the conv
    output row r is valid for image b iff r in [b*(h+SEP), b*(h+SEP)+h).
    """

    def fill_padded(a_ref, rows_fn, h, wc):
        zrows = jnp.zeros((SEP, wc), a_ref.dtype)
        a_ref[0:1, :] = zrows[:1, :]
        for b in range(B):
            base = 1 + b * (h + SEP)
            a_ref[base:base + h, :] = rows_fn(b)
            a_ref[base + h:base + h + SEP, :] = zrows

    def im2col(i_ref, a_ref, wc):
        m_rows = i_ref.shape[0]
        for t in range(3):                      # 3 contiguous shifted slab copies
            i_ref[:, t * wc:(t + 1) * wc] = a_ref[t:t + m_rows, :]

    def conv(i_ref, m_ref, aff_ref):
        # Single wide-K bf16 MXU matmul per stage, f32 accumulation + bias.
        acc = jnp.dot(i_ref[...], m_ref[...], preferred_element_type=jnp.float32)
        return acc + aff_ref[0:1, :]

    # ---------------- stage 1 ----------------
    fill_padded(a1, lambda b: x_ref[b], H, W * C0)
    im2col(i1, a1, W * C0)
    acc1 = conv(i1, m1_ref, aff1_ref)
    act1 = (jnp.maximum(acc1, 0.0) * aff1_ref[1:2, :]
            + aff1_ref[2:3, :]).astype(jnp.bfloat16)        # ReLU + eval BN affine
    L1 = 2 * W * C1
    p1v = p1_ref[...]
    stride1 = H + SEP

    def interleave1(b):
        rb = act1[b * stride1:b * stride1 + H, :]            # valid rows of image b
        return (jnp.dot(p1v[0], rb[:, 0:L1], preferred_element_type=jnp.float32) +
                jnp.dot(p1v[1], rb[:, L1:2 * L1], preferred_element_type=jnp.float32)
                ).astype(jnp.bfloat16)

    fill_padded(a2, interleave1, 2 * H, L1)

    # ---------------- stage 2 ----------------
    im2col(i2, a2, 2 * W * C1)
    acc2 = conv(i2, m2_ref, aff2_ref)
    act2 = (jnp.maximum(acc2, 0.0) * aff2_ref[1:2, :]
            + aff2_ref[2:3, :]).astype(jnp.bfloat16)
    L2 = 4 * W * C2
    p2v = p2_ref[...]
    stride2 = 2 * H + SEP

    def interleave2(b):
        rb = act2[b * stride2:b * stride2 + 2 * H, :]
        return (jnp.dot(p2v[0], rb[:, 0:L2], preferred_element_type=jnp.float32) +
                jnp.dot(p2v[1], rb[:, L2:2 * L2], preferred_element_type=jnp.float32)
                ).astype(jnp.bfloat16)

    fill_padded(a3, interleave2, 4 * H, L2)

    # ---------------- stage 3 (sigmoid, NCHW output) ----------------
    im2col(i3, a3, 4 * W * C2)
    acc3 = conv(i3, m3_ref, aff3_ref)
    # Sigmoid via EUP approx reciprocal (error ~2^-12, kept in f32).
    sig = pl.reciprocal(1.0 + jnp.exp(-acc3), approx=True)
    L3 = 8 * W * C3
    p3v = p3_ref[...]                                        # f32 permutation
    stride3 = 4 * H + SEP
    for b in range(B):
        rb = sig[b * stride3:b * stride3 + 4 * H, :]
        vb = (jnp.dot(p3v[0], rb[:, 0:L3], preferred_element_type=jnp.float32) +
              jnp.dot(p3v[1], rb[:, L3:2 * L3], preferred_element_type=jnp.float32))
        # Stage-3 columns are channel-major: lanes [c*8W, (c+1)*8W) = channel c.
        for c in range(C3):
            o_ref[b, c] = vb[:, c * 8 * W:(c + 1) * 8 * W].astype(o_ref.dtype)


def _pick_images_per_step(n, max_b=8):
    """Largest divisor of n that is <= max_b and leaves >= 2 grid steps (v7x 2 TCs)."""
    target = min(max_b, max(1, n // 2))
    for b in range(target, 0, -1):
        if n % b == 0:
            return b
    return 1


def dec_subpix_conv_branch(x_nchw, kp):
    """Forward pass: (N, C0, H, W) -> (N, C3, 8H, 8W), NCHW in and out."""
    N, C0, H, W = x_nchw.shape
    C1 = kp["m2"].shape[0] // (6 * W)
    C2 = kp["m3"].shape[0] // (12 * W)
    C3 = kp["aff3"].shape[1] // (16 * W)

    B = _pick_images_per_step(N)
    # 8-row zero separators keep per-image row offsets sublane aligned when B>1.
    SEP = 1 if B == 1 else 8
    G = N // B

    # NCHW -> (N, H, W*C0): each image row flattened as (x, channel), lane-dense.
    # Cast to bf16 here: the MXU consumes bf16 anyway, and this halves input DMA.
    x_rows = jnp.transpose(x_nchw, (0, 2, 3, 1)).reshape(N, H, W * C0)
    x_rows = x_rows.astype(jnp.bfloat16)

    kernel = functools.partial(_dec_branch_kernel, B=B, SEP=SEP,
                               H=H, W=W, C0=C0, C1=C1, C2=C2, C3=C3)

    def _const_spec(arr):
        zeros = (0,) * arr.ndim
        return pl.BlockSpec(arr.shape, lambda g, _z=zeros: _z)

    out = pl.pallas_call(
        kernel,
        out_shape=jax.ShapeDtypeStruct((N, C3, 8 * H, 8 * W), jnp.float32),
        grid=(G,),
        in_specs=[
            pl.BlockSpec((B, H, W * C0), lambda g: (g, 0, 0)),
            _const_spec(kp["m1"]), _const_spec(kp["m2"]), _const_spec(kp["m3"]),
            _const_spec(kp["p1"]), _const_spec(kp["p2"]), _const_spec(kp["p3"]),
            _const_spec(kp["aff1"]), _const_spec(kp["aff2"]), _const_spec(kp["aff3"]),
        ],
        out_specs=pl.BlockSpec((B, C3, 8 * H, 8 * W), lambda g: (g, 0, 0, 0)),
        scratch_shapes=[
            # Padded/stacked stage inputs (bf16).
            pltpu.VMEM((1 + B * (H + SEP), W * C0), jnp.bfloat16),
            pltpu.VMEM((1 + B * (2 * H + SEP), 2 * W * C1), jnp.bfloat16),
            pltpu.VMEM((1 + B * (4 * H + SEP), 4 * W * C2), jnp.bfloat16),
            # im2col buffers (bf16, width 3 * W_in * C_in).
            pltpu.VMEM((B * (H + SEP) - 1, 3 * W * C0), jnp.bfloat16),
            pltpu.VMEM((B * (2 * H + SEP) - 1, 6 * W * C1), jnp.bfloat16),
            pltpu.VMEM((B * (4 * H + SEP) - 1, 12 * W * C2), jnp.bfloat16),
        ],
        compiler_params=pltpu.CompilerParams(
            dimension_semantics=("parallel",),
            vmem_limit_bytes=32 * 1024 * 1024),
    )(x_rows, kp["m1"], kp["m2"], kp["m3"], kp["p1"], kp["p2"], kp["p3"],
      kp["aff1"], kp["aff2"], kp["aff3"])

    return out  # already NCHW; no post-kernel transpose / extra HBM pass


# ---------------------------------------------------------------------------
# Pure-JAX reference (for numerical validation).
# ---------------------------------------------------------------------------
def reference_forward(x_nchw, ref_params):
    x = x_nchw
    n_stages = len(ref_params)
    for k, p in enumerate(ref_params):
        xq = x.astype(jnp.bfloat16).astype(jnp.float32)  # match bf16 MXU operands
        y = lax.conv_general_dilated(
            xq, p["w"], window_strides=(1, 1), padding="SAME",
            dimension_numbers=("NCHW", "OIHW", "NCHW"),
            precision=lax.Precision.HIGHEST)
        y = y + jnp.asarray(p["b"]).reshape(1, -1, 1, 1)
        n, c4, hh, ww = y.shape
        c = c4 // 4
        y = y.reshape(n, c, 2, 2, hh, ww).transpose(0, 1, 4, 2, 5, 3)
        y = y.reshape(n, c, 2 * hh, 2 * ww)                 # PixelShuffle(2)
        if k < n_stages - 1:
            y = jnp.maximum(y, 0.0)
            y = y * p["scale"].reshape(1, -1, 1, 1) + p["shift"].reshape(1, -1, 1, 1)
        else:
            y = 1.0 / (1.0 + jnp.exp(-y))
        x = y
    return x


if __name__ == "__main__":
    dec_kernel = [4, 8, 4, 2]          # input channels, then channels per stage
    N, H, W = 2, 16, 16

    key = jax.random.PRNGKey(0)
    key, xkey = jax.random.split(key)
    x = jax.random.normal(xkey, (N, dec_kernel[0], H, W), dtype=jnp.float32)

    kp, ref_params = init_params(key, dec_kernel, H, W)

    fwd = jax.jit(dec_subpix_conv_branch)
    out = jax.block_until_ready(fwd(x, kp))

    assert out.shape == (N, dec_kernel[-1], 8 * H, 8 * W), out.shape
    assert bool(jnp.all(jnp.isfinite(out)))
    # Approx-reciprocal sigmoid may overshoot [0, 1] by ~2^-12.
    assert bool(jnp.all((out > -1e-3) & (out < 1.0 + 1e-3)))

    out_ref = jax.block_until_ready(reference_forward(x, ref_params))
    np.testing.assert_allclose(np.asarray(out), np.asarray(out_ref),
                               atol=5e-3, rtol=5e-3)

    print("KERNEL_OK")
</pallas_src>

<mosaic_0001>
module attributes {stable_mosaic.version = 11 : i64} {
  func.func @_dec_branch_kernel(%arg0: i32, %arg1: memref<1x16x64xbf16, #tpu.memory_space<vmem>>, %arg2: memref<192x512xbf16, #tpu.memory_space<vmem>>, %arg3: memref<768x512xbf16, #tpu.memory_space<vmem>>, %arg4: memref<768x512xbf16, #tpu.memory_space<vmem>>, %arg5: memref<2x32x16xbf16, #tpu.memory_space<vmem>>, %arg6: memref<2x64x32xbf16, #tpu.memory_space<vmem>>, %arg7: memref<2x128x64xf32, #tpu.memory_space<vmem>>, %arg8: memref<3x512xf32, #tpu.memory_space<vmem>>, %arg9: memref<3x512xf32, #tpu.memory_space<vmem>>, %arg10: memref<3x512xf32, #tpu.memory_space<vmem>>, %arg11: memref<1x2x128x128xf32, #tpu.memory_space<vmem>>, %arg12: memref<18x64xbf16, #tpu.memory_space<vmem>>, %arg13: memref<34x256xbf16, #tpu.memory_space<vmem>>, %arg14: memref<66x256xbf16, #tpu.memory_space<vmem>>, %arg15: memref<16x192xbf16, #tpu.memory_space<vmem>>, %arg16: memref<32x768xbf16, #tpu.memory_space<vmem>>, %arg17: memref<64x768xbf16, #tpu.memory_space<vmem>>) attributes {dimension_semantics = [#tpu.dimension_semantics<parallel>], iteration_bounds = array<i64: 2>, scalar_prefetch = 0 : i64, scratch_operands = 6 : i64, tpu.core_type = #tpu.core_type<tc>, window_params = [{transform_indices = @transform_0, window_bounds = array<i64: 1, 16, 64>}, {pipeline_mode = #tpu.pipeline_mode<synchronous>, transform_indices = @transform_1, window_bounds = array<i64: 192, 512>}, {pipeline_mode = #tpu.pipeline_mode<synchronous>, transform_indices = @transform_2, window_bounds = array<i64: 768, 512>}, {pipeline_mode = #tpu.pipeline_mode<synchronous>, transform_indices = @transform_3, window_bounds = array<i64: 768, 512>}, {pipeline_mode = #tpu.pipeline_mode<synchronous>, transform_indices = @transform_4, window_bounds = array<i64: 2, 32, 16>}, {pipeline_mode = #tpu.pipeline_mode<synchronous>, transform_indices = @transform_5, window_bounds = array<i64: 2, 64, 32>}, {pipeline_mode = #tpu.pipeline_mode<synchronous>, transform_indices = @transform_6, window_bounds = array<i64: 2, 128, 64>}, {pipeline_mode = #tpu.pipeline_mode<synchronous>, transform_indices = @transform_7, window_bounds = array<i64: 3, 512>}, {pipeline_mode = #tpu.pipeline_mode<synchronous>, transform_indices = @transform_8, window_bounds = array<i64: 3, 512>}, {pipeline_mode = #tpu.pipeline_mode<synchronous>, transform_indices = @transform_9, window_bounds = array<i64: 3, 512>}, {transform_indices = @transform_10, window_bounds = array<i64: 1, 2, 128, 128>}]} {
    %cst = arith.constant 0.000000e+00 : bf16
    %0 = vector.broadcast %cst : bf16 to vector<1x64xbf16>
    %c0 = arith.constant 0 : index
    %c0_0 = arith.constant 0 : index
    %1 = vector.load %arg12[%c0, %c0_0] : memref<18x64xbf16, #tpu.memory_space<vmem>>, vector<1x64xbf16>
    tpu.vector_store %arg12[%c0, %c0_0], %0 {strides = array<i32>} : memref<18x64xbf16, #tpu.memory_space<vmem>>, vector<1x64xbf16>,
    %c0_1 = arith.constant 0 : index
    %c0_2 = arith.constant 0 : index
    %c0_3 = arith.constant 0 : index
    %2 = vector.load %arg1[%c0_1, %c0_2, %c0_3] : memref<1x16x64xbf16, #tpu.memory_space<vmem>>, vector<1x16x64xbf16>
    %3 = vector.shape_cast %2 : vector<1x16x64xbf16> to vector<16x64xbf16>
    %c1 = arith.constant 1 : index
    %c0_4 = arith.constant 0 : index
    %4 = vector.load %arg12[%c1, %c0_4] : memref<18x64xbf16, #tpu.memory_space<vmem>>, vector<16x64xbf16>
    tpu.vector_store %arg12[%c1, %c0_4], %3 {strides = array<i32>} : memref<18x64xbf16, #tpu.memory_space<vmem>>, vector<16x64xbf16>,
    %c17 = arith.constant 17 : index
    %c0_5 = arith.constant 0 : index
    %5 = vector.load %arg12[%c17, %c0_5] : memref<18x64xbf16, #tpu.memory_space<vmem>>, vector<1x64xbf16>
    tpu.vector_store %arg12[%c17, %c0_5], %0 {strides = array<i32>} : memref<18x64xbf16, #tpu.memory_space<vmem>>, vector<1x64xbf16>,
    %c0_6 = arith.constant 0 : index
    %c0_7 = arith.constant 0 : index
    %6 = vector.load %arg12[%c0_6, %c0_7] : memref<18x64xbf16, #tpu.memory_space<vmem>>, vector<16x64xbf16>
    %c0_8 = arith.constant 0 : index
    %c0_9 = arith.constant 0 : index
    %7 = vector.load %arg15[%c0_8, %c0_9] : memref<16x192xbf16, #tpu.memory_space<vmem>>, vector<16x64xbf16>
    tpu.vector_store %arg15[%c0_8, %c0_9], %6 {strides = array<i32>} : memref<16x192xbf16, #tpu.memory_space<vmem>>, vector<16x64xbf16>,
    %c1_10 = arith.constant 1 : index
    %c0_11 = arith.constant 0 : index
    %8 = vector.load %arg12[%c1_10, %c0_11] : memref<18x64xbf16, #tpu.memory_space<vmem>>, vector<16x64xbf16>
    %c0_12 = arith.constant 0 : index
    %c64 = arith.constant 64 : index
    %9 = vector.load %arg15[%c0_12, %c64] : memref<16x192xbf16, #tpu.memory_space<vmem>>, vector<16x64xbf16>
    tpu.vector_store %arg15[%c0_12, %c64], %8 {strides = array<i32>} : memref<16x192xbf16, #tpu.memory_space<vmem>>, vector<16x64xbf16>,
    %c2 = arith.constant 2 : index
    %c0_13 = arith.constant 0 : index
    %10 = vector.load %arg12[%c2, %c0_13] : memref<18x64xbf16, #tpu.memory_space<vmem>>, vector<16x64xbf16>
    %c0_14 = arith.constant 0 : index
    %c128 = arith.constant 128 : index
    %11 = vector.load %arg15[%c0_14, %c128] : memref<16x192xbf16, #tpu.memory_space<vmem>>, vector<16x64xbf16>
    tpu.vector_store %arg15[%c0_14, %c128], %10 {strides = array<i32>} : memref<16x192xbf16, #tpu.memory_space<vmem>>, vector<16x64xbf16>,
    %c0_15 = arith.constant 0 : index
    %c0_16 = arith.constant 0 : index
    %12 = vector.load %arg15[%c0_15, %c0_16] : memref<16x192xbf16, #tpu.memory_space<vmem>>, vector<16x192xbf16>
    %c0_17 = arith.constant 0 : index
    %c0_18 = arith.constant 0 : index
    %13 = vector.load %arg2[%c0_17, %c0_18] : memref<192x512xbf16, #tpu.memory_space<vmem>>, vector<192x512xbf16>
    %cst_19 = arith.constant dense<0.000000e+00> : vector<16x512xf32>
    %14 = tpu.matmul %12, %13, %cst_19 {dimension_numbers = #tpu.dot_dimension_numbers<[1], [0], [0], [1], [0, 0, 1, 1], [], []>} : vector<16x192xbf16>, vector<192x512xbf16>, vector<16x512xf32> -> vector<16x512xf32>
    %c0_20 = arith.constant 0 : index
    %c0_21 = arith.constant 0 : index
    %15 = vector.load %arg8[%c0_20, %c0_21] : memref<3x512xf32, #tpu.memory_space<vmem>>, vector<1x512xf32>
    %16 = vector.broadcast %15 : vector<1x512xf32> to vector<16x512xf32>
    %17 = arith.addf %14, %16 : vector<16x512xf32>
    %cst_22 = arith.constant 0.000000e+00 : f32
    %18 = vector.broadcast %cst_22 : f32 to vector<16x512xf32>
    %19 = arith.maximumf %17, %18 : vector<16x512xf32>
    %c1_23 = arith.constant 1 : index
    %c0_24 = arith.constant 0 : index
    %20 = vector.load %arg8[%c1_23, %c0_24] : memref<3x512xf32, #tpu.memory_space<vmem>>, vector<1x512xf32>
    %21 = vector.broadcast %20 : vector<1x512xf32> to vector<16x512xf32>
    %22 = arith.mulf %19, %21 : vector<16x512xf32>
    %c2_25 = arith.constant 2 : index
    %c0_26 = arith.constant 0 : index
    %23 = vector.load %arg8[%c2_25, %c0_26] : memref<3x512xf32, #tpu.memory_space<vmem>>, vector<1x512xf32>
    %24 = vector.broadcast %23 : vector<1x512xf32> to vector<16x512xf32>
    %25 = arith.addf %22, %24 : vector<16x512xf32>
    %26 = arith.truncf %25 : vector<16x512xf32> to vector<16x512xbf16>
    %c0_27 = arith.constant 0 : index
    %c0_28 = arith.constant 0 : index
    %c0_29 = arith.constant 0 : index
    %27 = vector.load %arg5[%c0_27, %c0_28, %c0_29] : memref<2x32x16xbf16, #tpu.memory_space<vmem>>, vector<2x32x16xbf16>
    %cst_30 = arith.constant 0.000000e+00 : bf16
    %28 = vector.broadcast %cst_30 : bf16 to vector<1x256xbf16>
    %c0_31 = arith.constant 0 : index
    %c0_32 = arith.constant 0 : index
    %29 = vector.load %arg13[%c0_31, %c0_32] : memref<34x256xbf16, #tpu.memory_space<vmem>>, vector<1x256xbf16>
    tpu.vector_store %arg13[%c0_31, %c0_32], %28 {strides = array<i32>} : memref<34x256xbf16, #tpu.memory_space<vmem>>, vector<1x256xbf16>,
    %30 = vector.extract_strided_slice %27 {offsets = [0, 0, 0], sizes = [1, 32, 16], strides = [1, 1, 1]} : vector<2x32x16xbf16> to vector<1x32x16xbf16>
    %31 = vector.shape_cast %30 : vector<1x32x16xbf16> to vector<32x16xbf16>
    %32 = vector.extract_strided_slice %26 {offsets = [0, 0], sizes = [16, 256], strides = [1, 1]} : vector<16x512xbf16> to vector<16x256xbf16>
    %cst_33 = arith.constant dense<0.000000e+00> : vector<32x256xf32>
    %33 = tpu.matmul %31, %32, %cst_33 {dimension_numbers = #tpu.dot_dimension_numbers<[1], [0], [0], [1], [0, 0, 1, 1], [], []>} : vector<32x16xbf16>, vector<16x256xbf16>, vector<32x256xf32> -> vector<32x256xf32>
    %34 = vector.extract_strided_slice %27 {offsets = [1, 0, 0], sizes = [1, 32, 16], strides = [1, 1, 1]} : vector<2x32x16xbf16> to vector<1x32x16xbf16>
    %35 = vector.shape_cast %34 : vector<1x32x16xbf16> to vector<32x16xbf16>
    %36 = vector.extract_strided_slice %26 {offsets = [0, 256], sizes = [16, 256], strides = [1, 1]} : vector<16x512xbf16> to vector<16x256xbf16>
    %cst_34 = arith.constant dense<0.000000e+00> : vector<32x256xf32>
    %37 = tpu.matmul %35, %36, %cst_34 {dimension_numbers = #tpu.dot_dimension_numbers<[1], [0], [0], [1], [0, 0, 1, 1], [], []>} : vector<32x16xbf16>, vector<16x256xbf16>, vector<32x256xf32> -> vector<32x256xf32>
    %38 = arith.addf %33, %37 : vector<32x256xf32>
    %39 = arith.truncf %38 : vector<32x256xf32> to vector<32x256xbf16>
    %c1_35 = arith.constant 1 : index
    %c0_36 = arith.constant 0 : index
    %40 = vector.load %arg13[%c1_35, %c0_36] : memref<34x256xbf16, #tpu.memory_space<vmem>>, vector<32x256xbf16>
    tpu.vector_store %arg13[%c1_35, %c0_36], %39 {strides = array<i32>} : memref<34x256xbf16, #tpu.memory_space<vmem>>, vector<32x256xbf16>,
    %c33 = arith.constant 33 : index
    %c0_37 = arith.constant 0 : index
    %41 = vector.load %arg13[%c33, %c0_37] : memref<34x256xbf16, #tpu.memory_space<vmem>>, vector<1x256xbf16>
    tpu.vector_store %arg13[%c33, %c0_37], %28 {strides = array<i32>} : memref<34x256xbf16, #tpu.memory_space<vmem>>, vector<1x256xbf16>,
    %c0_38 = arith.constant 0 : index
    %c0_39 = arith.constant 0 : index
    %42 = vector.load %arg13[%c0_38, %c0_39] : memref<34x256xbf16, #tpu.memory_space<vmem>>, vector<32x256xbf16>
    %c0_40 = arith.constant 0 : index
    %c0_41 = arith.constant 0 : index
    %43 = vector.load %arg16[%c0_40, %c0_41] : memref<32x768xbf16, #tpu.memory_space<vmem>>, vector<32x256xbf16>
    tpu.vector_store %arg16[%c0_40, %c0_41], %42 {strides = array<i32>} : memref<32x768xbf16, #tpu.memory_space<vmem>>, vector<32x256xbf16>,
    %c1_42 = arith.constant 1 : index
    %c0_43 = arith.constant 0 : index
    %44 = vector.load %arg13[%c1_42, %c0_43] : memref<34x256xbf16, #tpu.memory_space<vmem>>, vector<32x256xbf16>
    %c0_44 = arith.constant 0 : index
    %c256 = arith.constant 256 : index
    %45 = vector.load %arg16[%c0_44, %c256] : memref<32x768xbf16, #tpu.memory_space<vmem>>, vector<32x256xbf16>
    tpu.vector_store %arg16[%c0_44, %c256], %44 {strides = array<i32>} : memref<32x768xbf16, #tpu.memory_space<vmem>>, vector<32x256xbf16>,
    %c2_45 = arith.constant 2 : index
    %c0_46 = arith.constant 0 : index
    %46 = vector.load %arg13[%c2_45, %c0_46] : memref<34x256xbf16, #tpu.memory_space<vmem>>, vector<32x256xbf16>
    %c0_47 = arith.constant 0 : index
    %c512 = arith.constant 512 : index
    %47 = vector.load %arg16[%c0_47, %c512] : memref<32x768xbf16, #tpu.memory_space<vmem>>, vector<32x256xbf16>
    tpu.vector_store %arg16[%c0_47, %c512], %46 {strides = array<i32>} : memref<32x768xbf16, #tpu.memory_space<vmem>>, vector<32x256xbf16>,
    %c0_48 = arith.constant 0 : index
    %c0_49 = arith.constant 0 : index
    %48 = vector.load %arg16[%c0_48, %c0_49] : memref<32x768xbf16, #tpu.memory_space<vmem>>, vector<32x768xbf16>
    %c0_50 = arith.constant 0 : index
    %c0_51 = arith.constant 0 : index
    %49 = vector.load %arg3[%c0_50, %c0_51] : memref<768x512xbf16, #tpu.memory_space<vmem>>, vector<768x512xbf16>
    %cst_52 = arith.constant dense<0.000000e+00> : vector<32x512xf32>
    %50 = tpu.matmul %48, %49, %cst_52 {dimension_numbers = #tpu.dot_dimension_numbers<[1], [0], [0], [1], [0, 0, 1, 1], [], []>} : vector<32x768xbf16>, vector<768x512xbf16>, vector<32x512xf32> -> vector<32x512xf32>
    %c0_53 = arith.constant 0 : index
    %c0_54 = arith.constant 0 : index
    %51 = vector.load %arg9[%c0_53, %c0_54] : memref<3x512xf32, #tpu.memory_space<vmem>>, vector<1x512xf32>
    %52 = vector.broadcast %51 : vector<1x512xf32> to vector<32x512xf32>
    %53 = arith.addf %50, %52 : vector<32x512xf32>
    %cst_55 = arith.constant 0.000000e+00 : f32
    %54 = vector.broadcast %cst_55 : f32 to vector<32x512xf32>
    %55 = arith.maximumf %53, %54 : vector<32x512xf32>
    %c1_56 = arith.constant 1 : index
    %c0_57 = arith.constant 0 : index
    %56 = vector.load %arg9[%c1_56, %c0_57] : memref<3x512xf32, #tpu.memory_space<vmem>>, vector<1x512xf32>
    %57 = vector.broadcast %56 : vector<1x512xf32> to vector<32x512xf32>
    %58 = arith.mulf %55, %57 : vector<32x512xf32>
    %c2_58 = arith.constant 2 : index
    %c0_59 = arith.constant 0 : index
    %59 = vector.load %arg9[%c2_58, %c0_59] : memref<3x512xf32, #tpu.memory_space<vmem>>, vector<1x512xf32>
    %60 = vector.broadcast %59 : vector<1x512xf32> to vector<32x512xf32>
    %61 = arith.addf %58, %60 : vector<32x512xf32>
    %62 = arith.truncf %61 : vector<32x512xf32> to vector<32x512xbf16>
    %c0_60 = arith.constant 0 : index
    %c0_61 = arith.constant 0 : index
    %c0_62 = arith.constant 0 : index
    %63 = vector.load %arg6[%c0_60, %c0_61, %c0_62] : memref<2x64x32xbf16, #tpu.memory_space<vmem>>, vector<2x64x32xbf16>
    %cst_63 = arith.constant 0.000000e+00 : bf16
    %64 = vector.broadcast %cst_63 : bf16 to vector<1x256xbf16>
    %c0_64 = arith.constant 0 : index
    %c0_65 = arith.constant 0 : index
    %65 = vector.load %arg14[%c0_64, %c0_65] : memref<66x256xbf16, #tpu.memory_space<vmem>>, vector<1x256xbf16>
    tpu.vector_store %arg14[%c0_64, %c0_65], %64 {strides = array<i32>} : memref<66x256xbf16, #tpu.memory_space<vmem>>, vector<1x256xbf16>,
    %66 = vector.extract_strided_slice %63 {offsets = [0, 0, 0], sizes = [1, 64, 32], strides = [1, 1, 1]} : vector<2x64x32xbf16> to vector<1x64x32xbf16>
    %67 = vector.shape_cast %66 : vector<1x64x32xbf16> to vector<64x32xbf16>
    %68 = vector.extract_strided_slice %62 {offsets = [0, 0], sizes = [32, 256], strides = [1, 1]} : vector<32x512xbf16> to vector<32x256xbf16>
    %cst_66 = arith.constant dense<0.000000e+00> : vector<64x256xf32>
    %69 = tpu.matmul %67, %68, %cst_66 {dimension_numbers = #tpu.dot_dimension_numbers<[1], [0], [0], [1], [0, 0, 1, 1], [], []>} : vector<64x32xbf16>, vector<32x256xbf16>, vector<64x256xf32> -> vector<64x256xf32>
    %70 = vector.extract_strided_slice %63 {offsets = [1, 0, 0], sizes = [1, 64, 32], strides = [1, 1, 1]} : vector<2x64x32xbf16> to vector<1x64x32xbf16>
    %71 = vector.shape_cast %70 : vector<1x64x32xbf16> to vector<64x32xbf16>
    %72 = vector.extract_strided_slice %62 {offsets = [0, 256], sizes = [32, 256], strides = [1, 1]} : vector<32x512xbf16> to vector<32x256xbf16>
    %cst_67 = arith.constant dense<0.000000e+00> : vector<64x256xf32>
    %73 = tpu.matmul %71, %72, %cst_67 {dimension_numbers = #tpu.dot_dimension_numbers<[1], [0], [0], [1], [0, 0, 1, 1], [], []>} : vector<64x32xbf16>, vector<32x256xbf16>, vector<64x256xf32> -> vector<64x256xf32>
    %74 = arith.addf %69, %73 : vector<64x256xf32>
    %75 = arith.truncf %74 : vector<64x256xf32> to vector<64x256xbf16>
    %c1_68 = arith.constant 1 : index
    %c0_69 = arith.constant 0 : index
    %76 = vector.load %arg14[%c1_68, %c0_69] : memref<66x256xbf16, #tpu.memory_space<vmem>>, vector<64x256xbf16>
    tpu.vector_store %arg14[%c1_68, %c0_69], %75 {strides = array<i32>} : memref<66x256xbf16, #tpu.memory_space<vmem>>, vector<64x256xbf16>,
    %c65 = arith.constant 65 : index
    %c0_70 = arith.constant 0 : index
    %77 = vector.load %arg14[%c65, %c0_70] : memref<66x256xbf16, #tpu.memory_space<vmem>>, vector<1x256xbf16>
    tpu.vector_store %arg14[%c65, %c0_70], %64 {strides = array<i32>} : memref<66x256xbf16, #tpu.memory_space<vmem>>, vector<1x256xbf16>,
    %c0_71 = arith.constant 0 : index
    %c0_72 = arith.constant 0 : index
    %78 = vector.load %arg14[%c0_71, %c0_72] : memref<66x256xbf16, #tpu.memory_space<vmem>>, vector<64x256xbf16>
    %c0_73 = arith.constant 0 : index
    %c0_74 = arith.constant 0 : index
    %79 = vector.load %arg17[%c0_73, %c0_74] : memref<64x768xbf16, #tpu.memory_space<vmem>>, vector<64x256xbf16>
    tpu.vector_store %arg17[%c0_73, %c0_74], %78 {strides = array<i32>} : memref<64x768xbf16, #tpu.memory_space<vmem>>, vector<64x256xbf16>,
    %c1_75 = arith.constant 1 : index
    %c0_76 = arith.constant 0 : index
    %80 = vector.load %arg14[%c1_75, %c0_76] : memref<66x256xbf16, #tpu.memory_space<vmem>>, vector<64x256xbf16>
    %c0_77 = arith.constant 0 : index
    %c256_78 = arith.constant 256 : index
    %81 = vector.load %arg17[%c0_77, %c256_78] : memref<64x768xbf16, #tpu.memory_space<vmem>>, vector<64x256xbf16>
    tpu.vector_store %arg17[%c0_77, %c256_78], %80 {strides = array<i32>} : memref<64x768xbf16, #tpu.memory_space<vmem>>, vector<64x256xbf16>,
    %c2_79 = arith.constant 2 : index
    %c0_80 = arith.constant 0 : index
    %82 = vector.load %arg14[%c2_79, %c0_80] : memref<66x256xbf16, #tpu.memory_space<vmem>>, vector<64x256xbf16>
    %c0_81 = arith.constant 0 : index
    %c512_82 = arith.constant 512 : index
    %83 = vector.load %arg17[%c0_81, %c512_82] : memref<64x768xbf16, #tpu.memory_space<vmem>>, vector<64x256xbf16>
    tpu.vector_store %arg17[%c0_81, %c512_82], %82 {strides = array<i32>} : memref<64x768xbf16, #tpu.memory_space<vmem>>, vector<64x256xbf16>,
    %c0_83 = arith.constant 0 : index
    %c0_84 = arith.constant 0 : index
    %84 = vector.load %arg17[%c0_83, %c0_84] : memref<64x768xbf16, #tpu.memory_space<vmem>>, vector<64x768xbf16>
    %c0_85 = arith.constant 0 : index
    %c0_86 = arith.constant 0 : index
    %85 = vector.load %arg4[%c0_85, %c0_86] : memref<768x512xbf16, #tpu.memory_space<vmem>>, vector<768x512xbf16>
    %cst_87 = arith.constant dense<0.000000e+00> : vector<64x512xf32>
    %86 = tpu.matmul %84, %85, %cst_87 {dimension_numbers = #tpu.dot_dimension_numbers<[1], [0], [0], [1], [0, 0, 1, 1], [], []>} : vector<64x768xbf16>, vector<768x512xbf16>, vector<64x512xf32> -> vector<64x512xf32>
    %c0_88 = arith.constant 0 : index
    %c0_89 = arith.constant 0 : index
    %87 = vector.load %arg10[%c0_88, %c0_89] : memref<3x512xf32, #tpu.memory_space<vmem>>, vector<1x512xf32>
    %88 = vector.broadcast %87 : vector<1x512xf32> to vector<64x512xf32>
    %89 = arith.addf %86, %88 : vector<64x512xf32>
    %cst_90 = arith.constant 0.000000e+00 : f32
    %90 = vector.broadcast %cst_90 : f32 to vector<64x512xf32>
    %91 = arith.subf %90, %89 : vector<64x512xf32>
    %92 = math.exp %91 : vector<64x512xf32>
    %cst_91 = arith.constant 1.000000e+00 : f32
    %93 = vector.broadcast %cst_91 : f32 to vector<64x512xf32>
    %94 = arith.addf %93, %92 : vector<64x512xf32>
    %95 = tpu.reciprocal %94 {approx = true} : vector<64x512xf32> -> vector<64x512xf32>
    %c0_92 = arith.constant 0 : index
    %c0_93 = arith.constant 0 : index
    %c0_94 = arith.constant 0 : index
    %96 = vector.load %arg7[%c0_92, %c0_93, %c0_94] : memref<2x128x64xf32, #tpu.memory_space<vmem>>, vector<2x128x64xf32>
    %97 = vector.extract_strided_slice %96 {offsets = [0, 0, 0], sizes = [1, 128, 64], strides = [1, 1, 1]} : vector<2x128x64xf32> to vector<1x128x64xf32>
    %98 = vector.shape_cast %97 : vector<1x128x64xf32> to vector<128x64xf32>
    %99 = vector.extract_strided_slice %95 {offsets = [0, 0], sizes = [64, 256], strides = [1, 1]} : vector<64x512xf32> to vector<64x256xf32>
    %cst_95 = arith.constant dense<0.000000e+00> : vector<128x256xf32>
    %100 = tpu.matmul %98, %99, %cst_95 {dimension_numbers = #tpu.dot_dimension_numbers<[1], [0], [0], [1], [0, 0, 1, 1], [], []>} : vector<128x64xf32>, vector<64x256xf32>, vector<128x256xf32> -> vector<128x256xf32>
    %101 = vector.extract_strided_slice %96 {offsets = [1, 0, 0], sizes = [1, 128, 64], strides = [1, 1, 1]} : vector<2x128x64xf32> to vector<1x128x64xf32>
    %102 = vector.shape_cast %101 : vector<1x128x64xf32> to vector<128x64xf32>
    %103 = vector.extract_strided_slice %95 {offsets = [0, 256], sizes = [64, 256], strides = [1, 1]} : vector<64x512xf32> to vector<64x256xf32>
    %cst_96 = arith.constant dense<0.000000e+00> : vector<128x256xf32>
    %104 = tpu.matmul %102, %103, %cst_96 {dimension_numbers = #tpu.dot_dimension_numbers<[1], [0], [0], [1], [0, 0, 1, 1], [], []>} : vector<128x64xf32>, vector<64x256xf32>, vector<128x256xf32> -> vector<128x256xf32>
    %105 = arith.addf %100, %104 : vector<128x256xf32>
    %106 = vector.extract_strided_slice %105 {offsets = [0, 0], sizes = [128, 128], strides = [1, 1]} : vector<128x256xf32> to vector<128x128xf32>
    %c0_97 = arith.constant 0 : index
    %c0_98 = arith.constant 0 : index
    %c0_99 = arith.constant 0 : index
    %c0_100 = arith.constant 0 : index
    %107 = vector.load %arg11[%c0_97, %c0_98, %c0_99, %c0_100] : memref<1x2x128x128xf32, #tpu.memory_space<vmem>>, vector<1x1x128x128xf32>
    %108 = vector.shape_cast %107 : vector<1x1x128x128xf32> to vector<128x128xf32>
    %109 = vector.shape_cast %106 : vector<128x128xf32> to vector<1x1x128x128xf32>
    tpu.vector_store %arg11[%c0_97, %c0_98, %c0_99, %c0_100], %109 {strides = array<i32>} : memref<1x2x128x128xf32, #tpu.memory_space<vmem>>, vector<1x1x128x128xf32>,
    %110 = vector.extract_strided_slice %105 {offsets = [0, 128], sizes = [128, 128], strides = [1, 1]} : vector<128x256xf32> to vector<128x128xf32>
    %c0_101 = arith.constant 0 : index
    %c1_102 = arith.constant 1 : index
    %c0_103 = arith.constant 0 : index
    %c0_104 = arith.constant 0 : index
    %111 = vector.load %arg11[%c0_101, %c1_102, %c0_103, %c0_104] : memref<1x2x128x128xf32, #tpu.memory_space<vmem>>, vector<1x1x128x128xf32>
    %112 = vector.shape_cast %111 : vector<1x1x128x128xf32> to vector<128x128xf32>
    %113 = vector.shape_cast %110 : vector<128x128xf32> to vector<1x1x128x128xf32>
    tpu.vector_store %arg11[%c0_101, %c1_102, %c0_103, %c0_104], %113 {strides = array<i32>} : memref<1x2x128x128xf32, #tpu.memory_space<vmem>>, vector<1x1x128x128xf32>,
    return
  }
  func.func @transform_0(%arg0: i32) -> (i32, i32, i32) {
    %c0_i32 = arith.constant 0 : i32
    %c0_i32_0 = arith.constant 0 : i32
    %c0_i32_1 = arith.constant 0 : i32
    return %arg0, %c0_i32, %c0_i32_0 : i32, i32, i32
  }
  func.func @transform_1(%arg0: i32) -> (i32, i32) {
    %c0_i32 = arith.constant 0 : i32
    %c0_i32_0 = arith.constant 0 : i32
    %c0_i32_1 = arith.constant 0 : i32
    return %c0_i32, %c0_i32_0 : i32, i32
  }
  func.func @transform_2(%arg0: i32) -> (i32, i32) {
    %c0_i32 = arith.constant 0 : i32
    %c0_i32_0 = arith.constant 0 : i32
    %c0_i32_1 = arith.constant 0 : i32
    return %c0_i32, %c0_i32_0 : i32, i32
  }
  func.func @transform_3(%arg0: i32) -> (i32, i32) {
    %c0_i32 = arith.constant 0 : i32
    %c0_i32_0 = arith.constant 0 : i32
    %c0_i32_1 = arith.constant 0 : i32
    return %c0_i32, %c0_i32_0 : i32, i32
  }
  func.func @transform_4(%arg0: i32) -> (i32, i32, i32) {
    %c0_i32 = arith.constant 0 : i32
    %c0_i32_0 = arith.constant 0 : i32
    %c0_i32_1 = arith.constant 0 : i32
    %c0_i32_2 = arith.constant 0 : i32
    return %c0_i32, %c0_i32_0, %c0_i32_1 : i32, i32, i32
  }
  func.func @transform_5(%arg0: i32) -> (i32, i32, i32) {
    %c0_i32 = arith.constant 0 : i32
    %c0_i32_0 = arith.constant 0 : i32
    %c0_i32_1 = arith.constant 0 : i32
    %c0_i32_2 = arith.constant 0 : i32
    return %c0_i32, %c0_i32_0, %c0_i32_1 : i32, i32, i32
  }
  func.func @transform_6(%arg0: i32) -> (i32, i32, i32) {
    %c0_i32 = arith.constant 0 : i32
    %c0_i32_0 = arith.constant 0 : i32
    %c0_i32_1 = arith.constant 0 : i32
    %c0_i32_2 = arith.constant 0 : i32
    return %c0_i32, %c0_i32_0, %c0_i32_1 : i32, i32, i32
  }
  func.func @transform_7(%arg0: i32) -> (i32, i32) {
    %c0_i32 = arith.constant 0 : i32
    %c0_i32_0 = arith.constant 0 : i32
    %c0_i32_1 = arith.constant 0 : i32
    return %c0_i32, %c0_i32_0 : i32, i32
  }
  func.func @transform_8(%arg0: i32) -> (i32, i32) {
    %c0_i32 = arith.constant 0 : i32
    %c0_i32_0 = arith.constant 0 : i32
    %c0_i32_1 = arith.constant 0 : i32
    return %c0_i32, %c0_i32_0 : i32, i32
  }
  func.func @transform_9(%arg0: i32) -> (i32, i32) {
    %c0_i32 = arith.constant 0 : i32
    %c0_i32_0 = arith.constant 0 : i32
    %c0_i32_1 = arith.constant 0 : i32
    return %c0_i32, %c0_i32_0 : i32, i32
  }
  func.func @transform_10(%arg0: i32) -> (i32, i32, i32, i32) {
    %c0_i32 = arith.constant 0 : i32
    %c0_i32_0 = arith.constant 0 : i32
    %c0_i32_1 = arith.constant 0 : i32
    %c0_i32_2 = arith.constant 0 : i32
    return %arg0, %c0_i32, %c0_i32_0, %c0_i32_1 : i32, i32, i32, i32
  }
}

</mosaic_0001>

<bundles_post_ra>
// kernel: dec_subpix_conv_branch.1
= control target key start
LH: loop header
LB: loop body
LE: loop exit
PB: predicated region body
PF: predicated region fallthrough
CT: control target
= control target key end

     0   :  { %15 = vsyncpa [#allocation9], 0  ;;  %s8966_s0 = inlined_call_operand.vmem [shape: bf16[2,16,64], index: 0, kind: input, shape index: {}]   ;;  %s8967_s1 = inlined_call_operand.vmem [shape: bf16[192,512], index: 1, kind: input, shape index: {}]   ;;  %s8968_s2 = inlined_call_operand.hbm [shape: bf16[768,512], index: 2, kind: input, shape index: {}]   ;;  %s8969_s3 = inlined_call_operand.hbm [shape: bf16[768,512], index: 3, kind: input, shape index: {}]   ;;  %s8970_s4 = inlined_call_operand.vmem [shape: bf16[2,32,16], index: 4, kind: input, shape index: {}]   ;;  %s8971_s5 = inlined_call_operand.vmem [shape: bf16[2,64,32], index: 5, kind: input, shape index: {}]   ;;  %s8972_s6 = inlined_call_operand.vmem [shape: f32[2,128,64], index: 6, kind: input, shape index: {}]   ;;  %s8973_s7 = inlined_call_operand.vmem [shape: f32[3,512], index: 7, kind: input, shape index: {}]   ;;  %s8974_s8 = inlined_call_operand.vmem [shape: f32[3,512], index: 8, kind: input, shape index: {}]   ;;  %s8975_s9 = inlined_call_operand.vmem [shape: f32[3,512], index: 9, kind: input, shape index: {}]   ;;  %s8976_s10 = inlined_call_operand.hbm [shape: f32[2,2,128,128], index: 10, kind: output, shape index: {}]  }
   0x1   :  { %16 = vsyncpa [#allocation12], 0 }
   0x2   :  { %17 = vsyncpa [#allocation10], 0 }
   0x3   :  { %19 = vsyncpa [#allocation10 + $0x1], 0  ;;  %s7870_s13 = smov 0   ;;  %s7872_s14 = smov 0  }
   0x4   :  { %s7874_s15 = smov 0   ;;  %s7876_s16 = smov 0  }
   0x5 LB: > { %8984 = sst [smem:[#allocation17_spill]] %s7799_s15  ;;  %s7891_s17 = sadd.s32 4294967295, %s7803_s16   ;;  %s7803_s16 = sphi %s7876_s16, %s9014_s16   ;;  %s7799_s15 = sphi %s7874_s15, %s9016_s15   ;;  %s7795_s14 = sphi %s7872_s14, %s9018_s14   ;;  %s7791_s13 = sphi %s7870_s13, %s9017_s13  }
   0x6   : > { %s5967_s18 = sadd.s32 4294967294, %s7803_s16   ;;  %s7895_s19 = sadd.s32 1, %s7803_s16  }
   0x7   : > { %8985 = sst [smem:[#allocation18_spill]] %s7895_s19  ;;  %s247_s20 = sadd.s32 1, %s7799_s15 }
   0x8   : > { %s244_s21 = ssub.s32 %s7803_s16, %s7895_s19  ;;  %p257_p0 = scmp.ne.s32.totalorder %s7799_s15, %s7795_s14 }
   0x9   : > { %p245_p1 = scmp.eq.s32.totalorder %s244_s21, 0  ;;  %p258_p2 = scmp.eq.s32.totalorder %s7891_s17, 1 }
   0xa   : > { %p263_p3 = scmp.ne.s32.totalorder %s7795_s14, %s7791_s13  ;;  %p264_p4 = scmp.eq.s32.totalorder %s5967_s18, 1 }
   0xb   : > { %s7906_s22 = scalar_select %p245_p1, %s7799_s15, %s247_s20  }
   0xc   : > { %p7908_p5 = por %p258_p2, %p257_p0  ;;  %p7912_p6 = por %p264_p4, %p263_p3 }
   0xd   : > { %8986 = sst [smem:[#allocation19_spill]] %s7906_s22  ;;  %p5968_p7 = scmp.ge.s32.totalorder %s7803_s16, 1 }
   0xe   : > { %s8987_s23 = scalar_select %p7908_p5, 1, 0 }
   0xf   : > { %s8988_s24 = scalar_select %p7912_p6, 1, 0 }
  0x10   : > { %p271_p8 = scmp.lt.s32.totalorder %s7803_s16, 3  ;;  %p8977_p9 = scmp.eq.s32.totalorder %s7891_s17, 0 }
  0x11   : > { %8989 = sst [smem:[#allocation20_spill]] %s8988_s24  ;;  %s7805_s26 = smov [#allocation8]  }
  0x12   : > { %p7919_p10 = pnand %p5968_p7, %p271_p8  ;;  %s286_s27 = sshll.u32 %s7805_s26, 4  ;;  %s287_s27 = int_to_ptr.vmem [resolvable:$true] %s286_s27 }
  0x13   : > { %s7806_s29 = smov [#allocation11]   ;;  %s7677_s18 = scalar_lea.hbm %s8968_s2, 24576 }
  0x14   : > { %s8990_s25 = scalar_select %p7919_p10, 1, 0 }
  0x15   : > { %p6810_p11 = pneg %p7919_p10  ;;  %s299_s30 = sshll.u32 %s7806_s29, 4  ;;  %s7931_s30 = int_to_ptr.vmem [resolvable:$true] %s299_s30 }
  0x16   : > { %p7678_p13 = scmp.ne.s32.totalorder %s8968_s2, %s7677_s18  ;;  %p7684_p3 = scmp.lt.u32.totalorder %s7677_s18, %s8968_s2 }
  0x17   : > { %p7927_p12 = pnand %p8977_p9, %p6810_p11 }
  0x19   : > { %p7679_p0 = pneg %p7927_p12 }
  0x1b   : > { %p7680_p1 = pnand %p7679_p0, %p7678_p13 }
  0x1d   : > { %p7681_p2 = pneg %p7680_p1 }
  0x1f   : > { %p7686_p4 = pnand %p7684_p3, %p7681_p2 }
  0x21   : > { %7689 = shalt.err (!%p7686_p4)
}
  0x22   : > { %s7690_s29 = scalar_lea.vmem %s287_s27, 24576  ;;  %p7698_p9 = scmp.lt.s32.totalorder %s287_s27, %s287_s27 }
  0x23   : > { %p7691_p7 = scmp.ne.s32.totalorder %s287_s27, %s7690_s29  ;;  %p7699_p6 = scmp.lt.s32.totalorder %s7690_s29, %s7690_s29 }
  0x25   : > { %p7693_p8 = pnand %p7691_p7, %p7679_p0  ;;  %p7700_p5 = por %p7699_p6, %p7698_p9 }
  0x27   : > { %p7694_p11 = pneg %p7693_p8 }
  0x29   : > { %p7701_p10 = pnand %p7700_p5, %p7694_p11 }
  0x2b   : > { %7704 = shalt.err (!%p7701_p10)
}
  0x2c   : > { %s7807_s11 = smov 256   ;;  %s7808_s12 = smov 16  }
  0x2d   : > { %6813 = dma.hbm_to_vmem [thread:$0]  (!%p7927_p12), %s8968_s2, 24576, %s287_s27, [#allocation9], %s7807_s11, %s7807_s11, %s7808_s12  }
  0x2e   : > { %s7705_s26 = scalar_lea.hbm %s8969_s3, 24576 }
  0x2f   : > { %p7706_p13 = scmp.ne.s32.totalorder %s8969_s3, %s7705_s26  ;;  %p7712_p9 = scmp.lt.u32.totalorder %s7705_s26, %s8969_s3 }
  0x31   : > { %p7708_p5 = pnand %p7706_p13, %p7679_p0 }
  0x33   : > { %p7709_p6 = pneg %p7708_p5 }
  0x35   : > { %p7714_p10 = pnand %p7712_p9, %p7709_p6 }
  0x37   : > { %7717 = shalt.err (!%p7714_p10)
}
  0x38   : > { %s7718_s27 = scalar_lea.vmem %s7931_s30, 24576  ;;  %p7726_p4 = scmp.lt.s32.totalorder %s7931_s30, %s7931_s30 }
  0x39   : > { %p7719_p1 = scmp.ne.s32.totalorder %s7931_s30, %s7718_s27  ;;  %p7727_p7 = scmp.lt.s32.totalorder %s7718_s27, %s7718_s27 }
  0x3b   : > { %p7721_p2 = pnand %p7719_p1, %p7679_p0  ;;  %p7728_p8 = por %p7727_p7, %p7726_p4 }
  0x3d   : > { %p7722_p3 = pneg %p7721_p2 }
  0x3f   : > { %p7729_p11 = pnand %p7728_p8, %p7722_p3 }
  0x41   : > { %7732 = shalt.err (!%p7729_p11)
}
  0x42   : > { %6816 = dma.hbm_to_vmem [thread:$0]  (!%p7927_p12), %s8969_s3, 24576, %s7931_s30, [#allocation12], %s7807_s11, %s7807_s11, %s7808_s12  }
  0x43   : > { %p8992_p13 = scmp.ne.s32.totalorder %s8990_s25, 0 }
  0x44   : > { %p8993_p5 = scmp.eq.s32.totalorder (!%p8992_p13), %s7891_s17, 0 }
  0x45   : > { %341 = sbr.rel (%p8992_p13) target bundleno = 2171 (0x87b), region = 60 }
  0x4c   : > { %7778 = dma.done.wait (%p8993_p5), [#allocation9], 24576   ;;  %p8994_p0 = pmov %p8993_p5 }
  0x4e   : > { %7780 = vsyncadd (%p8994_p0), [#allocation9], 4294942720  ;;  %p8995_p6 = pmov %p8994_p0 }
  0x4f   : > { %p8996_p9 = pmov %p8994_p0 }
  0x50   : > { %7782 = dma.done.wait (%p8995_p6), [#allocation12], 24576  }
  0x51   : > { %7784 = vsyncadd (%p8996_p9), [#allocation12], 4294942720  ;;  %p383_p10 = scmp.lt.s32.totalorder %s7891_s17, 1  ;;  %vm389_vm0 = vcmask 516096   ;;  %vm390_vm1 = vsmask.f32 256 }
  0x52   : > { %vm7997_vm2 = vmand %vm389_vm0, %vm390_vm1  ;;  %vm397_vm3 = vsmask.f32 4368  ;;  %v392_v1 = vld [vmem:[#allocation2] sm:$0x1]  ;;  %vm420_vm5 = vsmask.f32 7938 }
  0x53   : > { %s384_s24 = scalar_select %p383_p10, %s7891_s17, 1  ;;  %v393_v4 = vsel %vm7997_vm2, 0, %v392_v1  ;;  %vm8004_vm4 = vmor %vm390_vm1, %vm397_vm3  ;;  %v6869_v10 = vld [vmem:[%s8967_s1 + $0x4] ss:$16 sps:$4 sm:$0xff]   ;;  %v6871_v13 = vld [vmem:[%s8967_s1] ss:$16 sps:$4 sm:$0xff]  }
  0x54   : > { %394 = vst [vmem:[#allocation2] sm:$0x1] %v393_v4  ;;  %vm419_vm6 = vcmask 519168   ;;  %v427_v14 = vld [vmem:[#allocation2 + $0x8] sm:$0x1]  ;;  %805 = vmatprep.subr.bf16.mxu1 %v6869_v10  ;;  %vm430_vm8 = vmand %vm389_vm0, %vm420_vm5  ;;  %vm442_vm9 = vcmask 523264  }
  0x55   : > { %s6554_s25 = sshll.u32 %s384_s24, 3  ;;  %v6872_v15 = vld [vmem:[%s8967_s1 + $0x24] ss:$16 sps:$4 sm:$0xff]   ;;  %806 = vmatpush1.bf16.msra.mxu1 %v6871_v13  ;;  %v6874_v19 = vld [vmem:[%s8967_s1 + $0x20] ss:$16 sps:$4 sm:$0xff]   ;;  %vm421_vm7 = vmand %vm419_vm6, %vm420_vm5  ;;  %vm484_vm10 = vcmask 1046528  }
  0x56   : > { %s387_s11 = scalar_lea.vmem %s8966_s0, %s6554_s25  ;;  %807 = vmatprep.subr.bf16.mxu1 %v6872_v15  ;;  %v6875_v21 = vld [vmem:[%s8967_s1 + $0x44] ss:$16 sps:$4 sm:$0xff]   ;;  %v6877_v25 = vld [vmem:[%s8967_s1 + $0x40] ss:$16 sps:$4 sm:$0xff]   ;;  %vm455_vm11 = vsmask.f32 7424 }
  0x57   : > { %v395_v2 = vld [vmem:[%s387_s11] sm:$0xf]  ;;  %v396_v3 = vld [vmem:[%s387_s11 + $0x4] sm:$0xf]  ;;  %s7809_s21 = smov 64   ;;  %vm471_vm12 = vcmask 1048064  }
  0x58   : > { %v400_v6 = vshrl.u32 %v395_v2, 16  ;;  %v408_v7 = vshrl.u32 %v396_v3, 16  ;;  %v403_v8 = vshll.u32 %v395_v2, 16  ;;  %v411_v9 = vshll.u32 %v396_v3, 16  ;;  %v6878_v27 = vld [vmem:[%s8967_s1 + $0x64] ss:$16 sps:$4 sm:$0xff]  }
  0x59   : > { %808 = vmatpush1.bf16.msra.mxu1 %v6874_v19  ;;  %v6880_v28 = vld [vmem:[%s8967_s1 + $0x60] ss:$16 sps:$4 sm:$0xff]   ;;  %v6881_v29 = vld [vmem:[%s8967_s1 + $0x84] ss:$16 sps:$4 sm:$0xff]   ;;  %v6910_v63 = vld [vmem:[%s8967_s1 + $0xc] ss:$16 sps:$4 sm:$0xff]  }
  0x5a   : > { %v402_v11 = vrot.slane %v400_v6, 7  ;;  %v410_v12 = vrot.slane %v408_v7, 7  ;;  %809 = vmatprep.subr.bf16.mxu1 %v6875_v21  ;;  %v6883_v32 = vld [vmem:[%s8967_s1 + $0x80] ss:$16 sps:$4 sm:$0xff]   ;;  %v6884_v33 = vld [vmem:[%s8967_s1 + $0xa4] ss:$16 sps:$4 sm:$0xff]  }
  0x5b   : > { %v422_v24 = vld [vmem:[#allocation2] sm:$0xf]  ;;  %v6887_v41 = vld [vmem:[%s8967_s1 + $0xc4] ss:$16 sps:$4 sm:$0xff]   ;;  %v6908_v1 = vld [vmem:[%s8967_s1 + $0x8] ss:$16 sps:$4 sm:$0xff]  }
  0x5c   : > { %v406_v16 = vrot.slane %v402_v11, 4  ;;  %v413_v17 = vor.u32 %v411_v9, %v410_v12  ;;  %v415_v18 = vrot.slane %v410_v12, 4  ;;  %v405_v20 = vor.u32 %v403_v8, %v402_v11  ;;  %v6886_v37 = vld [vmem:[%s8967_s1 + $0xa0] ss:$16 sps:$4 sm:$0xff]   ;;  %v6890_v45 = vld [vmem:[%s8967_s1 + $0xe4] ss:$16 sps:$4 sm:$0xff]  }
  0x5d   : > { %810 = vmatpush1.bf16.msra.mxu1 %v6877_v25  ;;  %v6889_v42 = vld [vmem:[%s8967_s1 + $0xc0] ss:$16 sps:$4 sm:$0xff]   ;;  %v6893_v52 = vld [vmem:[%s8967_s1 + $0x104] ss:$16 sps:$4 sm:$0xff]   ;;  %v6913_v2 = vld [vmem:[%s8967_s1 + $0x2c] ss:$16 sps:$4 sm:$0xff]  }
  0x5e   : > { %v414_v22 = vsel %vm8004_vm4, %v406_v16, %v413_v17  ;;  %v428_v23 = vsel %vm7997_vm2, %v415_v18, %v427_v14  ;;  %v423_v26 = vsel %vm421_vm7, %v405_v20, %v422_v24  ;;  %811 = vmatprep.subr.bf16.mxu1 %v6878_v27  ;;  %v6892_v49 = vld [vmem:[%s8967_s1 + $0xe0] ss:$16 sps:$4 sm:$0xff]   ;;  %v6896_v56 = vld [vmem:[%s8967_s1 + $0x124] ss:$16 sps:$4 sm:$0xff]   ;;  %v6911_v4 = vld [vmem:[%s8967_s1 + $0x28] ss:$16 sps:$4 sm:$0xff]  }
  0x5f   : > { %426 = vst.msk [vmem:[#allocation2 + $0x4] sm:$0xf] %vm419_vm6, %v414_v22  ;;  %429 = vst [vmem:[#allocation2 + $0x8] sm:$0x1] %v428_v23  ;;  %v6895_v55 = vld [vmem:[%s8967_s1 + $0x100] ss:$16 sps:$4 sm:$0xff]  }
  0x60   : > { %424 = vst [vmem:[#allocation2] sm:$0xf] %v423_v26  ;;  %v6898_v57 = vld [vmem:[%s8967_s1 + $0x120] ss:$16 sps:$4 sm:$0xff]   ;;  %v6900_v58 = vld [vmem:[%s8967_s1 + $0x144] ss:$16 sps:$4 sm:$0xff]  }
  0x61   : > { %812 = vmatpush1.bf16.msra.mxu1 %v6880_v28  ;;  %v6902_v60 = vld [vmem:[%s8967_s1 + $0x140] ss:$16 sps:$4 sm:$0xff]   ;;  %v6903_v61 = vld [vmem:[%s8967_s1 + $0x164] ss:$16 sps:$4 sm:$0xff]   ;;  %v6916_v6 = vld [vmem:[%s8967_s1 + $0x4c] ss:$16 sps:$4 sm:$0xff]  }
  0x62   : > { %813 = vmatprep.subr.bf16.mxu1 %v6881_v29  ;;  %v6905_v62 = vld [vmem:[%s8967_s1 + $0x160] ss:$16 sps:$4 sm:$0xff]   ;;  %v6914_v7 = vld [vmem:[%s8967_s1 + $0x48] ss:$16 sps:$4 sm:$0xff]   ;;  %v6919_v8 = vld [vmem:[%s8967_s1 + $0x6c] ss:$16 sps:$4 sm:$0xff]  }
  0x63   : > { %v6917_v9 = vld [vmem:[%s8967_s1 + $0x68] ss:$16 sps:$4 sm:$0xff]   ;;  %v6922_v10 = vld [vmem:[%s8967_s1 + $0x8c] ss:$16 sps:$4 sm:$0xff]   ;;  %v7810_v26 = vmov 0   ;;  %vm992_vm13 = vcmask 130048  }
  0x64   : > { %v6920_v11 = vld [vmem:[%s8967_s1 + $0x88] ss:$16 sps:$4 sm:$0xff]   ;;  %v6925_v12 = vld [vmem:[%s8967_s1 + $0xac] ss:$16 sps:$4 sm:$0xff]   ;;  %1031 = vmatprep.mubr.bf16.mxu0 %v7810_v26  ;;  %v6950_v28 = vld [vmem:[#allocation8 + $0x4] ss:$16 sps:$4 sm:$0xff]  }
  0x65   : > { %814 = vmatpush1.bf16.msra.mxu1 %v6883_v32  ;;  %v6923_v13 = vld [vmem:[%s8967_s1 + $0xa8] ss:$16 sps:$4 sm:$0xff]   ;;  %v6928_v14 = vld [vmem:[%s8967_s1 + $0xcc] ss:$16 sps:$4 sm:$0xff]   ;;  %v6956_v29 = vld [vmem:[#allocation8 + $0x24] ss:$16 sps:$4 sm:$0xff]  }
  0x66   : > { %v431_v30 = vld [vmem:[#allocation2 + $0x8] sm:$0x1]  ;;  %815 = vmatprep.subr.bf16.mxu1 %v6884_v33  ;;  %v6931_v16 = vld [vmem:[%s8967_s1 + $0xec] ss:$16 sps:$4 sm:$0xff]   ;;  %v6968_v33 = vld [vmem:[#allocation8 + $0x64] ss:$16 sps:$4 sm:$0xff]  }
  0x67   : > { %v432_v31 = vsel %vm430_vm8, 0, %v431_v30  ;;  %v6867_v34 = vld [vmem:[#allocation2] sm:$0xff]   ;;  %v6926_v15 = vld [vmem:[%s8967_s1 + $0xc8] ss:$16 sps:$4 sm:$0xff]   ;;  %v6934_v18 = vld [vmem:[%s8967_s1 + $0x10c] ss:$16 sps:$4 sm:$0xff]  }
  0x68   : > { %433 = vst [vmem:[#allocation2 + $0x8] sm:$0x1] %v432_v31  ;;  %v6899_v35 = vld [vmem:[#allocation2] sm:$0xff]   ;;  %v459_v36 = vshll.u32 %v6867_v34, 16  ;;  %v457_v39 = vshrl.u32 %v6867_v34, 16  ;;  %vm973_vm14 = vcmask 1040384  }
  0x69   : > { %443 = vst.msk [vmem:[#allocation5] sm:$0xff] %vm442_vm9, %v6899_v35  ;;  %v6906_v38 = vld [vmem:[#allocation2] sm:$0xfe]   ;;  %816 = vmatpush1.bf16.msra.mxu1 %v6886_v37  ;;  %v6929_v17 = vld [vmem:[%s8967_s1 + $0xe8] ss:$16 sps:$4 sm:$0xff]   ;;  %vm975_vm15 = vcmask 1044484   ;;  %vm974_vm2 = vmand %vm973_vm14, %vm390_vm1 }
  0x6a   : > { %v461_v40 = vrot.slane %v459_v36, 1  ;;  %v485_v43 = vrot.slane %v6906_v38, 1  ;;  %817 = vmatprep.subr.bf16.mxu1 %v6887_v41  ;;  %v6932_v19 = vld [vmem:[%s8967_s1 + $0x108] ss:$16 sps:$4 sm:$0xff]   ;;  %v6937_v20 = vld [vmem:[%s8967_s1 + $0x12c] ss:$16 sps:$4 sm:$0xff]   ;;  %vm8225_vm7 = vmand %vm973_vm14, %vm420_vm5 }
  0x6b   : > { %v6935_v21 = vld [vmem:[%s8967_s1 + $0x128] ss:$16 sps:$4 sm:$0xff]   ;;  %v6940_v22 = vld [vmem:[%s8967_s1 + $0x14c] ss:$16 sps:$4 sm:$0xff]   ;;  %v6962_v31 = vld [vmem:[#allocation8 + $0x44] ss:$16 sps:$4 sm:$0xff]  }
  0x6c   : > { %v462_v47 = vor.u32 %v461_v40, %v457_v39  ;;  %v6938_v23 = vld [vmem:[%s8967_s1 + $0x148] ss:$16 sps:$4 sm:$0xff]   ;;  %v6943_v24 = vld [vmem:[%s8967_s1 + $0x16c] ss:$16 sps:$4 sm:$0xff]   ;;  %v6974_v35 = vld [vmem:[#allocation8 + $0x84] ss:$16 sps:$4 sm:$0xff]   ;;  %v542_v40 = vlaneseq }
  0x6d   : > { %818 = vmatpush1.bf16.msra.mxu1 %v6889_v42  ;;  %v6941_v25 = vld [vmem:[%s8967_s1 + $0x168] ss:$16 sps:$4 sm:$0xff]   ;;  %v6948_v27 = vld [vmem:[#allocation8] ss:$16 sps:$4 sm:$0xff]   ;;  %v6980_v37 = vld [vmem:[#allocation8 + $0xa4] ss:$16 sps:$4 sm:$0xff]  }
  0x6e   : > { %819 = vmatprep.subr.bf16.mxu1 %v6890_v45  ;;  %v6954_v30 = vld [vmem:[#allocation8 + $0x20] ss:$16 sps:$4 sm:$0xff]   ;;  %v6986_v39 = vld [vmem:[#allocation8 + $0xc4] ss:$16 sps:$4 sm:$0xff]   ;;  %vm976_vm0 = vsmask.f32 4352 }
  0x6f   : > { %v6868_v44 = vld [vmem:[#allocation2 + $0x8] ss:$0 sps:$4 sm:$0x11]   ;;  %v6960_v32 = vld [vmem:[#allocation8 + $0x40] ss:$16 sps:$4 sm:$0xff]   ;;  %vm977_vm3 = vmand %vm975_vm15, %vm976_vm0  ;;  %vm1183_vm14 = vcmask 1047556  }
  0x70   : > { %v6907_v46 = vld [vmem:[#allocation2 + $0x8] ss:$0 sps:$4 sm:$0x11]   ;;  %v464_v48 = vshll.u32 %v6868_v44, 16  ;;  %v6966_v34 = vld [vmem:[#allocation8 + $0x60] ss:$16 sps:$4 sm:$0xff]   ;;  %vm8217_vm6 = vmor %vm977_vm3, %vm974_vm2 }
  0x71   : > { %v486_v50 = vrot.slane %v6907_v46, 1  ;;  %820 = vmatpush1.bf16.msra.mxu1 %v6892_v49  ;;  %v6972_v36 = vld [vmem:[#allocation8 + $0x80] ss:$16 sps:$4 sm:$0xff]   ;;  %v6992_v42 = vld [vmem:[#allocation8 + $0xe4] ss:$16 sps:$4 sm:$0xff]   ;;  %s6567_s27 = sshll.u32 %s7891_s17, 12 }
  0x72   : > { %v466_v51 = vrot.slane %v464_v48, 1  ;;  %821 = vmatprep.subr.bf16.mxu1 %v6893_v52  ;;  %v6978_v38 = vld [vmem:[#allocation8 + $0xa0] ss:$16 sps:$4 sm:$0xff]   ;;  %v6998_v45 = vld [vmem:[#allocation8 + $0x104] ss:$16 sps:$4 sm:$0xff]   ;;  %s8917_s25 = scalar_lea.hbm %s8976_s10, %s6567_s27  ;;  %p9011_p1 = scmp.ne.s32.totalorder %s8987_s23, 0 }
  0x73   : > { %v487_v53 = vsel %vm484_vm10, %v485_v43, %v486_v50  ;;  %v6984_v41 = vld [vmem:[#allocation8 + $0xc0] ss:$16 sps:$4 sm:$0xff]   ;;  %v543_v43 = vshrl.u32 %v542_v40, 7  ;;  %v7004_v50 = vld [vmem:[#allocation8 + $0x124] ss:$16 sps:$4 sm:$0xff]   ;;  %s7812_s30 = smov [#allocation13]  }
  0x74   : > { %v467_v54 = vsel %vm455_vm11, %v462_v47, %v466_v51  ;;  %489 = vst.msk [vmem:[#allocation5 + $0x8] sm:$0xff] %vm442_vm9, %v487_v53  ;;  %v6990_v44 = vld [vmem:[#allocation8 + $0xe0] ss:$16 sps:$4 sm:$0xff]   ;;  %vm1184_vm1 = vsmask.f32 7954  ;;  %s7737_s11 = sshll.u32 %s7812_s30, 4  ;;  %s7738_s11 = int_to_ptr.vmem [resolvable:$false] %s7737_s11 }
  0x75   : > { %468 = vrot.lane.b32.xlu0 %v467_v54, %s7809_s21  ;;  %822 = vmatpush1.bf16.msra.mxu1 %v6895_v55  ;;  %v8166_v46 = vsub.s32 0, %v543_v43  ;;  %v6996_v47 = vld [vmem:[#allocation8 + $0x100] ss:$16 sps:$4 sm:$0xff]   ;;  %v8171_v49 = vsub.s32 1, %v543_v43  ;;  %v7010_v55 = vld [vmem:[#allocation8 + $0x144] ss:$16 sps:$4 sm:$0xff]   ;;  %vm8231_vm8 = vmand %vm975_vm15, %vm1184_vm1 }
  0x76   : > { %823 = vmatprep.subr.bf16.mxu1 %v6896_v56  ;;  %v540_v48 = vld [vmem:[%s8973_s7] ss:$4 sm:$0xf]  ;;  %v6033_v53 = vld [vmem:[%s8973_s7 + $0x1] ss:$4 sm:$0xf]  ;;  %vm8247_vm0 = vmand %vm1183_vm14, %vm1184_vm1 }
  0x77   : > { %v545_v51 = vrot.slane %v540_v48, %v8166_v46  ;;  %v7002_v52 = vld [vmem:[#allocation8 + $0x120] ss:$16 sps:$4 sm:$0xff]   ;;  %v549_v54 = vrot.slane %v540_v48, %v8171_v49  ;;  %v7391_v5 = vld [vmem:[#allocation11 + $0x2ec] ss:$16 sps:$4 sm:$0xff]   ;;  %s380_s21 = sand.u32 1, %s7795_s14   ;;  %s7739_s12 = scalar_lea.vmem %s7738_s11, 8192 }
  0x78   : > { %s5975_s26 = sshll.u32 %s380_s21, 8  ;;  %s8925_s17 = scalar_lea.sflag [#allocation10], %s380_s21 }
  0x79   : > { %824 = vmatpush1.bf16.msra.mxu1 %v6898_v57  ;;  %s8880_s29 = scalar_lea.vmem [#allocation13], %s5975_s26 }
  0x7a   : > { %825 = vmatprep.subr.bf16.mxu1 %v6900_v58  ;;  %v905_v58 = vrot.slane %v6033_v53, %v8166_v46  ;;  %s5883_s15 = sshll.u32 %s8880_s29, 4  ;;  %s8919_s15 = int_to_ptr.vmem [resolvable:$true] %s5883_s15 }
  0x7b   : > { %v491_v59 = vld [vmem:[#allocation5 + $0x8] sm:$0xff]  ;;  %s7733_s28 = scalar_lea.vmem %s8919_s15, 4096  ;;  %p7740_p4 = scmp.lt.s32.totalorder %s8919_s15, %s7738_s11 }
  0x7c   : > { %6031 = vmatprep.mubr.msk.bf16.mxu1 %vm442_vm9, %v491_v59  ;;  %p7734_p12 = scmp.ne.s32.totalorder %s8919_s15, %s7733_s28  ;;  %p7741_p7 = scmp.lt.s32.totalorder %s7739_s12, %s7733_s28 }
  0x7d   : > { %826 = vmatpush1.bf16.msra.mxu1 %v6902_v60  ;;  %v7008_v60 = vld [vmem:[#allocation8 + $0x140] ss:$16 sps:$4 sm:$0xff]  }
  0x7e   : > { %827 = vmatprep.subr.bf16.mxu1 %v6903_v61  ;;  %v6034_v61 = vld [vmem:[%s8973_s7 + $0x2] ss:$4 sm:$0xf]  ;;  %p7735_p2 = pnand %p7734_p12, %p9011_p1  ;;  %p7742_p8 = por %p7741_p7, %p7740_p4 }
  0x80   : > { %p7736_p3 = pneg %p7735_p2 }
  0x81   : > { %828 = vmatpush1.bf16.msra.mxu1 %v6905_v62 }
  0x82   : > { %848 = vmatprep.subr.bf16.mxu1 %v6910_v63  ;;  %v909_v63 = vrot.slane %v6033_v53, %v8171_v49  ;;  %p7743_p11 = pnand %p7742_p8, %p7736_p3 }
  0xe7   : > { %v469_v0 = vpop.permute.xlu0 %468 }
  0xe8   : > { %472 = vst.msk [vmem:[#allocation5] sm:$0xff] %vm471_vm12, %v469_v0  ;;  %vm1198_vm12 = vmor %vm8231_vm8, %vm8225_vm7 }
  0xef   : > { %v490_v3 = vld [vmem:[#allocation5] sm:$0xff] }
  0xf0   : > { %838 = vmatmul.mubr.bf16.vlgmr.msra.gmra.mrb[0].mxu1 %v490_v3 }
  0xf1   : > { %849 = vmatpush1.bf16.msra.mxu1 %v6908_v1  ;;  %6032 = vmatprep.mubr.msk.bf16.mxu1 %vm442_vm9, %v491_v59 }
  0xf2   : > { %850 = vmatprep.subr.bf16.mxu1 %v6913_v2 }
  0xf5   : > { %851 = vmatpush1.bf16.msra.mxu1 %v6911_v4 }
  0xf6   : > { %852 = vmatprep.subr.bf16.mxu1 %v6916_v6 }
  0xf9   : > { %853 = vmatpush1.bf16.msra.mxu1 %v6914_v7 }
  0xfa   : > { %854 = vmatprep.subr.bf16.mxu1 %v6919_v8  ;;  %v936_v8 = vrot.slane %v6034_v61, %v8166_v46 }
  0xfd   : > { %855 = vmatpush1.bf16.msra.mxu1 %v6917_v9 }
  0xfe   : > { %856 = vmatprep.subr.bf16.mxu1 %v6922_v10 }
 0x101   : > { %857 = vmatpush1.bf16.msra.mxu1 %v6920_v11  ;;  %v940_v11 = vrot.slane %v6034_v61, %v8171_v49 }
 0x102   : > { %858 = vmatprep.subr.bf16.mxu1 %v6925_v12 }
 0x105   : > { %859 = vmatpush1.bf16.msra.mxu1 %v6923_v13 }
 0x106   : > { %860 = vmatprep.subr.bf16.mxu1 %v6928_v14 }
 0x109   : > { %861 = vmatpush1.bf16.msra.mxu1 %v6926_v15 }
 0x10a   : > { %862 = vmatprep.subr.bf16.mxu1 %v6931_v16 }
 0x10d   : > { %863 = vmatpush1.bf16.msra.mxu1 %v6929_v17 }
 0x10e   : > { %864 = vmatprep.subr.bf16.mxu1 %v6934_v18 }
 0x111   : > { %865 = vmatpush1.bf16.msra.mxu1 %v6932_v19 }
 0x112   : > { %866 = vmatprep.subr.bf16.mxu1 %v6937_v20 }
 0x115   : > { %867 = vmatpush1.bf16.msra.mxu1 %v6935_v21  ;;  %v8185_v21 = vsub.s32 2, %v543_v43 }
 0x116   : > { %868 = vmatprep.subr.bf16.mxu1 %v6940_v22  ;;  %v8187_v22 = vsub.s32 3, %v543_v43 }
 0x117   : > { %v944_v40 = vrot.slane %v6034_v61, %v8185_v21 }
 0x118   : > { %v948_v43 = vrot.slane %v6034_v61, %v8187_v22  ;;  %v6965_v61 = vld [vmem:[#allocation8 + $0x4c] ss:$16 sps:$4 sm:$0xff]  }
 0x119   : > { %869 = vmatpush1.bf16.msra.mxu1 %v6938_v23  ;;  %v553_v23 = vrot.slane %v540_v48, %v8185_v21 }
 0x11a   : > { %870 = vmatprep.subr.bf16.mxu1 %v6943_v24  ;;  %v557_v24 = vrot.slane %v540_v48, %v8187_v22 }
 0x11d   : > { %871 = vmatpush1.bf16.msra.mxu1 %v6941_v25 }
 0x11e   : > { %2534 = vmatprep.subr.bf16.mxu1 %v6950_v28  ;;  %v913_v28 = vrot.slane %v6033_v53, %v8185_v21 }
 0x120   : > { %881 = vmatmul.mubr.bf16.vlgmr.msra.gmra.mrb[4].mxu1 %v490_v3 }
 0x121   : > { %2535 = vmatpush1.bf16.msra.mxu1 %v6948_v27 }
 0x122   : > { %2536 = vmatprep.subr.bf16.mxu1 %v6956_v29 }
 0x125   : > { %2537 = vmatpush1.bf16.msra.mxu1 %v6954_v30 }
 0x126   : > { %2538 = vmatprep.subr.bf16.mxu1 %v6962_v31  ;;  %v917_v31 = vrot.slane %v6033_v53, %v8187_v22 }
 0x129   : > { %2539 = vmatpush1.bf16.msra.mxu1 %v6960_v32 }
 0x12a   : > { %2540 = vmatprep.subr.bf16.mxu1 %v6968_v33 }
 0x12d   : > { %2541 = vmatpush1.bf16.msra.mxu1 %v6966_v34 }
 0x12e   : > { %2542 = vmatprep.subr.bf16.mxu1 %v6974_v35 }
 0x131   : > { %2543 = vmatpush1.bf16.msra.mxu1 %v6972_v36 }
 0x132   : > { %2544 = vmatprep.subr.bf16.mxu1 %v6980_v37 }
 0x135   : > { %2545 = vmatpush1.bf16.msra.mxu1 %v6978_v38 }
 0x136   : > { %2546 = vmatprep.subr.bf16.mxu1 %v6986_v39 }
 0x139   : > { %2547 = vmatpush1.bf16.msra.mxu1 %v6984_v41 }
 0x13a   : > { %2548 = vmatprep.subr.bf16.mxu1 %v6992_v42 }
 0x13d   : > { %2549 = vmatpush1.bf16.msra.mxu1 %v6990_v44 }
 0x13e   : > { %2550 = vmatprep.subr.bf16.mxu1 %v6998_v45 }
 0x141   : > { %2551 = vmatpush1.bf16.msra.mxu1 %v6996_v47 }
 0x142   : > { %2552 = vmatprep.subr.bf16.mxu1 %v7004_v50 }
 0x145   : > { %2553 = vmatpush1.bf16.msra.mxu1 %v7002_v52 }
 0x146   : > { %2554 = vmatprep.subr.bf16.mxu1 %v7010_v55  ;;  %v6953_v55 = vld [vmem:[#allocation8 + $0xc] ss:$16 sps:$4 sm:$0xff]  }
 0x149   : > { %2555 = vmatpush1.bf16.msra.mxu1 %v7008_v60  ;;  %v6957_v60 = vld [vmem:[#allocation8 + $0x28] ss:$16 sps:$4 sm:$0xff]  }
 0x1c3   : > { %v839_v56 = vpop.f32.mrb[0].mxu1 }
 0x1c4   : > { %v840_v57 = vadd.f32 %v839_v56, %v545_v51  ;;  %v841_v59 = vpop.f32.mrb[1].mxu1  ;;  %v6945_v56 = vld [vmem:[%s8970_s4 + $0x18] sm:$0xff]  }
 0x1c5   : > { %v842_v62 = vadd.f32 %v841_v59, %v549_v54  ;;  %v843_v0 = vpop.f32.mrb[2].mxu1  ;;  %v6959_v59 = vld [vmem:[#allocation8 + $0x2c] ss:$16 sps:$4 sm:$0xff]  }
 0x1c6   : > { %v891_v1 = vmax.f32 %v840_v57, 0.0  ;;  %v844_v2 = vadd.f32 %v843_v0, %v545_v51  ;;  %v845_v3 = vpop.f32.mrb[3].mxu1  ;;  %v6946_v57 = vld [vmem:[%s8970_s4] sm:$0xff]   ;;  %v6971_v0 = vld [vmem:[#allocation8 + $0x6c] ss:$16 sps:$4 sm:$0xff]  }
 0x1c7   : > { %v892_v4 = vmax.f32 %v842_v62, 0.0  ;;  %v846_v6 = vadd.f32 %v845_v3, %v549_v54  ;;  %v6944_v54 = vld [vmem:[%s8970_s4 + $0x10] sm:$0xff]   ;;  %v6947_v62 = vld [vmem:[%s8970_s4 + $0x8] sm:$0xff]  }
 0x1c8   : > { %v922_v7 = vmul.f32 %v905_v58, %v891_v1  ;;  %v895_v9 = vmax.f32 %v844_v2, 0.0  ;;  %v6969_v1 = vld [vmem:[#allocation8 + $0x68] ss:$16 sps:$4 sm:$0xff]   ;;  %v6977_v2 = vld [vmem:[#allocation8 + $0x8c] ss:$16 sps:$4 sm:$0xff]  }
 0x1c9   : > { %v923_v10 = vmul.f32 %v909_v63, %v892_v4  ;;  %v896_v12 = vmax.f32 %v846_v6, 0.0  ;;  %v6975_v3 = vld [vmem:[#allocation8 + $0x88] ss:$16 sps:$4 sm:$0xff]   ;;  %v6983_v4 = vld [vmem:[#allocation8 + $0xac] ss:$16 sps:$4 sm:$0xff]  }
 0x1ca   : > { %v926_v13 = vmul.f32 %v905_v58, %v895_v9  ;;  %v953_v15 = vadd.f32 %v936_v8, %v922_v7  ;;  %v6951_v58 = vld [vmem:[#allocation8 + $0x8] ss:$16 sps:$4 sm:$0xff]   ;;  %v6989_v7 = vld [vmem:[#allocation8 + $0xcc] ss:$16 sps:$4 sm:$0xff]  }
 0x1cb   : > { %v927_v14 = vmul.f32 %v909_v63, %v896_v12  ;;  %v954_v17 = vadd.f32 %v940_v11, %v923_v10  ;;  %v6963_v63 = vld [vmem:[#allocation8 + $0x48] ss:$16 sps:$4 sm:$0xff]   ;;  %v6995_v9 = vld [vmem:[#allocation8 + $0xec] ss:$16 sps:$4 sm:$0xff]  }
 0x1cc   : > { %v957_v16 = vadd.f32 %v936_v8, %v926_v13  ;;  %v6981_v6 = vld [vmem:[#allocation8 + $0xa8] ss:$16 sps:$4 sm:$0xff]   ;;  %v7007_v13 = vld [vmem:[#allocation8 + $0x12c] ss:$16 sps:$4 sm:$0xff]  }
 0x1cd   : > { %v958_v18 = vadd.f32 %v940_v11, %v927_v14  ;;  %v6987_v8 = vld [vmem:[#allocation8 + $0xc8] ss:$16 sps:$4 sm:$0xff]   ;;  %v7001_v11 = vld [vmem:[#allocation8 + $0x10c] ss:$16 sps:$4 sm:$0xff]  }
 0x1ce   : > { %v961_v19 = vpack.c.bf16 %v957_v16, %v953_v15  ;;  %v6993_v10 = vld [vmem:[#allocation8 + $0xe8] ss:$16 sps:$4 sm:$0xff]   ;;  %v7013_v15 = vld [vmem:[#allocation8 + $0x14c] ss:$16 sps:$4 sm:$0xff]  }
 0x1cf   : > { %v962_v20 = vpack.c.bf16 %v958_v18, %v954_v17  ;;  %v6999_v12 = vld [vmem:[#allocation8 + $0x108] ss:$16 sps:$4 sm:$0xff]   ;;  %v7016_v17 = vld [vmem:[#allocation8 + $0x164] ss:$16 sps:$4 sm:$0xff]   ;;  %v7019_v18 = vld [vmem:[#allocation8 + $0x16c] ss:$16 sps:$4 sm:$0xff]  }
 0x1d0   : > { %v7005_v14 = vld [vmem:[#allocation8 + $0x128] ss:$16 sps:$4 sm:$0xff]   ;;  %2556 = vmatprep.subr.bf16.mxu1 %v7016_v17  ;;  %v7044_v17 = vld [vmem:[#allocation8 + $0x200] ss:$16 sps:$4 sm:$0xff]  }
 0x1d1   : > { %v7011_v16 = vld [vmem:[#allocation8 + $0x148] ss:$16 sps:$4 sm:$0xff]  }
 0x1f3   : > { %v882_v25 = vpop.f32.mrb[4].mxu1 }
 0x1f4   : > { %v883_v27 = vadd.f32 %v882_v25, %v553_v23  ;;  %v884_v29 = vpop.f32.mrb[5].mxu1  ;;  %v7020_v25 = vld [vmem:[#allocation8 + $0x180] ss:$16 sps:$4 sm:$0xff]  }
 0x1f5   : > { %v885_v30 = vadd.f32 %v884_v29, %v557_v24  ;;  %v886_v32 = vpop.f32.mrb[6].mxu1 }
 0x1f6   : > { %v893_v33 = vmax.f32 %v883_v27, 0.0  ;;  %v887_v34 = vadd.f32 %v886_v32, %v553_v23  ;;  %v888_v35 = vpop.f32.mrb[7].mxu1  ;;  %v7022_v23 = vld [vmem:[#allocation8 + $0x184] ss:$16 sps:$4 sm:$0xff]   ;;  %v7023_v27 = vld [vmem:[#allocation8 + $0x188] ss:$16 sps:$4 sm:$0xff]  }
 0x1f7   : > { %v894_v36 = vmax.f32 %v885_v30, 0.0  ;;  %v889_v37 = vadd.f32 %v888_v35, %v557_v24  ;;  %v7025_v24 = vld [vmem:[#allocation8 + $0x18c] ss:$16 sps:$4 sm:$0xff]   ;;  %v7028_v30 = vld [vmem:[#allocation8 + $0x1a4] ss:$16 sps:$4 sm:$0xff]  }
 0x1f8   : > { %v924_v38 = vmul.f32 %v913_v28, %v893_v33  ;;  %v897_v39 = vmax.f32 %v887_v34, 0.0  ;;  %v7026_v33 = vld [vmem:[#allocation8 + $0x1a0] ss:$16 sps:$4 sm:$0xff]   ;;  %v7029_v34 = vld [vmem:[#allocation8 + $0x1a8] ss:$16 sps:$4 sm:$0xff]  }
 0x1f9   : > { %v925_v41 = vmul.f32 %v917_v31, %v894_v36  ;;  %v898_v42 = vmax.f32 %v889_v37, 0.0  ;;  %v7034_v35 = vld [vmem:[#allocation8 + $0x1c4] ss:$16 sps:$4 sm:$0xff]   ;;  %v7037_v36 = vld [vmem:[#allocation8 + $0x1cc] ss:$16 sps:$4 sm:$0xff]  }
 0x1fa   : > { %v928_v44 = vmul.f32 %v913_v28, %v897_v39  ;;  %v955_v47 = vadd.f32 %v944_v40, %v924_v38  ;;  %v979_v28 = vld [vmem:[#allocation3] sm:$0x11]  ;;  %v7035_v38 = vld [vmem:[#allocation8 + $0x1c8] ss:$16 sps:$4 sm:$0xff]  }
 0x1fb   : > { %v929_v45 = vmul.f32 %v917_v31, %v898_v42  ;;  %v956_v50 = vadd.f32 %v948_v43, %v925_v41  ;;  %v7031_v31 = vld [vmem:[#allocation8 + $0x1ac] ss:$16 sps:$4 sm:$0xff]   ;;  %v980_v32 = vsel %vm8217_vm6, 0, %v979_v28  ;;  %v7032_v37 = vld [vmem:[#allocation8 + $0x1c0] ss:$16 sps:$4 sm:$0xff]  }
 0x1fc   : > { %v959_v48 = vadd.f32 %v944_v40, %v928_v44  ;;  %981 = vst [vmem:[#allocation3] sm:$0x11] %v980_v32  ;;  %v7040_v39 = vld [vmem:[#allocation8 + $0x1e4] ss:$16 sps:$4 sm:$0xff]   ;;  %v7043_v40 = vld [vmem:[#allocation8 + $0x1ec] ss:$16 sps:$4 sm:$0xff]  }
 0x1fd   : > { %v960_v51 = vadd.f32 %v948_v43, %v929_v45  ;;  %v7038_v41 = vld [vmem:[#allocation8 + $0x1e0] ss:$16 sps:$4 sm:$0xff]   ;;  %v2970_v43 = vld [vmem:[#allocation4] sm:$0x11]  ;;  %v7406_v45 = vld [vmem:[#allocation11 + $0x344] ss:$16 sps:$4 sm:$0xff]  }
 0x1fe   : > { %v963_v52 = vpack.c.bf16 %v959_v48, %v955_v47  ;;  %v7041_v44 = vld [vmem:[#allocation8 + $0x1e8] ss:$16 sps:$4 sm:$0xff]   ;;  %v2971_v47 = vsel %vm8217_vm6, 0, %v2970_v43  ;;  %v7046_v48 = vld [vmem:[#allocation8 + $0x204] ss:$16 sps:$4 sm:$0xff]  }
 0x1ff   : > { %v964_v53 = vpack.c.bf16 %v960_v51, %v956_v50  ;;  %2972 = vst [vmem:[#allocation4] sm:$0x11] %v2971_v47  ;;  %v7049_v50 = vld [vmem:[#allocation8 + $0x20c] ss:$16 sps:$4 sm:$0xff]   ;;  %v7404_v42 = vld [vmem:[#allocation11 + $0x340] ss:$16 sps:$4 sm:$0xff]  }
 0x200   : > { %v7061_v43 = vld [vmem:[#allocation8 + $0x24c] ss:$16 sps:$4 sm:$0xff]  }
 0x201   : > { %999 = vmatprep.subr.bf16.mxu0 %v964_v53 }
 0x202   : > { %1000 = vmatpush1.bf16.msra.mxu0 %v963_v52 }
 0x203   : > { %1068 = vmatprep.subr.bf16.mxu0 %v962_v20  ;;  %v7017_v20 = vld [vmem:[#allocation8 + $0x168] ss:$16 sps:$4 sm:$0xff]  }
 0x205   : > { %6037 = vmatmul.mubr.msk.bf16.vlgmr.msra.gmra.mrb[0].mxu0 %vm992_vm13, %v6944_v54 }
 0x206   : > { %1069 = vmatpush1.bf16.msra.mxu0 %v961_v19  ;;  %1041 = vmatprep.mubr.bf16.mxu0 %v7810_v26  ;;  %v7014_v19 = vld [vmem:[#allocation8 + $0x160] ss:$16 sps:$4 sm:$0xff]  }
 0x207   : > { %2693 = vmatprep.subr.bf16.mxu0 %v6953_v55  ;;  %2557 = vmatpush1.bf16.msra.mxu1 %v7014_v19  ;;  %v7052_v19 = vld [vmem:[#allocation8 + $0x224] ss:$16 sps:$4 sm:$0xff]  }
 0x208   : > { %2558 = vmatprep.subr.bf16.mxu1 %v7022_v23  ;;  %v7352_v55 = vld [vmem:[#allocation11 + $0x224] ss:$16 sps:$4 sm:$0xff]  }
 0x20b   : > { %2559 = vmatpush1.bf16.msra.mxu1 %v7020_v25  ;;  %v7055_v25 = vld [vmem:[#allocation8 + $0x22c] ss:$16 sps:$4 sm:$0xff]  }
 0x20c   : > { %2560 = vmatprep.subr.bf16.mxu1 %v7028_v30 }
 0x20d   : > { %6038 = vmatmul.mubr.msk.bf16.gmra.mrb[4].mxu0 %vm992_vm13, %v6945_v56 }
 0x20e   : > { %1100 = vmatprep.mubr.bf16.mxu0 %v7810_v26 }
 0x20f   : > { %2561 = vmatpush1.bf16.msra.mxu1 %v7026_v33  ;;  %v7050_v33 = vld [vmem:[#allocation8 + $0x220] ss:$16 sps:$4 sm:$0xff]  }
 0x210   : > { %2562 = vmatprep.subr.bf16.mxu1 %v7034_v35  ;;  %v7058_v35 = vld [vmem:[#allocation8 + $0x244] ss:$16 sps:$4 sm:$0xff]  }
 0x213   : > { %2563 = vmatpush1.bf16.msra.mxu1 %v7032_v37 }
 0x214   : > { %2564 = vmatprep.subr.bf16.mxu1 %v7040_v39 }
 0x215   : > { %6041 = vmatmul.mubr.msk.bf16.vlgmr.msra.gmra.mrb[0].mxu0 %vm992_vm13, %v6946_v57 }
 0x216   : > { %1110 = vmatprep.mubr.bf16.mxu0 %v7810_v26  ;;  %2694 = vmatpush1.bf16.msra.mxu0 %v6951_v58  ;;  %v7344_v58 = vld [vmem:[#allocation11 + $0x200] ss:$16 sps:$4 sm:$0xff]  }
 0x217   : > { %2695 = vmatprep.subr.bf16.mxu0 %v6959_v59  ;;  %2565 = vmatpush1.bf16.msra.mxu1 %v7038_v41 }
 0x218   : > { %2587 = vmatprep.subr.bf16.mxu1 %v7046_v48 }
 0x21a   : > { %2696 = vmatpush1.bf16.msra.mxu0 %v6957_v60 }
 0x21b   : > { %2697 = vmatprep.subr.bf16.mxu0 %v6965_v61 }
 0x21d   : > { %6042 = vmatmul.mubr.msk.bf16.gmra.mrb[4].mxu0 %vm992_vm13, %v6947_v62  ;;  %vm1181_vm13 = vcmask 1043456  }
 0x21e   : > { %2698 = vmatpush1.bf16.msra.mxu0 %v6963_v63  ;;  %vm8242_vm15 = vmand %vm1181_vm13, %vm420_vm5  ;;  %v1187_v63 = vld [vmem:[#allocation3] sm:$0xff]  ;;  %vm2993_vm5 = vcmask 261120  }
 0x21f   : > { %2699 = vmatprep.subr.bf16.mxu0 %v6971_v0  ;;  %vm1186_vm2 = vmor %vm8247_vm0, %vm8242_vm15 }
 0x222   : > { %2700 = vmatpush1.bf16.msra.mxu0 %v6969_v1 }
 0x223   : > { %2701 = vmatprep.subr.bf16.mxu0 %v6977_v2 }
 0x226   : > { %2702 = vmatpush1.bf16.msra.mxu0 %v6975_v3 }
 0x227   : > { %2703 = vmatprep.subr.bf16.mxu0 %v6983_v4 }
 0x22a   : > { %2704 = vmatpush1.bf16.msra.mxu0 %v6981_v6 }
 0x22b   : > { %2705 = vmatprep.subr.bf16.mxu0 %v6989_v7 }
 0x22e   : > { %2706 = vmatpush1.bf16.msra.mxu0 %v6987_v8 }
 0x22f   : > { %2707 = vmatprep.subr.bf16.mxu0 %v6995_v9 }
 0x232   : > { %2708 = vmatpush1.bf16.msra.mxu0 %v6993_v10 }
 0x233   : > { %2709 = vmatprep.subr.bf16.mxu0 %v7001_v11 }
 0x236   : > { %2710 = vmatpush1.bf16.msra.mxu0 %v6999_v12 }
 0x237   : > { %2711 = vmatprep.subr.bf16.mxu0 %v7007_v13 }
 0x23a   : > { %2712 = vmatpush1.bf16.msra.mxu0 %v7005_v14 }
 0x23b   : > { %2713 = vmatprep.subr.bf16.mxu0 %v7013_v15 }
 0x23e   : > { %2714 = vmatpush1.bf16.msra.mxu0 %v7011_v16 }
 0x23f   : > { %2715 = vmatprep.subr.bf16.mxu0 %v7019_v18  ;;  %v7047_v18 = vld [vmem:[#allocation8 + $0x208] ss:$16 sps:$4 sm:$0xff]  }
 0x242   : > { %2716 = vmatpush1.bf16.msra.mxu0 %v7017_v20 }
 0x243   : > { %2717 = vmatprep.subr.bf16.mxu0 %v7025_v24 }
 0x246   : > { %2718 = vmatpush1.bf16.msra.mxu0 %v7023_v27  ;;  %v1193_v27 = vld [vmem:[#allocation3 + $0x20] sm:$0x11] }
 0x247   : > { %2719 = vmatprep.subr.bf16.mxu0 %v7031_v31 }
 0x24a   : > { %2720 = vmatpush1.bf16.msra.mxu0 %v7029_v34  ;;  %v7053_v34 = vld [vmem:[#allocation8 + $0x228] ss:$16 sps:$4 sm:$0xff]  }
 0x24b   : > { %2721 = vmatprep.subr.bf16.mxu0 %v7037_v36 }
 0x24e   : > { %2722 = vmatpush1.bf16.msra.mxu0 %v7035_v38 }
 0x24f   : > { %2723 = vmatprep.subr.bf16.mxu0 %v7043_v40 }
 0x252   : > { %2724 = vmatpush1.bf16.msra.mxu0 %v7041_v44 }
 0x253   : > { %2746 = vmatprep.subr.bf16.mxu0 %v7049_v50 }
 0x2e8   : > { %v1102_v51 = vpop.f32.mrb[0].mxu0 }
 0x2e9   : > { %v1104_v52 = vpop.f32.mrb[1].mxu0 }
 0x2ea   : > { %v6555_v53 = vpack.c.bf16 %v1104_v52, %v1102_v51  ;;  %v1106_v54 = vpop.f32.mrb[2].mxu0 }
 0x2eb   : > { %v1108_v56 = vpop.f32.mrb[3].mxu0 }
 0x2ec   : > { %v1142_v57 = vshrl.u32 %v6555_v53, 16  ;;  %v6556_v59 = vpack.c.bf16 %v1108_v56, %v1106_v54  ;;  %v1145_v61 = vshll.u32 %v6555_v53, 16  ;;  %v7056_v53 = vld [vmem:[#allocation8 + $0x240] ss:$16 sps:$4 sm:$0xff]   ;;  %v7059_v54 = vld [vmem:[#allocation8 + $0x248] ss:$16 sps:$4 sm:$0xff]  }
 0x2ee   : > { %v1144_v60 = vrot.slane %v1142_v57, 7  ;;  %v1150_v62 = vshrl.u32 %v6556_v59, 16  ;;  %v1153_v2 = vshll.u32 %v6556_v59, 16 }
 0x2f0   : > { %v1147_v0 = vor.u32 %v1145_v61, %v1144_v60  ;;  %v1152_v1 = vrot.slane %v1150_v62, 7  ;;  %v1112_v3 = vpop.f32.mrb[4].mxu0  ;;  %v1148_v6 = vrot.slane %v1144_v60, 4  ;;  %v7064_v60 = vld [vmem:[#allocation8 + $0x264] ss:$16 sps:$4 sm:$0xff]  }
 0x2f1   : > { %v1114_v4 = vpop.f32.mrb[5].mxu0  ;;  %v7067_v61 = vld [vmem:[#allocation8 + $0x26c] ss:$16 sps:$4 sm:$0xff]  }
 0x2f2   : > { %v1188_v7 = vsel %vm1186_vm2, %v1147_v0, %v1187_v63  ;;  %v1155_v8 = vor.u32 %v1153_v2, %v1152_v1  ;;  %v6557_v9 = vpack.c.bf16 %v1114_v4, %v1112_v3  ;;  %v1116_v10 = vpop.f32.mrb[6].mxu0  ;;  %v1157_v28 = vrot.slane %v1152_v1, 4 }
 0x2f3   : > { %1189 = vst [vmem:[#allocation3] sm:$0xff] %v1188_v7  ;;  %v1118_v11 = vpop.f32.mrb[7].mxu0 }
 0x2f4   : > { %v8262_v12 = vsel %vm8004_vm4, %v1148_v6, %v1155_v8  ;;  %v1159_v13 = vshrl.u32 %v6557_v9, 16  ;;  %v6558_v14 = vpack.c.bf16 %v1118_v11, %v1116_v10  ;;  %v1162_v23 = vshll.u32 %v6557_v9, 16  ;;  %v7065_v8 = vld [vmem:[#allocation8 + $0x268] ss:$16 sps:$4 sm:$0xff]  }
 0x2f5   : > { %v8265_v15 = vcombine.low %v1188_v7, %v8262_v12  ;;  %v8268_v16 = vcombine.high %v1188_v7, %v8262_v12  ;;  %v7062_v7 = vld [vmem:[#allocation8 + $0x260] ss:$16 sps:$4 sm:$0xff]  }
 0x2f6   : > { %v1161_v20 = vrot.slane %v1159_v13, 7  ;;  %v1168_v24 = vshrl.u32 %v6558_v14, 16  ;;  %v1171_v32 = vshll.u32 %v6558_v14, 16  ;;  %v7070_v13 = vld [vmem:[#allocation8 + $0x284] ss:$16 sps:$4 sm:$0xff]  }
 0x2f7   : > { %2566 = vmatprep.mubr.bf16.mxu1 %v8268_v16  ;;  %2725 = vmatprep.mubr.bf16.mxu0 %v8268_v16  ;;  %v1271_v36 = vshll.u32 %v8268_v16, 16  ;;  %v1259_v37 = vshll.u32 %v8265_v15, 16  ;;  %v1269_v62 = vshrl.u32 %v8268_v16, 16  ;;  %v1257_v0 = vshrl.u32 %v8265_v15, 16  ;;  %v7073_v14 = vld [vmem:[#allocation8 + $0x28c] ss:$16 sps:$4 sm:$0xff]  }
 0x2f8   : > { %v1164_v30 = vor.u32 %v1162_v23, %v1161_v20  ;;  %v1170_v31 = vrot.slane %v1168_v24, 7  ;;  %2567 = vmatmul.mubr.bf16.vlgmr.msra.gmra.mrb[8].mxu1 %v8265_v15  ;;  %2726 = vmatmul.mubr.bf16.vlgmr.msra.gmra.mrb[8].mxu0 %v8265_v15  ;;  %v1166_v39 = vrot.slane %v1161_v20, 4  ;;  %v7068_v23 = vld [vmem:[#allocation8 + $0x280] ss:$16 sps:$4 sm:$0xff]   ;;  %v7071_v24 = vld [vmem:[#allocation8 + $0x288] ss:$16 sps:$4 sm:$0xff]  }
 0x2f9   : > { %2588 = vmatpush1.bf16.msra.mxu1 %v7044_v17  ;;  %2747 = vmatpush1.bf16.msra.mxu0 %v7047_v18  ;;  %v1273_v57 = vrot.slane %v1271_v36, 1  ;;  %v1261_v59 = vrot.slane %v1259_v37, 1  ;;  %v7091_v36 = vld [vmem:[#allocation8 + $0x2ec] ss:$16 sps:$4 sm:$0xff]   ;;  %v7086_v37 = vld [vmem:[#allocation8 + $0x2e0] ss:$16 sps:$4 sm:$0xff]  }
 0x2fa   : > { %v1165_v38 = vsel %vm8004_vm4, %v1157_v28, %v1164_v30  ;;  %v1173_v40 = vor.u32 %v1171_v32, %v1170_v31  ;;  %v1175_v41 = vrot.slane %v1170_v31, 4  ;;  %2589 = vmatprep.subr.bf16.mxu1 %v7052_v19  ;;  %2748 = vmatprep.subr.bf16.mxu0 %v7055_v25  ;;  %v1304_v44 = vld [vmem:[#allocation3] sm:$0xee]  ;;  %v7077_v30 = vld [vmem:[#allocation8 + $0x2a8] ss:$16 sps:$4 sm:$0xff]  }
 0x2fb   : > { %v6057_v50 = vcombine.low %v1304_v44, %v8262_v12  ;;  %v6058_v51 = vcombine.high %v1304_v44, %v8262_v12  ;;  %v1274_v9 = vor.u32 %v1273_v57, %v1269_v62  ;;  %v1262_v11 = vor.u32 %v1261_v59, %v1257_v0  ;;  %v7076_v25 = vld [vmem:[#allocation8 + $0x2a4] ss:$16 sps:$4 sm:$0xff]   ;;  %v7074_v28 = vld [vmem:[#allocation8 + $0x2a0] ss:$16 sps:$4 sm:$0xff]   ;;  %v7085_v32 = vld [vmem:[#allocation8 + $0x2cc] ss:$16 sps:$4 sm:$0xff]  }
 0x2fc   : > { %v1174_v47 = vsel %vm8004_vm4, %v1166_v39, %v1173_v40  ;;  %v1194_v48 = vsel %vm8217_vm6, %v1175_v41, %v1193_v27  ;;  %v7079_v27 = vld [vmem:[#allocation8 + $0x2ac] ss:$16 sps:$4 sm:$0xff]   ;;  %v7082_v31 = vld [vmem:[#allocation8 + $0x2c4] ss:$16 sps:$4 sm:$0xff]   ;;  %v7092_v41 = vld [vmem:[#allocation8 + $0x300] ss:$16 sps:$4 sm:$0xff]  }
 0x2fd   : > { %1195 = vst [vmem:[#allocation3 + $0x20] sm:$0x11] %v1194_v48  ;;  %2590 = vmatpush1.bf16.msra.mxu1 %v7050_v33  ;;  %2749 = vmatpush1.bf16.msra.mxu0 %v7053_v34  ;;  %v8284_v52 = vcombine.high %v1165_v38, %v1174_v47  ;;  %v8286_v56 = vcombine.low %v1165_v38, %v1174_v47  ;;  %v1330_v2 = vrot.slane %v6057_v50, 1  ;;  %v1333_v4 = vrot.slane %v6058_v51, 1  ;;  %v7080_v33 = vld [vmem:[#allocation8 + $0x2c0] ss:$16 sps:$4 sm:$0xff]  }
 0x2fe   : > { %2591 = vmatprep.subr.bf16.mxu1 %v7058_v35  ;;  %2750 = vmatprep.subr.bf16.mxu0 %v7061_v43  ;;  %v7083_v34 = vld [vmem:[#allocation8 + $0x2c8] ss:$16 sps:$4 sm:$0xff]   ;;  %v7088_v35 = vld [vmem:[#allocation8 + $0x2e4] ss:$16 sps:$4 sm:$0xff]   ;;  %v7097_v40 = vld [vmem:[#allocation8 + $0x30c] ss:$16 sps:$4 sm:$0xff]  }
 0x2ff   : > { %2576 = vmatprep.mubr.bf16.mxu1 %v8284_v52  ;;  %2735 = vmatprep.mubr.bf16.mxu0 %v8284_v52  ;;  %v1276_v63 = vshll.u32 %v8284_v52, 16  ;;  %v1264_v1 = vshll.u32 %v8286_v56, 16  ;;  %v1331_v3 = vrot.slane %v8286_v56, 1  ;;  %v1334_v6 = vrot.slane %v8284_v52, 1  ;;  %v7089_v38 = vld [vmem:[#allocation8 + $0x2e8] ss:$16 sps:$4 sm:$0xff]  }
 0x300   : > { %2577 = vmatmul.mubr.bf16.gmra.mrb[12].mxu1 %v8286_v56  ;;  %2736 = vmatmul.mubr.bf16.gmra.mrb[12].mxu0 %v8286_v56  ;;  %v7094_v39 = vld [vmem:[#allocation8 + $0x304] ss:$16 sps:$4 sm:$0xff]   ;;  %v7095_v43 = vld [vmem:[#allocation8 + $0x308] ss:$16 sps:$4 sm:$0xff]   ;;  %v7103_v47 = vld [vmem:[#allocation8 + $0x32c] ss:$16 sps:$4 sm:$0xff]  }
 0x301   : > { %2592 = vmatpush1.bf16.msra.mxu1 %v7056_v53  ;;  %2751 = vmatpush1.bf16.msra.mxu0 %v7059_v54  ;;  %v8298_v10 = vrot.slane %v1276_v63, 1  ;;  %v8300_v12 = vrot.slane %v1264_v1, 1  ;;  %v8305_v15 = vsel %vm484_vm10, %v1333_v4, %v1334_v6  ;;  %v8310_v16 = vsel %vm484_vm10, %v1330_v2, %v1331_v3  ;;  %v7100_v44 = vld [vmem:[#allocation8 + $0x324] ss:$16 sps:$4 sm:$0xff]   ;;  %v7098_v48 = vld [vmem:[#allocation8 + $0x320] ss:$16 sps:$4 sm:$0xff]  }
 0x302   : > { %2593 = vmatprep.subr.bf16.mxu1 %v7064_v60  ;;  %2752 = vmatprep.subr.bf16.mxu0 %v7067_v61  ;;  %v7101_v50 = vld [vmem:[#allocation8 + $0x328] ss:$16 sps:$4 sm:$0xff]   ;;  %v7106_v51 = vld [vmem:[#allocation8 + $0x344] ss:$16 sps:$4 sm:$0xff]   ;;  %v7109_v53 = vld [vmem:[#allocation8 + $0x34c] ss:$16 sps:$4 sm:$0xff]  }
 0x303   : > { %v1279_v17 = vsel %vm455_vm11, %v1274_v9, %v8298_v10  ;;  %v8316_v18 = vsel %vm455_vm11, %v1262_v11, %v8300_v12  ;;  %v7104_v54 = vld [vmem:[#allocation8 + $0x340] ss:$16 sps:$4 sm:$0xff]   ;;  %v7107_v57 = vld [vmem:[#allocation8 + $0x348] ss:$16 sps:$4 sm:$0xff]   ;;  %v7112_v59 = vld [vmem:[#allocation8 + $0x364] ss:$16 sps:$4 sm:$0xff]  }
 0x304   : > { %v1199_v19 = vld [vmem:[#allocation3 + $0x20] sm:$0x11]  ;;  %2619 = vmatprep.mubr.bf16.mxu1 %v1279_v17  ;;  %2778 = vmatprep.mubr.bf16.mxu0 %v1279_v17  ;;  %v7115_v60 = vld [vmem:[#allocation8 + $0x36c] ss:$16 sps:$4 sm:$0xff]   ;;  %v7113_v62 = vld [vmem:[#allocation8 + $0x368] ss:$16 sps:$4 sm:$0xff]  }
 0x305   : > { %v1200_v20 = vsel %vm1198_vm12, 0, %v1199_v19  ;;  %2594 = vmatpush1.bf16.msra.mxu1 %v7062_v7  ;;  %2753 = vmatpush1.bf16.msra.mxu0 %v7065_v8  ;;  %v7110_v61 = vld [vmem:[#allocation8 + $0x360] ss:$16 sps:$4 sm:$0xff]   ;;  %v7118_v63 = vld [vmem:[#allocation8 + $0x384] ss:$16 sps:$4 sm:$0xff]  }
 0x306   : > { %1201 = vst [vmem:[#allocation3 + $0x20] sm:$0x11] %v1200_v20  ;;  %2595 = vmatprep.subr.bf16.mxu1 %v7070_v13  ;;  %2754 = vmatprep.subr.bf16.mxu0 %v7073_v14  ;;  %v7121_v0 = vld [vmem:[#allocation8 + $0x38c] ss:$16 sps:$4 sm:$0xff]   ;;  %v7116_v1 = vld [vmem:[#allocation8 + $0x380] ss:$16 sps:$4 sm:$0xff]  }
 0x307   : > { %v7119_v2 = vld [vmem:[#allocation8 + $0x388] ss:$16 sps:$4 sm:$0xff]   ;;  %v7124_v4 = vld [vmem:[#allocation8 + $0x3a4] ss:$16 sps:$4 sm:$0xff]   ;;  %v7127_v7 = vld [vmem:[#allocation8 + $0x3ac] ss:$16 sps:$4 sm:$0xff]  }
 0x308   : > { %v7122_v8 = vld [vmem:[#allocation8 + $0x3a0] ss:$16 sps:$4 sm:$0xff]   ;;  %v7125_v9 = vld [vmem:[#allocation8 + $0x3a8] ss:$16 sps:$4 sm:$0xff]   ;;  %v7130_v13 = vld [vmem:[#allocation8 + $0x3c4] ss:$16 sps:$4 sm:$0xff]  }
 0x309   : > { %2596 = vmatpush1.bf16.msra.mxu1 %v7068_v23  ;;  %2755 = vmatpush1.bf16.msra.mxu0 %v7071_v24  ;;  %v7133_v14 = vld [vmem:[#allocation8 + $0x3cc] ss:$16 sps:$4 sm:$0xff]   ;;  %v7128_v19 = vld [vmem:[#allocation8 + $0x3c0] ss:$16 sps:$4 sm:$0xff]   ;;  %v7131_v20 = vld [vmem:[#allocation8 + $0x3c8] ss:$16 sps:$4 sm:$0xff]  }
 0x30a   : > { %2597 = vmatprep.subr.bf16.mxu1 %v7076_v25  ;;  %2756 = vmatprep.subr.bf16.mxu0 %v7079_v27  ;;  %v7136_v23 = vld [vmem:[#allocation8 + $0x3e4] ss:$16 sps:$4 sm:$0xff]   ;;  %v7139_v24 = vld [vmem:[#allocation8 + $0x3ec] ss:$16 sps:$4 sm:$0xff]   ;;  %v7134_v27 = vld [vmem:[#allocation8 + $0x3e0] ss:$16 sps:$4 sm:$0xff]  }
 0x30d   : > { %2598 = vmatpush1.bf16.msra.mxu1 %v7074_v28  ;;  %2757 = vmatpush1.bf16.msra.mxu0 %v7077_v30  ;;  %v1234_v11 = vld [vmem:[#allocation3 + $0x20] sm:$0x11]  ;;  %v7137_v28 = vld [vmem:[#allocation8 + $0x3e8] ss:$16 sps:$4 sm:$0xff]  }
 0x30e   : > { %2599 = vmatprep.subr.bf16.mxu1 %v7082_v31  ;;  %2758 = vmatprep.subr.bf16.mxu0 %v7085_v32  ;;  %v6056_v17 = vcombine.high %v1234_v11, %v1234_v11  ;;  %v7142_v30 = vld [vmem:[#allocation8 + $0x404] ss:$16 sps:$4 sm:$0xff]   ;;  %v7145_v31 = vld [vmem:[#allocation8 + $0x40c] ss:$16 sps:$4 sm:$0xff]   ;;  %v6055_v32 = vcombine.low %v1234_v11, %v1234_v11  ;;  %v7181_v11 = vld [vmem:[#allocation8 + $0x4c8] ss:$16 sps:$4 sm:$0xff]  }
 0x310   : > { %v1292_v25 = vshll.u32 %v6056_v17, 16  ;;  %v7184_v17 = vld [vmem:[#allocation8 + $0x4e0] ss:$16 sps:$4 sm:$0xff]  }
 0x311   : > { %2600 = vmatpush1.bf16.msra.mxu1 %v7080_v33  ;;  %2759 = vmatpush1.bf16.msra.mxu0 %v7083_v34  ;;  %v1288_v33 = vshrl.u32 %v8284_v52, 16  ;;  %v7254_v52 = vld [vmem:[#allocation11 + $0x20] ss:$16 sps:$4 sm:$0xff]  }
 0x312   : > { %2601 = vmatprep.subr.bf16.mxu1 %v7088_v35  ;;  %2760 = vmatprep.subr.bf16.mxu0 %v7091_v36  ;;  %v1294_v34 = vrot.slane %v1292_v25, 1  ;;  %v7140_v35 = vld [vmem:[#allocation8 + $0x400] ss:$16 sps:$4 sm:$0xff]   ;;  %v7143_v36 = vld [vmem:[#allocation8 + $0x408] ss:$16 sps:$4 sm:$0xff]  }
 0x313   : > { %v7193_v25 = vld [vmem:[#allocation8 + $0x508] ss:$16 sps:$4 sm:$0xff]  }
 0x315   : > { %2602 = vmatpush1.bf16.msra.mxu1 %v7086_v37  ;;  %2761 = vmatpush1.bf16.msra.mxu0 %v7089_v38  ;;  %v1290_v37 = vor.u32 %v1288_v33, %v8298_v10  ;;  %v7149_v38 = vld [vmem:[#allocation8 + $0x424] ss:$16 sps:$4 sm:$0xff]   ;;  %v1280_v10 = vshrl.u32 %v8286_v56, 16  ;;  %v7207_v33 = vld [vmem:[#allocation8 + $0x54c] ss:$16 sps:$4 sm:$0xff]  }
 0x316   : > { %2603 = vmatprep.subr.bf16.mxu1 %v7094_v39  ;;  %2762 = vmatprep.subr.bf16.mxu0 %v7097_v40  ;;  %v7152_v39 = vld [vmem:[#allocation8 + $0x42c] ss:$16 sps:$4 sm:$0xff]   ;;  %v1284_v40 = vshll.u32 %v6055_v32, 16  ;;  %v7204_v32 = vld [vmem:[#allocation8 + $0x544] ss:$16 sps:$4 sm:$0xff]  }
 0x317   : > { %v7266_v56 = vld [vmem:[#allocation11 + $0x60] ss:$16 sps:$4 sm:$0xff]  }
 0x319   : > { %2604 = vmatpush1.bf16.msra.mxu1 %v7092_v41  ;;  %2763 = vmatpush1.bf16.msra.mxu0 %v7095_v43  ;;  %v1295_v41 = vsel %vm455_vm11, %v1290_v37, %v1294_v34  ;;  %v7147_v43 = vld [vmem:[#allocation8 + $0x420] ss:$16 sps:$4 sm:$0xff]   ;;  %v7213_v37 = vld [vmem:[#allocation8 + $0x56c] ss:$16 sps:$4 sm:$0xff]  }
 0x31a   : > { %2605 = vmatprep.subr.bf16.mxu1 %v7100_v44  ;;  %2764 = vmatprep.subr.bf16.mxu0 %v7103_v47  ;;  %v7150_v44 = vld [vmem:[#allocation8 + $0x428] ss:$16 sps:$4 sm:$0xff]   ;;  %v7156_v47 = vld [vmem:[#allocation8 + $0x444] ss:$16 sps:$4 sm:$0xff]   ;;  %v7202_v34 = vld [vmem:[#allocation8 + $0x540] ss:$16 sps:$4 sm:$0xff]  }
 0x31d   : > { %2606 = vmatpush1.bf16.msra.mxu1 %v7098_v48  ;;  %2765 = vmatpush1.bf16.msra.mxu0 %v7101_v50  ;;  %v1286_v48 = vrot.slane %v1284_v40, 1  ;;  %v7159_v50 = vld [vmem:[#allocation8 + $0x44c] ss:$16 sps:$4 sm:$0xff]   ;;  %v7216_v40 = vld [vmem:[#allocation8 + $0x584] ss:$16 sps:$4 sm:$0xff]  }
 0x31e   : > { %2607 = vmatprep.subr.bf16.mxu1 %v7106_v51  ;;  %2766 = vmatprep.subr.bf16.mxu0 %v7109_v53  ;;  %v1282_v51 = vor.u32 %v1280_v10, %v8300_v12  ;;  %v7154_v53 = vld [vmem:[#allocation8 + $0x440] ss:$16 sps:$4 sm:$0xff]   ;;  %v7168_v12 = vld [vmem:[#allocation8 + $0x484] ss:$16 sps:$4 sm:$0xff]   ;;  %v7225_v10 = vld [vmem:[#allocation8 + $0x5ac] ss:$16 sps:$4 sm:$0xff]  }
 0x321   : > { %2608 = vmatpush1.bf16.msra.mxu1 %v7104_v54  ;;  %2767 = vmatpush1.bf16.msra.mxu0 %v7107_v57  ;;  %v1287_v54 = vsel %vm455_vm11, %v1282_v51, %v1286_v48  ;;  %v7162_v57 = vld [vmem:[#allocation8 + $0x464] ss:$16 sps:$4 sm:$0xff]   ;;  %v7220_v48 = vld [vmem:[#allocation8 + $0x5a0] ss:$16 sps:$4 sm:$0xff]  }
 0x322   : > { %2609 = vmatprep.subr.bf16.mxu1 %v7112_v59  ;;  %2768 = vmatprep.subr.bf16.mxu0 %v7115_v60  ;;  %v7165_v59 = vld [vmem:[#allocation8 + $0x46c] ss:$16 sps:$4 sm:$0xff]   ;;  %v7160_v60 = vld [vmem:[#allocation8 + $0x460] ss:$16 sps:$4 sm:$0xff]   ;;  %v7228_v51 = vld [vmem:[#allocation8 + $0x5c4] ss:$16 sps:$4 sm:$0xff]  }
 0x325   : > { %2610 = vmatpush1.bf16.msra.mxu1 %v7110_v61  ;;  %2769 = vmatpush1.bf16.msra.mxu0 %v7113_v62  ;;  %v7163_v61 = vld [vmem:[#allocation8 + $0x468] ss:$16 sps:$4 sm:$0xff]   ;;  %v7171_v62 = vld [vmem:[#allocation8 + $0x48c] ss:$16 sps:$4 sm:$0xff]  }
 0x326   : > { %2611 = vmatprep.subr.bf16.mxu1 %v7118_v63  ;;  %2770 = vmatprep.subr.bf16.mxu0 %v7121_v0  ;;  %v7166_v63 = vld [vmem:[#allocation8 + $0x480] ss:$16 sps:$4 sm:$0xff]   ;;  %v7169_v0 = vld [vmem:[#allocation8 + $0x488] ss:$16 sps:$4 sm:$0xff]  }
 0x329   : > { %2612 = vmatpush1.bf16.msra.mxu1 %v7116_v1  ;;  %2771 = vmatpush1.bf16.msra.mxu0 %v7119_v2  ;;  %v7174_v1 = vld [vmem:[#allocation8 + $0x4a4] ss:$16 sps:$4 sm:$0xff]   ;;  %v7177_v2 = vld [vmem:[#allocation8 + $0x4ac] ss:$16 sps:$4 sm:$0xff]  }
 0x32a   : > { %2613 = vmatprep.subr.bf16.mxu1 %v7124_v4  ;;  %2772 = vmatprep.subr.bf16.mxu0 %v7127_v7  ;;  %v7172_v4 = vld [vmem:[#allocation8 + $0x4a0] ss:$16 sps:$4 sm:$0xff]   ;;  %v7175_v7 = vld [vmem:[#allocation8 + $0x4a8] ss:$16 sps:$4 sm:$0xff]  }
 0x32d   : > { %2614 = vmatpush1.bf16.msra.mxu1 %v7122_v8  ;;  %2773 = vmatpush1.bf16.msra.mxu0 %v7125_v9  ;;  %v7180_v8 = vld [vmem:[#allocation8 + $0x4c4] ss:$16 sps:$4 sm:$0xff]   ;;  %v7178_v9 = vld [vmem:[#allocation8 + $0x4c0] ss:$16 sps:$4 sm:$0xff]  }
 0x32e   : > { %2615 = vmatprep.subr.bf16.mxu1 %v7130_v13  ;;  %2774 = vmatprep.subr.bf16.mxu0 %v7133_v14  ;;  %v7186_v13 = vld [vmem:[#allocation8 + $0x4e4] ss:$16 sps:$4 sm:$0xff]   ;;  %v7189_v14 = vld [vmem:[#allocation8 + $0x4ec] ss:$16 sps:$4 sm:$0xff]  }
 0x331   : > { %2616 = vmatpush1.bf16.msra.mxu1 %v7128_v19  ;;  %2775 = vmatpush1.bf16.msra.mxu0 %v7131_v20  ;;  %v7187_v19 = vld [vmem:[#allocation8 + $0x4e8] ss:$16 sps:$4 sm:$0xff]   ;;  %v7192_v20 = vld [vmem:[#allocation8 + $0x504] ss:$16 sps:$4 sm:$0xff]  }
 0x332   : > { %2617 = vmatprep.subr.bf16.mxu1 %v7136_v23  ;;  %2776 = vmatprep.subr.bf16.mxu0 %v7139_v24  ;;  %v7195_v23 = vld [vmem:[#allocation8 + $0x50c] ss:$16 sps:$4 sm:$0xff]   ;;  %v7190_v24 = vld [vmem:[#allocation8 + $0x500] ss:$16 sps:$4 sm:$0xff]  }
 0x335   : > { %2618 = vmatpush1.bf16.msra.mxu1 %v7134_v27  ;;  %2777 = vmatpush1.bf16.msra.mxu0 %v7137_v28  ;;  %v7198_v27 = vld [vmem:[#allocation8 + $0x524] ss:$16 sps:$4 sm:$0xff]   ;;  %v7201_v28 = vld [vmem:[#allocation8 + $0x52c] ss:$16 sps:$4 sm:$0xff]  }
 0x336   : > { %2640 = vmatprep.subr.bf16.mxu1 %v7142_v30  ;;  %2799 = vmatprep.subr.bf16.mxu0 %v7145_v31  ;;  %v7196_v30 = vld [vmem:[#allocation8 + $0x520] ss:$16 sps:$4 sm:$0xff]   ;;  %v7199_v31 = vld [vmem:[#allocation8 + $0x528] ss:$16 sps:$4 sm:$0xff]  }
 0x338   : > { %2620 = vmatmul.mubr.bf16.vlgmr.msra.gmra.mrb[8].mxu1 %v8316_v18  ;;  %2779 = vmatmul.mubr.bf16.vlgmr.msra.gmra.mrb[8].mxu0 %v8316_v18  ;;  %v7157_v18 = vld [vmem:[#allocation8 + $0x448] ss:$16 sps:$4 sm:$0xff]  }
 0x339   : > { %2629 = vmatprep.mubr.bf16.mxu1 %v1295_v41  ;;  %2641 = vmatpush1.bf16.msra.mxu1 %v7140_v35  ;;  %v7205_v35 = vld [vmem:[#allocation8 + $0x548] ss:$16 sps:$4 sm:$0xff]  }
 0x33a   : > { %2788 = vmatprep.mubr.bf16.mxu0 %v1295_v41  ;;  %2800 = vmatpush1.bf16.msra.mxu0 %v7143_v36  ;;  %v7210_v36 = vld [vmem:[#allocation8 + $0x564] ss:$16 sps:$4 sm:$0xff]   ;;  %v7219_v41 = vld [vmem:[#allocation8 + $0x58c] ss:$16 sps:$4 sm:$0xff]  }
 0x33b   : > { %2642 = vmatprep.subr.bf16.mxu1 %v7149_v38  ;;  %2801 = vmatprep.subr.bf16.mxu0 %v7152_v39  ;;  %v7208_v38 = vld [vmem:[#allocation8 + $0x560] ss:$16 sps:$4 sm:$0xff]   ;;  %v7211_v39 = vld [vmem:[#allocation8 + $0x568] ss:$16 sps:$4 sm:$0xff]  }
 0x33d   : > { %2643 = vmatpush1.bf16.msra.mxu1 %v7147_v43  ;;  %v7214_v43 = vld [vmem:[#allocation8 + $0x580] ss:$16 sps:$4 sm:$0xff]  }
 0x33e   : > { %2802 = vmatpush1.bf16.msra.mxu0 %v7150_v44  ;;  %2644 = vmatprep.subr.bf16.mxu1 %v7156_v47  ;;  %v7217_v44 = vld [vmem:[#allocation8 + $0x588] ss:$16 sps:$4 sm:$0xff]   ;;  %v7222_v47 = vld [vmem:[#allocation8 + $0x5a4] ss:$16 sps:$4 sm:$0xff]  }
 0x33f   : > { %2803 = vmatprep.subr.bf16.mxu0 %v7159_v50  ;;  %v7223_v50 = vld [vmem:[#allocation8 + $0x5a8] ss:$16 sps:$4 sm:$0xff]  }
 0x340   : > { %2630 = vmatmul.mubr.bf16.gmra.mrb[12].mxu1 %v1287_v54  ;;  %2789 = vmatmul.mubr.bf16.gmra.mrb[12].mxu0 %v1287_v54  ;;  %v1308_v54 = vld [vmem:[#allocation3 + $0x20] sm:$0x11] }
 0x341   : > { %2645 = vmatpush1.bf16.msra.mxu1 %v7154_v53  ;;  %2672 = vmatprep.mubr.bf16.mxu1 %v8305_v15  ;;  %v7231_v53 = vld [vmem:[#allocation8 + $0x5cc] ss:$16 sps:$4 sm:$0xff]  }
 0x342   : > { %2804 = vmatpush1.bf16.msra.mxu0 %v7157_v18  ;;  %2831 = vmatprep.mubr.bf16.mxu0 %v8305_v15  ;;  %v7183_v15 = vld [vmem:[#allocation8 + $0x4cc] ss:$16 sps:$4 sm:$0xff]   ;;  %v7226_v18 = vld [vmem:[#allocation8 + $0x5c0] ss:$16 sps:$4 sm:$0xff]  }
 0x343   : > { %2646 = vmatprep.subr.bf16.mxu1 %v7162_v57  ;;  %2805 = vmatprep.subr.bf16.mxu0 %v7165_v59  ;;  %v7229_v57 = vld [vmem:[#allocation8 + $0x5c8] ss:$16 sps:$4 sm:$0xff]   ;;  %v7234_v59 = vld [vmem:[#allocation8 + $0x5e4] ss:$16 sps:$4 sm:$0xff]  }
 0x345   : > { %2647 = vmatpush1.bf16.msra.mxu1 %v7160_v60  ;;  %v7237_v60 = vld [vmem:[#allocation8 + $0x5ec] ss:$16 sps:$4 sm:$0xff]  }
 0x346   : > { %2806 = vmatpush1.bf16.msra.mxu0 %v7163_v61  ;;  %2648 = vmatprep.subr.bf16.mxu1 %v7168_v12  ;;  %v6062_v61 = vcombine.high %v1308_v54, %v1308_v54  ;;  %v7232_v12 = vld [vmem:[#allocation8 + $0x5e0] ss:$16 sps:$4 sm:$0xff]  }
 0x347   : > { %2807 = vmatprep.subr.bf16.mxu0 %v7171_v62  ;;  %v7235_v62 = vld [vmem:[#allocation8 + $0x5e8] ss:$16 sps:$4 sm:$0xff]  }
 0x349   : > { %2649 = vmatpush1.bf16.msra.mxu1 %v7166_v63  ;;  %v1338_v63 = vrot.slane %v6062_v61, 1 }
 0x34a   : > { %2808 = vmatpush1.bf16.msra.mxu0 %v7169_v0  ;;  %2650 = vmatprep.subr.bf16.mxu1 %v7174_v1  ;;  %v6061_v0 = vcombine.low %v1308_v54, %v1308_v54 }
 0x34b   : > { %2809 = vmatprep.subr.bf16.mxu0 %v7177_v2  ;;  %v1339_v1 = vsel %vm484_vm10, %v1334_v6, %v1338_v63  ;;  %v7262_v6 = vld [vmem:[#allocation11 + $0x44] ss:$16 sps:$4 sm:$0xff]  }
 0x34c   : > { %v1336_v2 = vrot.slane %v6061_v0, 1 }
 0x34d   : > { %2651 = vmatpush1.bf16.msra.mxu1 %v7172_v4 }
 0x34e   : > { %2810 = vmatpush1.bf16.msra.mxu0 %v7175_v7  ;;  %2652 = vmatprep.subr.bf16.mxu1 %v7180_v8  ;;  %v1337_v4 = vsel %vm484_vm10, %v1331_v3, %v1336_v2  ;;  %v7248_v7 = vld [vmem:[#allocation11] ss:$16 sps:$4 sm:$0xff]   ;;  %v7250_v8 = vld [vmem:[#allocation11 + $0x4] ss:$16 sps:$4 sm:$0xff]  }
 0x34f   : > { %2811 = vmatprep.subr.bf16.mxu0 %v7183_v15  ;;  %v7256_v15 = vld [vmem:[#allocation11 + $0x24] ss:$16 sps:$4 sm:$0xff]  }
 0x350   : > { %v7274_v3 = vld [vmem:[#allocation11 + $0x84] ss:$16 sps:$4 sm:$0xff]  }
 0x351   : > { %2653 = vmatpush1.bf16.msra.mxu1 %v7178_v9  ;;  %v7268_v9 = vld [vmem:[#allocation11 + $0x64] ss:$16 sps:$4 sm:$0xff]  }
 0x352   : > { %2812 = vmatpush1.bf16.msra.mxu0 %v7181_v11  ;;  %2654 = vmatprep.subr.bf16.mxu1 %v7186_v13  ;;  %v7272_v11 = vld [vmem:[#allocation11 + $0x80] ss:$16 sps:$4 sm:$0xff]   ;;  %v7280_v13 = vld [vmem:[#allocation11 + $0xa4] ss:$16 sps:$4 sm:$0xff]  }
 0x353   : > { %2813 = vmatprep.subr.bf16.mxu0 %v7189_v14  ;;  %v7278_v14 = vld [vmem:[#allocation11 + $0xa0] ss:$16 sps:$4 sm:$0xff]  }
 0x355   : > { %2655 = vmatpush1.bf16.msra.mxu1 %v7184_v17  ;;  %v7286_v17 = vld [vmem:[#allocation11 + $0xc4] ss:$16 sps:$4 sm:$0xff]  }
 0x356   : > { %2814 = vmatpush1.bf16.msra.mxu0 %v7187_v19  ;;  %2656 = vmatprep.subr.bf16.mxu1 %v7192_v20  ;;  %v7284_v19 = vld [vmem:[#allocation11 + $0xc0] ss:$16 sps:$4 sm:$0xff]   ;;  %v7292_v20 = vld [vmem:[#allocation11 + $0xe4] ss:$16 sps:$4 sm:$0xff]  }
 0x357   : > { %2815 = vmatprep.subr.bf16.mxu0 %v7195_v23  ;;  %v7290_v23 = vld [vmem:[#allocation11 + $0xe0] ss:$16 sps:$4 sm:$0xff]  }
 0x359   : > { %2657 = vmatpush1.bf16.msra.mxu1 %v7190_v24  ;;  %v7298_v24 = vld [vmem:[#allocation11 + $0x104] ss:$16 sps:$4 sm:$0xff]  }
 0x35a   : > { %2816 = vmatpush1.bf16.msra.mxu0 %v7193_v25  ;;  %2658 = vmatprep.subr.bf16.mxu1 %v7198_v27  ;;  %v7296_v25 = vld [vmem:[#allocation11 + $0x100] ss:$16 sps:$4 sm:$0xff]   ;;  %v7304_v27 = vld [vmem:[#allocation11 + $0x124] ss:$16 sps:$4 sm:$0xff]  }
 0x35b   : > { %2817 = vmatprep.subr.bf16.mxu0 %v7201_v28  ;;  %v7302_v28 = vld [vmem:[#allocation11 + $0x120] ss:$16 sps:$4 sm:$0xff]  }
 0x35d   : > { %2659 = vmatpush1.bf16.msra.mxu1 %v7196_v30  ;;  %v7310_v30 = vld [vmem:[#allocation11 + $0x144] ss:$16 sps:$4 sm:$0xff]  }
 0x35e   : > { %2818 = vmatpush1.bf16.msra.mxu0 %v7199_v31  ;;  %2660 = vmatprep.subr.bf16.mxu1 %v7204_v32  ;;  %v1552_v31 = vld [vmem:[%s8974_s8] ss:$4 sm:$0xf] }
 0x35f   : > { %2819 = vmatprep.subr.bf16.mxu0 %v7207_v33  ;;  %v7308_v32 = vld [vmem:[#allocation11 + $0x140] ss:$16 sps:$4 sm:$0xff]   ;;  %v8346_v33 = vrot.slane %v1552_v31, %v8166_v46 }
 0x361   : > { %2661 = vmatpush1.bf16.msra.mxu1 %v7202_v34  ;;  %v6255_v34 = vld [vmem:[%s8974_s8 + $0x1] ss:$4 sm:$0xf] }
 0x362   : > { %2820 = vmatpush1.bf16.msra.mxu0 %v7205_v35  ;;  %2662 = vmatprep.subr.bf16.mxu1 %v7210_v36  ;;  %v8352_v35 = vrot.slane %v1552_v31, %v8185_v21  ;;  %v8355_v36 = vrot.slane %v1552_v31, %v8171_v49 }
 0x363   : > { %2821 = vmatprep.subr.bf16.mxu0 %v7213_v37  ;;  %v6256_v37 = vld [vmem:[%s8974_s8 + $0x2] ss:$4 sm:$0xf] }
 0x365   : > { %2663 = vmatpush1.bf16.msra.mxu1 %v7208_v38  ;;  %v8361_v38 = vrot.slane %v1552_v31, %v8187_v22 }
 0x366   : > { %2822 = vmatpush1.bf16.msra.mxu0 %v7211_v39  ;;  %2664 = vmatprep.subr.bf16.mxu1 %v7216_v40 }
 0x367   : > { %2823 = vmatprep.subr.bf16.mxu0 %v7219_v41  ;;  %v8365_v41 = vrot.slane %v6255_v34, %v8166_v46 }
 0x369   : > { %2665 = vmatpush1.bf16.msra.mxu1 %v7214_v43 }
 0x36a   : > { %2824 = vmatpush1.bf16.msra.mxu0 %v7217_v44  ;;  %2666 = vmatprep.subr.bf16.mxu1 %v7222_v47  ;;  %v8368_v44 = vrot.slane %v6255_v34, %v8185_v21 }
 0x36b   : > { %2825 = vmatprep.subr.bf16.mxu0 %v7225_v10  ;;  %v8371_v10 = vrot.slane %v6255_v34, %v8171_v49 }
 0x36d   : > { %2667 = vmatpush1.bf16.msra.mxu1 %v7220_v48  ;;  %v8374_v48 = vrot.slane %v6256_v37, %v8166_v46 }
 0x36e   : > { %2826 = vmatpush1.bf16.msra.mxu0 %v7223_v50  ;;  %2668 = vmatprep.subr.bf16.mxu1 %v7228_v51 }
 0x36f   : > { %2827 = vmatprep.subr.bf16.mxu0 %v7231_v53 }
 0x371   : > { %2669 = vmatpush1.bf16.msra.mxu1 %v7226_v18  ;;  %v8379_v18 = vrot.slane %v6255_v34, %v8187_v22 }
 0x372   : > { %2828 = vmatpush1.bf16.msra.mxu0 %v7229_v57  ;;  %2670 = vmatprep.subr.bf16.mxu1 %v7234_v59  ;;  %v8382_v59 = vrot.slane %v6256_v37, %v8185_v21 }
 0x373   : > { %2829 = vmatprep.subr.bf16.mxu0 %v7237_v60 }
 0x375   : > { %2671 = vmatpush1.bf16.msra.mxu1 %v7232_v12 }
 0x376   : > { %2830 = vmatpush1.bf16.msra.mxu0 %v7235_v62 }
 0x377   : > { %4788 = vmatprep.subr.bf16.mxu0 %v7250_v8 }
 0x378   : > { %2673 = vmatmul.mubr.bf16.vlgmr.msra.gmra.mrb[8].mxu1 %v8310_v16 }
 0x379   : > { %2832 = vmatmul.mubr.bf16.vlgmr.msra.gmra.mrb[8].mxu0 %v8310_v16  ;;  %2682 = vmatprep.mubr.bf16.mxu1 %v1339_v1  ;;  %v7260_v16 = vld [vmem:[#allocation11 + $0x40] ss:$16 sps:$4 sm:$0xff]  }
 0x37a   : > { %2841 = vmatprep.mubr.bf16.mxu0 %v1339_v1  ;;  %4789 = vmatpush1.bf16.msra.mxu0 %v7248_v7 }
 0x37b   : > { %4790 = vmatprep.subr.bf16.mxu0 %v7256_v15 }
 0x37e   : > { %4791 = vmatpush1.bf16.msra.mxu0 %v7254_v52 }
 0x37f   : > { %4792 = vmatprep.subr.bf16.mxu0 %v7262_v6 }
 0x380   : > { %2683 = vmatmul.mubr.bf16.gmra.mrb[12].mxu1 %v1337_v4 }
 0x381   : > { %2842 = vmatmul.mubr.bf16.gmra.mrb[12].mxu0 %v1337_v4  ;;  %3038 = vmatprep.mubr.bf16.mxu1 %v7810_v26 }
 0x382   : > { %4793 = vmatpush1.bf16.msra.mxu0 %v7260_v16 }
 0x383   : > { %4794 = vmatprep.subr.bf16.mxu0 %v7268_v9 }
 0x386   : > { %4795 = vmatpush1.bf16.msra.mxu0 %v7266_v56 }
 0x387   : > { %4796 = vmatprep.subr.bf16.mxu0 %v7274_v3  ;;  %v2925_v3 = vrot.slane %v6256_v37, %v8187_v22 }
 0x38a   : > { %4797 = vmatpush1.bf16.msra.mxu0 %v7272_v11 }
 0x38b   : > { %4798 = vmatprep.subr.bf16.mxu0 %v7280_v13 }
 0x38e   : > { %4799 = vmatpush1.bf16.msra.mxu0 %v7278_v14 }
 0x38f   : > { %4800 = vmatprep.subr.bf16.mxu0 %v7286_v17 }
 0x392   : > { %4801 = vmatpush1.bf16.msra.mxu0 %v7284_v19  ;;  %v2917_v19 = vrot.slane %v6256_v37, %v8171_v49 }
 0x393   : > { %4802 = vmatprep.subr.bf16.mxu0 %v7292_v20 }
 0x396   : > { %4803 = vmatpush1.bf16.msra.mxu0 %v7290_v23 }
 0x397   : > { %4804 = vmatprep.subr.bf16.mxu0 %v7298_v24 }
 0x39a   : > { %4805 = vmatpush1.bf16.msra.mxu0 %v7296_v25 }
 0x39b   : > { %4806 = vmatprep.subr.bf16.mxu0 %v7304_v27 }
 0x39e   : > { %4807 = vmatpush1.bf16.msra.mxu0 %v7302_v28 }
 0x39f   : > { %4808 = vmatprep.subr.bf16.mxu0 %v7310_v30 }
 0x3a2   : > { %4809 = vmatpush1.bf16.msra.mxu0 %v7308_v32 }
 0x44b   : > { %v2674_v39 = vpop.f32.mrb[8].mxu1 }
 0x44c   : > { %v6600_v40 = vadd.f32 %v2674_v39, %v8346_v33  ;;  %v2833_v43 = vpop.f32.mrb[8].mxu0  ;;  %v2676_v47 = vpop.f32.mrb[9].mxu1 }
 0x44d   : > { %v6608_v50 = vadd.f32 %v2833_v43, %v8352_v35  ;;  %v6601_v51 = vadd.f32 %v2676_v47, %v8355_v36  ;;  %v2835_v53 = vpop.f32.mrb[9].mxu0  ;;  %v2678_v54 = vpop.f32.mrb[10].mxu1 }
 0x44e   : > { %v2852_v57 = vmax.f32 %v6600_v40, 0.0  ;;  %v6609_v60 = vadd.f32 %v2835_v53, %v8361_v38  ;;  %v6602_v61 = vadd.f32 %v2678_v54, %v8346_v33  ;;  %v2837_v12 = vpop.f32.mrb[10].mxu0  ;;  %v2680_v62 = vpop.f32.mrb[11].mxu1 }
 0x44f   : > { %v2854_v63 = vmax.f32 %v6608_v50, 0.0  ;;  %v2853_v0 = vmax.f32 %v6601_v51, 0.0  ;;  %v6610_v1 = vadd.f32 %v2837_v12, %v8352_v35  ;;  %v6603_v2 = vadd.f32 %v2680_v62, %v8355_v36  ;;  %v2839_v4 = vpop.f32.mrb[11].mxu0 }
 0x450   : > { %v2891_v7 = vmul.f32 %v8365_v41, %v2852_v57  ;;  %v2855_v8 = vmax.f32 %v6609_v60, 0.0  ;;  %v2856_v15 = vmax.f32 %v6602_v61, 0.0  ;;  %v6611_v52 = vadd.f32 %v2839_v4, %v8361_v38 }
 0x451   : > { %v2893_v6 = vmul.f32 %v8368_v44, %v2854_v63  ;;  %v2858_v16 = vmax.f32 %v6610_v1, 0.0  ;;  %v2857_v9 = vmax.f32 %v6603_v2, 0.0  ;;  %v2892_v17 = vmul.f32 %v8371_v10, %v2853_v0 }
 0x452   : > { %v2894_v56 = vmul.f32 %v8379_v18, %v2855_v8  ;;  %v2895_v11 = vmul.f32 %v8365_v41, %v2856_v15  ;;  %v2859_v13 = vmax.f32 %v6611_v52, 0.0  ;;  %v8395_v14 = vadd.f32 %v8374_v48, %v2891_v7 }
 0x453   : > { %v2897_v20 = vmul.f32 %v8368_v44, %v2858_v16  ;;  %v2684_v23 = vpop.f32.mrb[12].mxu1  ;;  %v2932_v24 = vadd.f32 %v8382_v59, %v2893_v6  ;;  %v2896_v34 = vmul.f32 %v8371_v10, %v2857_v9 }
 0x454   : > { %v8402_v25 = vadd.f32 %v8374_v48, %v2895_v11  ;;  %v2898_v27 = vmul.f32 %v8379_v18, %v2859_v13  ;;  %v6604_v28 = vadd.f32 %v2684_v23, %v8346_v33  ;;  %v2843_v30 = vpop.f32.mrb[12].mxu0  ;;  %v2686_v31 = vpop.f32.mrb[13].mxu1  ;;  %v2933_v47 = vadd.f32 %v2925_v3, %v2894_v56 }
 0x455   : > { %v2936_v32 = vadd.f32 %v8382_v59, %v2897_v20  ;;  %v6612_v37 = vadd.f32 %v2843_v30, %v8352_v35  ;;  %v6605_v39 = vadd.f32 %v2686_v31, %v8355_v36  ;;  %v2845_v40 = vpop.f32.mrb[13].mxu0  ;;  %v2688_v43 = vpop.f32.mrb[14].mxu1  ;;  %v2935_v7 = vadd.f32 %v2917_v19, %v2896_v34 }
 0x456   : > { %v2946_v50 = vpack.c.bf16 %v8402_v25, %v8395_v14  ;;  %v2860_v51 = vmax.f32 %v6604_v28, 0.0  ;;  %v6613_v53 = vadd.f32 %v2845_v40, %v8361_v38  ;;  %v2847_v54 = vpop.f32.mrb[14].mxu0  ;;  %v2690_v57 = vpop.f32.mrb[15].mxu1  ;;  %v6606_v62 = vadd.f32 %v2688_v43, %v8346_v33  ;;  %v7259_v40 = vld [vmem:[#allocation11 + $0x2c] ss:$16 sps:$4 sm:$0xff]  }
 0x457   : > { %v2948_v60 = vpack.c.bf16 %v2936_v32, %v2932_v24  ;;  %v2862_v61 = vmax.f32 %v6612_v37, 0.0  ;;  %v2861_v12 = vmax.f32 %v6605_v39, 0.0  ;;  %v2849_v63 = vpop.f32.mrb[15].mxu0  ;;  %v2937_v0 = vadd.f32 %v2925_v3, %v2898_v27  ;;  %v7244_v37 = vld [vmem:[%s8971_s5] sm:$0xff]  }
 0x458   : > { %v2863_v1 = vmax.f32 %v6613_v53, 0.0  ;;  %v6614_v2 = vadd.f32 %v2847_v54, %v8352_v35  ;;  %v6607_v4 = vadd.f32 %v2690_v57, %v8355_v36  ;;  %v2899_v8 = vmul.f32 %v8365_v41, %v2860_v51  ;;  %v7251_v39 = vld [vmem:[#allocation11 + $0x8] ss:$16 sps:$4 sm:$0xff]   ;;  %v7271_v53 = vld [vmem:[#allocation11 + $0x6c] ss:$16 sps:$4 sm:$0xff]  }
 0x459   : > { %v2864_v15 = vmax.f32 %v6606_v62, 0.0  ;;  %v6615_v52 = vadd.f32 %v2849_v63, %v8361_v38  ;;  %v2901_v6 = vmul.f32 %v8368_v44, %v2862_v61  ;;  %v2900_v16 = vmul.f32 %v8371_v10, %v2861_v12  ;;  %v7257_v43 = vld [vmem:[#allocation11 + $0x28] ss:$16 sps:$4 sm:$0xff]   ;;  %v7277_v57 = vld [vmem:[#allocation11 + $0x8c] ss:$16 sps:$4 sm:$0xff]  }
 0x45a   : > { %v2866_v9 = vmax.f32 %v6614_v2, 0.0  ;;  %v2865_v56 = vmax.f32 %v6607_v4, 0.0  ;;  %v2931_v33 = vadd.f32 %v2917_v19, %v2892_v17  ;;  %v2902_v11 = vmul.f32 %v8379_v18, %v2863_v1  ;;  %v7263_v51 = vld [vmem:[#allocation11 + $0x48] ss:$16 sps:$4 sm:$0xff]   ;;  %v7283_v12 = vld [vmem:[#allocation11 + $0xac] ss:$16 sps:$4 sm:$0xff]  }
 0x45b   : > { %v2903_v13 = vmul.f32 %v8365_v41, %v2864_v15  ;;  %v2867_v35 = vmax.f32 %v6615_v52, 0.0  ;;  %v2949_v20 = vpack.c.bf16 %v2937_v0, %v2933_v47  ;;  %v2938_v23 = vadd.f32 %v8374_v48, %v2899_v8  ;;  %v7265_v47 = vld [vmem:[#allocation11 + $0x4c] ss:$16 sps:$4 sm:$0xff]   ;;  %v7269_v54 = vld [vmem:[#allocation11 + $0x68] ss:$16 sps:$4 sm:$0xff]  }
 0x45c   : > { %v2905_v36 = vmul.f32 %v8368_v44, %v2866_v9  ;;  %v2904_v14 = vmul.f32 %v8371_v10, %v2865_v56  ;;  %v2947_v25 = vpack.c.bf16 %v2935_v7, %v2931_v33  ;;  %v2940_v27 = vadd.f32 %v8382_v59, %v2901_v6  ;;  %v7275_v61 = vld [vmem:[#allocation11 + $0x88] ss:$16 sps:$4 sm:$0xff]   ;;  %v7289_v63 = vld [vmem:[#allocation11 + $0xcc] ss:$16 sps:$4 sm:$0xff]   ;;  %v7314_v56 = vld [vmem:[#allocation11 + $0x160] ss:$16 sps:$4 sm:$0xff]  }
 0x45d   : > { %v2942_v38 = vadd.f32 %v8374_v48, %v2903_v13  ;;  %v2906_v24 = vmul.f32 %v8379_v18, %v2867_v35  ;;  %v2939_v17 = vadd.f32 %v2917_v19, %v2900_v16  ;;  %3006 = vmatprep.subr.bf16.mxu1 %v2949_v20  ;;  %v2941_v41 = vadd.f32 %v2925_v3, %v2902_v11  ;;  %v7240_v48 = vld [vmem:[%s8971_s5 + $0x20] sm:$0xff]   ;;  %v7253_v18 = vld [vmem:[#allocation11 + $0xc] ss:$16 sps:$4 sm:$0xff]   ;;  %v7320_v35 = vld [vmem:[#allocation11 + $0x180] ss:$16 sps:$4 sm:$0xff]  }
 0x45e   : > { %v2944_v28 = vadd.f32 %v8382_v59, %v2905_v36  ;;  %v2943_v30 = vadd.f32 %v2917_v19, %v2904_v14  ;;  %3007 = vmatpush1.bf16.msra.mxu1 %v2948_v60  ;;  %v7241_v59 = vld [vmem:[%s8971_s5 + $0x28] sm:$0xff]   ;;  %v7243_v19 = vld [vmem:[%s8971_s5 + $0x38] sm:$0xff]   ;;  %v7246_v60 = vld [vmem:[%s8971_s5 + $0x10] sm:$0xff]  }
 0x45f   : > { %v2950_v31 = vpack.c.bf16 %v2942_v38, %v2938_v23  ;;  %v2945_v44 = vadd.f32 %v2925_v3, %v2906_v24  ;;  %v7242_v3 = vld [vmem:[%s8971_s5 + $0x30] sm:$0xff]   ;;  %v7247_v0 = vld [vmem:[%s8971_s5 + $0x18] sm:$0xff]  }
 0x460   : > { %v2952_v10 = vpack.c.bf16 %v2944_v28, %v2940_v27  ;;  %v2951_v32 = vpack.c.bf16 %v2943_v30, %v2939_v17  ;;  %v7281_v62 = vld [vmem:[#allocation11 + $0xa8] ss:$16 sps:$4 sm:$0xff]   ;;  %v7295_v2 = vld [vmem:[#allocation11 + $0xec] ss:$16 sps:$4 sm:$0xff]   ;;  %v7316_v16 = vld [vmem:[#allocation11 + $0x164] ss:$16 sps:$4 sm:$0xff]  }
 0x461   : > { %v2953_v34 = vpack.c.bf16 %v2945_v44, %v2941_v41  ;;  %v7287_v1 = vld [vmem:[#allocation11 + $0xc8] ss:$16 sps:$4 sm:$0xff]   ;;  %v7301_v7 = vld [vmem:[#allocation11 + $0x10c] ss:$16 sps:$4 sm:$0xff]   ;;  %4810 = vmatprep.subr.bf16.mxu0 %v7316_v16  ;;  %v7322_v11 = vld [vmem:[#allocation11 + $0x184] ss:$16 sps:$4 sm:$0xff]  }
 0x462   : > { %v7293_v4 = vld [vmem:[#allocation11 + $0xe8] ss:$16 sps:$4 sm:$0xff]   ;;  %v7307_v8 = vld [vmem:[#allocation11 + $0x12c] ss:$16 sps:$4 sm:$0xff]   ;;  %4811 = vmatpush1.bf16.msra.mxu0 %v7314_v56  ;;  %v7328_v14 = vld [vmem:[#allocation11 + $0x1a4] ss:$16 sps:$4 sm:$0xff]  }
 0x463   : > { %3008 = vmatprep.subr.bf16.mxu1 %v2953_v34  ;;  %v7305_v15 = vld [vmem:[#allocation11 + $0x128] ss:$16 sps:$4 sm:$0xff]   ;;  %v7313_v52 = vld [vmem:[#allocation11 + $0x14c] ss:$16 sps:$4 sm:$0xff]   ;;  %4812 = vmatprep.subr.bf16.mxu0 %v7322_v11  ;;  %v7326_v23 = vld [vmem:[#allocation11 + $0x1a0] ss:$16 sps:$4 sm:$0xff]  }
 0x464   : > { %3009 = vmatpush1.bf16.msra.mxu1 %v2952_v10  ;;  %v7311_v6 = vld [vmem:[#allocation11 + $0x148] ss:$16 sps:$4 sm:$0xff]   ;;  %v7319_v9 = vld [vmem:[#allocation11 + $0x16c] ss:$16 sps:$4 sm:$0xff]   ;;  %v7334_v24 = vld [vmem:[#allocation11 + $0x1c4] ss:$16 sps:$4 sm:$0xff]  }
 0x465   : > { %3111 = vmatprep.subr.bf16.mxu1 %v2947_v25  ;;  %v7317_v33 = vld [vmem:[#allocation11 + $0x168] ss:$16 sps:$4 sm:$0xff]   ;;  %v7325_v13 = vld [vmem:[#allocation11 + $0x18c] ss:$16 sps:$4 sm:$0xff]   ;;  %v7332_v27 = vld [vmem:[#allocation11 + $0x1c0] ss:$16 sps:$4 sm:$0xff]  }
 0x466   : > { %v7323_v36 = vld [vmem:[#allocation11 + $0x188] ss:$16 sps:$4 sm:$0xff]   ;;  %4813 = vmatpush1.bf16.msra.mxu0 %v7320_v35  ;;  %v7331_v20 = vld [vmem:[#allocation11 + $0x1ac] ss:$16 sps:$4 sm:$0xff]   ;;  %v7340_v28 = vld [vmem:[#allocation11 + $0x1e4] ss:$16 sps:$4 sm:$0xff]  }
 0x467   : > { %6261 = vmatmul.mubr.msk.bf16.vlgmr.msra.gmra.mrb[16].mxu1 %vm2993_vm5, %v7240_v48  ;;  %v7329_v38 = vld [vmem:[#allocation11 + $0x1a8] ss:$16 sps:$4 sm:$0xff]   ;;  %4814 = vmatprep.subr.bf16.mxu0 %v7328_v14  ;;  %v7337_v25 = vld [vmem:[#allocation11 + $0x1cc] ss:$16 sps:$4 sm:$0xff]   ;;  %v7338_v41 = vld [vmem:[#allocation11 + $0x1e0] ss:$16 sps:$4 sm:$0xff]  }
 0x468   : > { %3112 = vmatpush1.bf16.msra.mxu1 %v2946_v50  ;;  %3048 = vmatprep.mubr.bf16.mxu1 %v7810_v26  ;;  %v7245_v50 = vld [vmem:[%s8971_s5 + $0x8] sm:$0xff]   ;;  %v7335_v17 = vld [vmem:[#allocation11 + $0x1c8] ss:$16 sps:$4 sm:$0xff]   ;;  %v7346_v44 = vld [vmem:[#allocation11 + $0x204] ss:$16 sps:$4 sm:$0xff]  }
 0x469   : > { %3113 = vmatprep.subr.bf16.mxu1 %v2951_v32  ;;  %v7343_v30 = vld [vmem:[#allocation11 + $0x1ec] ss:$16 sps:$4 sm:$0xff]   ;;  %v7350_v16 = vld [vmem:[#allocation11 + $0x220] ss:$16 sps:$4 sm:$0xff]   ;;  %v7353_v35 = vld [vmem:[#allocation11 + $0x228] ss:$16 sps:$4 sm:$0xff]  }
 0x46a   : > { %4815 = vmatpush1.bf16.msra.mxu0 %v7326_v23  ;;  %v7349_v10 = vld [vmem:[#allocation11 + $0x20c] ss:$16 sps:$4 sm:$0xff]   ;;  %v7358_v14 = vld [vmem:[#allocation11 + $0x244] ss:$16 sps:$4 sm:$0xff]  }
 0x46b   : > { %4816 = vmatprep.subr.bf16.mxu0 %v7334_v24 }
 0x46c   : > { %3114 = vmatpush1.bf16.msra.mxu1 %v2950_v31  ;;  %v7341_v31 = vld [vmem:[#allocation11 + $0x1e8] ss:$16 sps:$4 sm:$0xff]  }
 0x46d   : > { %5007 = vmatprep.subr.bf16.mxu1 %v7253_v18 }
 0x46e   : > { %4817 = vmatpush1.bf16.msra.mxu0 %v7332_v27 }
 0x46f   : > { %6262 = vmatmul.mubr.msk.bf16.gmra.mrb[20].mxu1 %vm2993_vm5, %v7241_v59  ;;  %4818 = vmatprep.subr.bf16.mxu0 %v7340_v28  ;;  %v7361_v28 = vld [vmem:[#allocation11 + $0x24c] ss:$16 sps:$4 sm:$0xff]  }
 0x470   : > { %3058 = vmatprep.mubr.bf16.mxu1 %v7810_v26 }
 0x472   : > { %4819 = vmatpush1.bf16.msra.mxu0 %v7338_v41 }
 0x473   : > { %4861 = vmatprep.subr.bf16.mxu0 %v7346_v44 }
 0x477   : > { %6263 = vmatmul.mubr.msk.bf16.gmra.mrb[24].mxu1 %vm2993_vm5, %v7242_v3 }
 0x478   : > { %3068 = vmatprep.mubr.bf16.mxu1 %v7810_v26 }
 0x47f   : > { %6264 = vmatmul.mubr.msk.bf16.gmra.mrb[28].mxu1 %vm2993_vm5, %v7243_v19 }
 0x480   : > { %3143 = vmatprep.mubr.bf16.mxu1 %v7810_v26 }
 0x487   : > { %6269 = vmatmul.mubr.msk.bf16.vlgmr.msra.gmra.mrb[16].mxu1 %vm2993_vm5, %v7244_v37 }
 0x488   : > { %3153 = vmatprep.mubr.bf16.mxu1 %v7810_v26  ;;  %5008 = vmatpush1.bf16.msra.mxu1 %v7251_v39 }
 0x489   : > { %5009 = vmatprep.subr.bf16.mxu1 %v7259_v40 }
 0x48c   : > { %5010 = vmatpush1.bf16.msra.mxu1 %v7257_v43  ;;  %v3304_v43 = vld [vmem:[#allocation4] sm:$0xff] }
 0x48d   : > { %5011 = vmatprep.subr.bf16.mxu1 %v7265_v47 }
 0x48f   : > { %6270 = vmatmul.mubr.msk.bf16.gmra.mrb[20].mxu1 %vm2993_vm5, %v7245_v50 }
 0x490   : > { %3163 = vmatprep.mubr.bf16.mxu1 %v7810_v26  ;;  %5012 = vmatpush1.bf16.msra.mxu1 %v7263_v51 }
 0x491   : > { %5013 = vmatprep.subr.bf16.mxu1 %v7271_v53 }
 0x494   : > { %5014 = vmatpush1.bf16.msra.mxu1 %v7269_v54 }
 0x495   : > { %5015 = vmatprep.subr.bf16.mxu1 %v7277_v57 }
 0x497   : > { %6271 = vmatmul.mubr.msk.bf16.gmra.mrb[24].mxu1 %vm2993_vm5, %v7246_v60 }
 0x498   : > { %3173 = vmatprep.mubr.bf16.mxu1 %v7810_v26  ;;  %5016 = vmatpush1.bf16.msra.mxu1 %v7275_v61  ;;  %v7299_v26 = vld [vmem:[#allocation11 + $0x108] ss:$16 sps:$4 sm:$0xff]  }
 0x499   : > { %5017 = vmatprep.subr.bf16.mxu1 %v7283_v12 }
 0x49c   : > { %5018 = vmatpush1.bf16.msra.mxu1 %v7281_v62 }
 0x49d   : > { %5019 = vmatprep.subr.bf16.mxu1 %v7289_v63 }
 0x49f   : > { %6272 = vmatmul.mubr.msk.bf16.gmra.mrb[28].mxu1 %vm2993_vm5, %v7247_v0 }
 0x4a0   : > { %5020 = vmatpush1.bf16.msra.mxu1 %v7287_v1 }
 0x4a1   : > { %5021 = vmatprep.subr.bf16.mxu1 %v7295_v2 }
 0x4a4   : > { %5022 = vmatpush1.bf16.msra.mxu1 %v7293_v4 }
 0x4a5   : > { %5023 = vmatprep.subr.bf16.mxu1 %v7301_v7 }
 0x4a8   : > { %5024 = vmatpush1.bf16.msra.mxu1 %v7299_v26  ;;  %v7347_v26 = vld [vmem:[#allocation11 + $0x208] ss:$16 sps:$4 sm:$0xff]  }
 0x4a9   : > { %5025 = vmatprep.subr.bf16.mxu1 %v7307_v8 }
 0x4ac   : > { %5026 = vmatpush1.bf16.msra.mxu1 %v7305_v15 }
 0x4ad   : > { %5027 = vmatprep.subr.bf16.mxu1 %v7313_v52 }
 0x4b0   : > { %5028 = vmatpush1.bf16.msra.mxu1 %v7311_v6  ;;  %v7355_v6 = vld [vmem:[#allocation11 + $0x22c] ss:$16 sps:$4 sm:$0xff]  }
 0x4b1   : > { %5029 = vmatprep.subr.bf16.mxu1 %v7319_v9 }
 0x4b4   : > { %5030 = vmatpush1.bf16.msra.mxu1 %v7317_v33 }
 0x4b5   : > { %5031 = vmatprep.subr.bf16.mxu1 %v7325_v13 }
 0x4b8   : > { %5032 = vmatpush1.bf16.msra.mxu1 %v7323_v36 }
 0x4b9   : > { %5033 = vmatprep.subr.bf16.mxu1 %v7331_v20 }
 0x4bc   : > { %5034 = vmatpush1.bf16.msra.mxu1 %v7329_v38 }
 0x4bd   : > { %5035 = vmatprep.subr.bf16.mxu1 %v7337_v25 }
 0x4c0   : > { %5036 = vmatpush1.bf16.msra.mxu1 %v7335_v17 }
 0x4c1   : > { %5037 = vmatprep.subr.bf16.mxu1 %v7343_v30 }
 0x4c4   : > { %5038 = vmatpush1.bf16.msra.mxu1 %v7341_v31 }
 0x4c5   : > { %5080 = vmatprep.subr.bf16.mxu1 %v7349_v10  ;;  %v7356_v10 = vld [vmem:[#allocation11 + $0x240] ss:$16 sps:$4 sm:$0xff]  }
 0x55a   : > { %v3145_v32 = vpop.f32.mrb[16].mxu1 }
 0x55b   : > { %v3147_v34 = vpop.f32.mrb[17].mxu1 }
 0x55c   : > { %v6559_v48 = vpack.c.bf16 %v3147_v34, %v3145_v32  ;;  %v3149_v18 = vpop.f32.mrb[18].mxu1  ;;  %v7359_v34 = vld [vmem:[#allocation11 + $0x248] ss:$16 sps:$4 sm:$0xff]  }
 0x55d   : > { %v3151_v59 = vpop.f32.mrb[19].mxu1 }
 0x55e   : > { %v3225_v3 = vshrl.u32 %v6559_v48, 16  ;;  %v6560_v19 = vpack.c.bf16 %v3151_v59, %v3149_v18  ;;  %v3228_v39 = vshll.u32 %v6559_v48, 16  ;;  %v7364_v18 = vld [vmem:[#allocation11 + $0x264] ss:$16 sps:$4 sm:$0xff]  }
 0x560   : > { %v3227_v37 = vrot.slane %v3225_v3, 7  ;;  %v3233_v40 = vshrl.u32 %v6560_v19, 16  ;;  %v3236_v51 = vshll.u32 %v6560_v19, 16 }
 0x562   : > { %v3230_v47 = vor.u32 %v3228_v39, %v3227_v37  ;;  %v3235_v50 = vrot.slane %v3233_v40, 7  ;;  %v3155_v53 = vpop.f32.mrb[20].mxu1  ;;  %v3231_v57 = vrot.slane %v3227_v37, 4  ;;  %v7367_v40 = vld [vmem:[#allocation11 + $0x26c] ss:$16 sps:$4 sm:$0xff]  }
 0x563   : > { %v3157_v54 = vpop.f32.mrb[21].mxu1 }
 0x564   : > { %v3305_v60 = vsel %vm1186_vm2, %v3230_v47, %v3304_v43  ;;  %v3238_v61 = vor.u32 %v3236_v51, %v3235_v50  ;;  %v6561_v12 = vpack.c.bf16 %v3157_v54, %v3155_v53  ;;  %v3159_v62 = vpop.f32.mrb[22].mxu1  ;;  %v3240_v9 = vrot.slane %v3235_v50, 4 }
 0x565   : > { %3306 = vst [vmem:[#allocation4] sm:$0xff] %v3305_v60  ;;  %v3161_v63 = vpop.f32.mrb[23].mxu1 }
 0x566   : > { %v3239_v0 = vsel %vm8004_vm4, %v3231_v57, %v3238_v61  ;;  %v3242_v1 = vshrl.u32 %v6561_v12, 16  ;;  %v6562_v2 = vpack.c.bf16 %v3161_v63, %v3159_v62  ;;  %v3245_v15 = vshll.u32 %v6561_v12, 16  ;;  %v7362_v12 = vld [vmem:[#allocation11 + $0x260] ss:$16 sps:$4 sm:$0xff]   ;;  %v7365_v63 = vld [vmem:[#allocation11 + $0x268] ss:$16 sps:$4 sm:$0xff]  }
 0x567   : > { %3307 = vst [vmem:[#allocation4 + $0x8] sm:$0xff] %v3239_v0  ;;  %v8475_v4 = vcombine.low %v3305_v60, %v3239_v0  ;;  %v8477_v7 = vcombine.high %v3305_v60, %v3239_v0 }
 0x568   : > { %v3244_v8 = vrot.slane %v3242_v1, 7  ;;  %v3251_v52 = vshrl.u32 %v6562_v2, 16  ;;  %v3254_v11 = vshll.u32 %v6562_v2, 16 }
 0x569   : > { %4820 = vmatprep.mubr.bf16.mxu0 %v8477_v7  ;;  %5039 = vmatprep.mubr.bf16.mxu1 %v8477_v7  ;;  %v3437_v20 = vshll.u32 %v8477_v7, 16  ;;  %v3425_v23 = vshll.u32 %v8475_v4, 16  ;;  %v3435_v43 = vshrl.u32 %v8477_v7, 16  ;;  %v3423_v50 = vshrl.u32 %v8475_v4, 16 }
 0x56a   : > { %v3247_v56 = vor.u32 %v3245_v15, %v3244_v8  ;;  %v8481_v33 = vrot.slane %v3251_v52, 7  ;;  %v3165_v13 = vpop.f32.mrb[24].mxu1  ;;  %4821 = vmatmul.mubr.bf16.vlgmr.msra.gmra.mrb[16].mxu0 %v8475_v4  ;;  %5040 = vmatmul.mubr.bf16.vlgmr.msra.gmra.mrb[32].mxu1 %v8475_v4  ;;  %v3249_v24 = vrot.slane %v3244_v8, 4  ;;  %v7370_v15 = vld [vmem:[#allocation11 + $0x284] ss:$16 sps:$4 sm:$0xff]  }
 0x56b   : > { %v3167_v36 = vpop.f32.mrb[25].mxu1  ;;  %4862 = vmatpush1.bf16.msra.mxu0 %v7344_v58  ;;  %5081 = vmatpush1.bf16.msra.mxu1 %v7347_v26  ;;  %v3439_v59 = vrot.slane %v3437_v20, 1  ;;  %v3427_v3 = vrot.slane %v3425_v23, 1  ;;  %v7373_v52 = vld [vmem:[#allocation11 + $0x28c] ss:$16 sps:$4 sm:$0xff]  }
 0x56c   : > { %v3248_v38 = vsel %vm8004_vm4, %v3240_v9, %v3247_v56  ;;  %v3256_v25 = vor.u32 %v3254_v11, %v8481_v33  ;;  %v6563_v27 = vpack.c.bf16 %v3167_v36, %v3165_v13  ;;  %v3169_v17 = vpop.f32.mrb[26].mxu1  ;;  %4863 = vmatprep.subr.bf16.mxu0 %v7352_v55  ;;  %5082 = vmatprep.subr.bf16.mxu1 %v7355_v6  ;;  %v3258_v53 = vrot.slane %v8481_v33, 4  ;;  %v7371_v36 = vld [vmem:[#allocation11 + $0x288] ss:$16 sps:$4 sm:$0xff]   ;;  %v7376_v20 = vld [vmem:[#allocation11 + $0x2a4] ss:$16 sps:$4 sm:$0xff]  }
 0x56d   : > { %v3171_v30 = vpop.f32.mrb[27].mxu1  ;;  %v3440_v0 = vor.u32 %v3439_v59, %v3435_v43  ;;  %v3428_v2 = vor.u32 %v3427_v3, %v3423_v50  ;;  %v7377_v59 = vld [vmem:[#allocation11 + $0x2a8] ss:$16 sps:$4 sm:$0xff]   ;;  %v7382_v3 = vld [vmem:[#allocation11 + $0x2c4] ss:$16 sps:$4 sm:$0xff]  }
 0x56e   : > { %v3257_v41 = vsel %vm8004_vm4, %v3249_v24, %v3256_v25  ;;  %v3260_v31 = vshrl.u32 %v6563_v27, 16  ;;  %v6564_v44 = vpack.c.bf16 %v3171_v30, %v3169_v17  ;;  %v3263_v37 = vshll.u32 %v6563_v27, 16  ;;  %v7379_v25 = vld [vmem:[#allocation11 + $0x2ac] ss:$16 sps:$4 sm:$0xff]  }
 0x56f   : > { %4864 = vmatpush1.bf16.msra.mxu0 %v7350_v16  ;;  %5083 = vmatpush1.bf16.msra.mxu1 %v7353_v35  ;;  %v8492_v32 = vcombine.high %v3248_v38, %v3257_v41  ;;  %v8494_v48 = vcombine.low %v3248_v38, %v3257_v41  ;;  %v7368_v35 = vld [vmem:[#allocation11 + $0x280] ss:$16 sps:$4 sm:$0xff]   ;;  %v3314_v27 = vld [vmem:[#allocation4 + $0x40] sm:$0x11] }
 0x570   : > { %v3262_v19 = vrot.slane %v3260_v31, 7  ;;  %v3269_v39 = vshrl.u32 %v6564_v44, 16  ;;  %4865 = vmatprep.subr.bf16.mxu0 %v7358_v14  ;;  %5084 = vmatprep.subr.bf16.mxu1 %v7361_v28  ;;  %v3272_v60 = vshll.u32 %v6564_v44, 16 }
 0x571   : > { %4830 = vmatprep.mubr.bf16.mxu0 %v8492_v32  ;;  %5049 = vmatprep.mubr.bf16.mxu1 %v8492_v32  ;;  %v3442_v47 = vshll.u32 %v8492_v32, 16  ;;  %v3430_v51 = vshll.u32 %v8494_v48, 16  ;;  %v3454_v17 = vshrl.u32 %v8492_v32, 16  ;;  %v3446_v30 = vshrl.u32 %v8494_v48, 16 }
 0x572   : > { %v3265_v54 = vor.u32 %v3263_v37, %v3262_v19  ;;  %v8503_v57 = vrot.slane %v3269_v39, 7  ;;  %v3175_v61 = vpop.f32.mrb[28].mxu1  ;;  %4831 = vmatmul.mubr.bf16.gmra.mrb[20].mxu0 %v8494_v48  ;;  %5050 = vmatmul.mubr.bf16.gmra.mrb[36].mxu1 %v8494_v48  ;;  %v3267_v58 = vrot.slane %v3262_v19, 4 }
 0x573   : > { %v3177_v62 = vpop.f32.mrb[29].mxu1  ;;  %4866 = vmatpush1.bf16.msra.mxu0 %v7356_v10  ;;  %5085 = vmatpush1.bf16.msra.mxu1 %v7359_v34  ;;  %v3444_v1 = vrot.slane %v3442_v47, 1  ;;  %v3432_v4 = vrot.slane %v3430_v51, 1 }
 0x574   : > { %v3266_v7 = vsel %vm8004_vm4, %v3258_v53, %v3265_v54  ;;  %v3274_v26 = vor.u32 %v3272_v60, %v8503_v57  ;;  %v6565_v55 = vpack.c.bf16 %v3177_v62, %v3175_v61  ;;  %v3179_v8 = vpop.f32.mrb[30].mxu1  ;;  %4867 = vmatprep.subr.bf16.mxu0 %v7364_v18  ;;  %5086 = vmatprep.subr.bf16.mxu1 %v7367_v40  ;;  %v3276_v31 = vrot.slane %v8503_v57, 4  ;;  %v7374_v18 = vld [vmem:[#allocation11 + $0x2a0] ss:$16 sps:$4 sm:$0xff]   ;;  %v7385_v53 = vld [vmem:[#allocation11 + $0x2cc] ss:$16 sps:$4 sm:$0xff]  }
 0x575   : > { %3310 = vst [vmem:[#allocation4 + $0x20] sm:$0xff] %v3266_v7  ;;  %v3181_v6 = vpop.f32.mrb[31].mxu1  ;;  %v8511_v16 = vsel %vm455_vm11, %v3440_v0, %v3444_v1  ;;  %v8514_v9 = vsel %vm455_vm11, %v3428_v2, %v3432_v4  ;;  %v3456_v19 = vor.u32 %v3454_v17, %v3444_v1  ;;  %v3448_v39 = vor.u32 %v3446_v30, %v3432_v4  ;;  %v7380_v62 = vld [vmem:[#allocation11 + $0x2c0] ss:$16 sps:$4 sm:$0xff]   ;;  %v7388_v1 = vld [vmem:[#allocation11 + $0x2e4] ss:$16 sps:$4 sm:$0xff]  }
 0x576   : > { %v3275_v56 = vsel %vm8004_vm4, %v3267_v58, %v3274_v26  ;;  %v3278_v33 = vshrl.u32 %v6565_v55, 16  ;;  %v6566_v11 = vpack.c.bf16 %v3181_v6, %v3179_v8  ;;  %v3281_v38 = vshll.u32 %v6565_v55, 16  ;;  %v7386_v58 = vld [vmem:[#allocation11 + $0x2e0] ss:$16 sps:$4 sm:$0xff]   ;;  %v7389_v26 = vld [vmem:[#allocation11 + $0x2e8] ss:$16 sps:$4 sm:$0xff]  }
 0x577   : > { %3311 = vst [vmem:[#allocation4 + $0x28] sm:$0xff] %v3275_v56  ;;  %4868 = vmatpush1.bf16.msra.mxu0 %v7362_v12  ;;  %5087 = vmatpush1.bf16.msra.mxu1 %v7365_v63  ;;  %v8518_v13 = vcombine.high %v3266_v7, %v3275_v56  ;;  %v8520_v14 = vcombine.low %v3266_v7, %v3275_v56  ;;  %v7383_v63 = vld [vmem:[#allocation11 + $0x2c8] ss:$16 sps:$4 sm:$0xff]   ;;  %v7394_v6 = vld [vmem:[#allocation11 + $0x304] ss:$16 sps:$4 sm:$0xff]  }
 0x578   : > { %v3280_v23 = vrot.slane %v3278_v33, 7  ;;  %v3287_v24 = vshrl.u32 %v6566_v11, 16  ;;  %4869 = vmatprep.subr.bf16.mxu0 %v7370_v15  ;;  %5088 = vmatprep.subr.bf16.mxu1 %v7373_v52  ;;  %v3290_v34 = vshll.u32 %v6566_v11, 16  ;;  %v7397_v56 = vld [vmem:[#allocation11 + $0x30c] ss:$16 sps:$4 sm:$0xff]  }
 0x579   : > { %4840 = vmatprep.mubr.bf16.mxu0 %v8518_v13  ;;  %5059 = vmatprep.mubr.bf16.mxu1 %v8518_v13  ;;  %v3458_v28 = vshll.u32 %v8518_v13, 16  ;;  %v3450_v41 = vshll.u32 %v8520_v14, 16  ;;  %v3470_v29 = vshrl.u32 %v8518_v13, 16  ;;  %v3462_v4 = vshrl.u32 %v8520_v14, 16  ;;  %v7415_v17 = vld [vmem:[#allocation11 + $0x36c] ss:$16 sps:$4 sm:$0xff]  }
 0x57a   : > { %v3283_v44 = vor.u32 %v3281_v38, %v3280_v23  ;;  %v3289_v10 = vrot.slane %v3287_v24, 7  ;;  %4841 = vmatmul.mubr.bf16.gmra.mrb[24].mxu0 %v8520_v14  ;;  %5060 = vmatmul.mubr.bf16.gmra.mrb[40].mxu1 %v8520_v14  ;;  %v3285_v47 = vrot.slane %v3280_v23, 4  ;;  %v7400_v14 = vld [vmem:[#allocation11 + $0x324] ss:$16 sps:$4 sm:$0xff]   ;;  %v7398_v23 = vld [vmem:[#allocation11 + $0x320] ss:$16 sps:$4 sm:$0xff]  }
 0x57b   : > { %4870 = vmatpush1.bf16.msra.mxu0 %v7368_v35  ;;  %5089 = vmatpush1.bf16.msra.mxu1 %v7371_v36  ;;  %v3460_v37 = vrot.slane %v3458_v28, 1  ;;  %v3452_v40 = vrot.slane %v3450_v41, 1  ;;  %v7395_v36 = vld [vmem:[#allocation11 + $0x308] ss:$16 sps:$4 sm:$0xff]   ;;  %v7409_v24 = vld [vmem:[#allocation11 + $0x34c] ss:$16 sps:$4 sm:$0xff]  }
 0x57c   : > { %v3284_v43 = vsel %vm8004_vm4, %v3276_v31, %v3283_v44  ;;  %v3292_v50 = vor.u32 %v3290_v34, %v3289_v10  ;;  %v3294_v51 = vrot.slane %v3289_v10, 4  ;;  %4871 = vmatprep.subr.bf16.mxu0 %v7376_v20  ;;  %5090 = vmatprep.subr.bf16.mxu1 %v7379_v25  ;;  %v7403_v20 = vld [vmem:[#allocation11 + $0x32c] ss:$16 sps:$4 sm:$0xff]   ;;  %v7401_v38 = vld [vmem:[#allocation11 + $0x328] ss:$16 sps:$4 sm:$0xff]  }
 0x57d   : > { %3312 = vst [vmem:[#allocation4 + $0x30] sm:$0xff] %v3284_v43  ;;  %v8534_v54 = vsel %vm455_vm11, %v3456_v19, %v3460_v37  ;;  %v8537_v57 = vsel %vm455_vm11, %v3448_v39, %v3452_v40  ;;  %v3472_v55 = vor.u32 %v3470_v29, %v3460_v37  ;;  %v3464_v15 = vor.u32 %v3462_v4, %v3452_v40  ;;  %v7407_v25 = vld [vmem:[#allocation11 + $0x348] ss:$16 sps:$4 sm:$0xff]   ;;  %v7410_v28 = vld [vmem:[#allocation11 + $0x360] ss:$16 sps:$4 sm:$0xff]  }
 0x57e   : > { %v3293_v60 = vsel %vm8004_vm4, %v3285_v47, %v3292_v50  ;;  %v3315_v61 = vsel %vm8217_vm6, %v3294_v51, %v3314_v27  ;;  %v7412_v27 = vld [vmem:[#allocation11 + $0x364] ss:$16 sps:$4 sm:$0xff]   ;;  %v7413_v30 = vld [vmem:[#allocation11 + $0x368] ss:$16 sps:$4 sm:$0xff]   ;;  %v7421_v31 = vld [vmem:[#allocation11 + $0x38c] ss:$16 sps:$4 sm:$0xff]  }
 0x57f   : > { %3313 = vst [vmem:[#allocation4 + $0x38] sm:$0xff] %v3293_v60  ;;  %3316 = vst [vmem:[#allocation4 + $0x40] sm:$0x11] %v3315_v61  ;;  %4872 = vmatpush1.bf16.msra.mxu0 %v7374_v18  ;;  %5091 = vmatpush1.bf16.msra.mxu1 %v7377_v59  ;;  %v8543_v12 = vcombine.high %v3284_v43, %v3293_v60  ;;  %v8545_v0 = vcombine.low %v3284_v43, %v3293_v60  ;;  %v7418_v41 = vld [vmem:[#allocation11 + $0x384] ss:$16 sps:$4 sm:$0xff]  }
 0x580   : > { %4873 = vmatprep.subr.bf16.mxu0 %v7382_v3  ;;  %5092 = vmatprep.subr.bf16.mxu1 %v7385_v53  ;;  %v7416_v44 = vld [vmem:[#allocation11 + $0x380] ss:$16 sps:$4 sm:$0xff]   ;;  %v7419_v10 = vld [vmem:[#allocation11 + $0x388] ss:$16 sps:$4 sm:$0xff]   ;;  %v7424_v34 = vld [vmem:[#allocation11 + $0x3a4] ss:$16 sps:$4 sm:$0xff]  }
 0x581   : > { %4850 = vmatprep.mubr.bf16.mxu0 %v8543_v12  ;;  %5069 = vmatprep.mubr.bf16.mxu1 %v8543_v12  ;;  %v3474_v2 = vshll.u32 %v8543_v12, 16  ;;  %v3466_v7 = vshll.u32 %v8545_v0, 16  ;;  %v7427_v18 = vld [vmem:[#allocation11 + $0x3ac] ss:$16 sps:$4 sm:$0xff]   ;;  %v7422_v59 = vld [vmem:[#allocation11 + $0x3a0] ss:$16 sps:$4 sm:$0xff]  }
 0x582   : > { %4851 = vmatmul.mubr.bf16.gmra.mrb[28].mxu0 %v8545_v0  ;;  %5070 = vmatmul.mubr.bf16.gmra.mrb[44].mxu1 %v8545_v0  ;;  %v7425_v3 = vld [vmem:[#allocation11 + $0x3a8] ss:$16 sps:$4 sm:$0xff]   ;;  %v7430_v19 = vld [vmem:[#allocation11 + $0x3c4] ss:$16 sps:$4 sm:$0xff]   ;;  %v7433_v37 = vld [vmem:[#allocation11 + $0x3cc] ss:$16 sps:$4 sm:$0xff]  }
 0x583   : > { %4874 = vmatpush1.bf16.msra.mxu0 %v7380_v62  ;;  %5093 = vmatpush1.bf16.msra.mxu1 %v7383_v63  ;;  %v8555_v8 = vrot.slane %v3474_v2, 1  ;;  %v8557_v52 = vrot.slane %v3466_v7, 1  ;;  %v7428_v39 = vld [vmem:[#allocation11 + $0x3c0] ss:$16 sps:$4 sm:$0xff]   ;;  %v7431_v40 = vld [vmem:[#allocation11 + $0x3c8] ss:$16 sps:$4 sm:$0xff]  }
 0x584   : > { %4893 = vmatprep.mubr.bf16.mxu0 %v8511_v16  ;;  %5112 = vmatprep.mubr.bf16.mxu1 %v8511_v16  ;;  %v7392_v16 = vld [vmem:[#allocation11 + $0x300] ss:$16 sps:$4 sm:$0xff]   ;;  %v7436_v43 = vld [vmem:[#allocation11 + $0x3e4] ss:$16 sps:$4 sm:$0xff]   ;;  %v7439_v47 = vld [vmem:[#allocation11 + $0x3ec] ss:$16 sps:$4 sm:$0xff]  }
 0x585   : > { %4875 = vmatprep.subr.bf16.mxu0 %v7388_v1  ;;  %5094 = vmatprep.subr.bf16.mxu1 %v7391_v5  ;;  %v8563_v33 = vsel %vm455_vm11, %v3472_v55, %v8555_v8  ;;  %v8567_v11 = vsel %vm455_vm11, %v3464_v15, %v8557_v52  ;;  %v7434_v50 = vld [vmem:[#allocation11 + $0x3e0] ss:$16 sps:$4 sm:$0xff]   ;;  %v7437_v51 = vld [vmem:[#allocation11 + $0x3e8] ss:$16 sps:$4 sm:$0xff]   ;;  %v7442_v53 = vld [vmem:[#allocation11 + $0x404] ss:$16 sps:$4 sm:$0xff]  }
 0x586   : > { %v3317_v13 = vld [vmem:[#allocation4 + $0x40] sm:$0x11]  ;;  %v7440_v61 = vld [vmem:[#allocation11 + $0x400] ss:$16 sps:$4 sm:$0xff]   ;;  %v7448_v63 = vld [vmem:[#allocation11 + $0x424] ss:$16 sps:$4 sm:$0xff]  }
 0x587   : > { %v3318_v35 = vsel %vm1198_vm12, 0, %v3317_v13  ;;  %4876 = vmatpush1.bf16.msra.mxu0 %v7386_v58  ;;  %5095 = vmatpush1.bf16.msra.mxu1 %v7389_v26  ;;  %v7445_v60 = vld [vmem:[#allocation11 + $0x40c] ss:$16 sps:$4 sm:$0xff]   ;;  %v7443_v62 = vld [vmem:[#allocation11 + $0x408] ss:$16 sps:$4 sm:$0xff]  }
 0x588   : > { %3319 = vst [vmem:[#allocation4 + $0x40] sm:$0x11] %v3318_v35  ;;  %4877 = vmatprep.subr.bf16.mxu0 %v7394_v6  ;;  %5096 = vmatprep.subr.bf16.mxu1 %v7397_v56  ;;  %v7451_v1 = vld [vmem:[#allocation11 + $0x42c] ss:$16 sps:$4 sm:$0xff]   ;;  %v7446_v5 = vld [vmem:[#allocation11 + $0x420] ss:$16 sps:$4 sm:$0xff]  }
 0x589   : > { %v7449_v2 = vld [vmem:[#allocation11 + $0x428] ss:$16 sps:$4 sm:$0xff]   ;;  %v7454_v4 = vld [vmem:[#allocation11 + $0x444] ss:$16 sps:$4 sm:$0xff]   ;;  %v7457_v7 = vld [vmem:[#allocation11 + $0x44c] ss:$16 sps:$4 sm:$0xff]  }
 0x58a   : > { %v7452_v26 = vld [vmem:[#allocation11 + $0x440] ss:$16 sps:$4 sm:$0xff]   ;;  %v7455_v55 = vld [vmem:[#allocation11 + $0x448] ss:$16 sps:$4 sm:$0xff]   ;;  %v7463_v15 = vld [vmem:[#allocation11 + $0x46c] ss:$16 sps:$4 sm:$0xff]  }
 0x58b   : > { %4878 = vmatpush1.bf16.msra.mxu0 %v7392_v16  ;;  %5097 = vmatpush1.bf16.msra.mxu1 %v7395_v36  ;;  %v7458_v6 = vld [vmem:[#allocation11 + $0x460] ss:$16 sps:$4 sm:$0xff]   ;;  %v7461_v56 = vld [vmem:[#allocation11 + $0x468] ss:$16 sps:$4 sm:$0xff]   ;;  %v7466_v13 = vld [vmem:[#allocation11 + $0x484] ss:$16 sps:$4 sm:$0xff]  }
 0x58c   : > { %4879 = vmatprep.subr.bf16.mxu0 %v7400_v14  ;;  %5098 = vmatprep.subr.bf16.mxu1 %v7403_v20  ;;  %v7469_v35 = vld [vmem:[#allocation11 + $0x48c] ss:$16 sps:$4 sm:$0xff]   ;;  %v3486_v36 = vshrl.u32 %v8543_v12, 16  ;;  %v7464_v20 = vld [vmem:[#allocation11 + $0x480] ss:$16 sps:$4 sm:$0xff]  }
 0x58d   : > { %v7471_v12 = vld [vmem:[#allocation11 + $0x4a0] ss:$16 sps:$4 sm:$0xff]  }
 0x58f   : > { %4880 = vmatpush1.bf16.msra.mxu0 %v7398_v23  ;;  %5099 = vmatpush1.bf16.msra.mxu1 %v7401_v38  ;;  %v3384_v29 = vld [vmem:[#allocation4 + $0x40] sm:$0x11]  ;;  %v3488_v23 = vor.u32 %v3486_v36, %v8555_v8  ;;  %v7473_v38 = vld [vmem:[#allocation11 + $0x4a4] ss:$16 sps:$4 sm:$0xff]   ;;  %v3478_v8 = vshrl.u32 %v8545_v0, 16 }
 0x590   : > { %4881 = vmatprep.subr.bf16.mxu0 %v7406_v45  ;;  %5100 = vmatprep.subr.bf16.mxu1 %v7409_v24  ;;  %v6298_v58 = vcombine.high %v3384_v29, %v3384_v29  ;;  %v6297_v16 = vcombine.low %v3384_v29, %v3384_v29  ;;  %v7519_v29 = vld [vmem:[#allocation11 + $0x584] ss:$16 sps:$4 sm:$0xff]  }
 0x591   : > { %v7541_v36 = vld [vmem:[#allocation4 + $0x24] ss:$8 sps:$4 sm:$0xff]  }
 0x592   : > { %v3482_v45 = vshll.u32 %v6297_v16, 16  ;;  %v7540_v16 = vld [vmem:[#allocation11 + $0x5ec] ss:$16 sps:$4 sm:$0xff]  }
 0x593   : > { %4882 = vmatpush1.bf16.msra.mxu0 %v7404_v42  ;;  %5101 = vmatpush1.bf16.msra.mxu1 %v7407_v25  ;;  %v7486_v42 = vld [vmem:[#allocation4 + $0x4] ss:$8 sps:$4 sm:$0xfe]   ;;  %v7474_v25 = vld [vmem:[#allocation11 + $0x4a8] ss:$16 sps:$4 sm:$0xff]  }
 0x594   : > { %4883 = vmatprep.subr.bf16.mxu0 %v7412_v27  ;;  %5102 = vmatprep.subr.bf16.mxu1 %v7415_v17  ;;  %v7480_v27 = vld [vmem:[#allocation11 + $0x4c4] ss:$16 sps:$4 sm:$0xff]   ;;  %v3484_v17 = vrot.slane %v3482_v45, 1  ;;  %v7543_v45 = vld [vmem:[#allocation4 + $0x20] ss:$8 sps:$4 sm:$0xff]  }
 0x597   : > { %4884 = vmatpush1.bf16.msra.mxu0 %v7410_v28  ;;  %5103 = vmatpush1.bf16.msra.mxu1 %v7413_v30  ;;  %v7483_v28 = vld [vmem:[#allocation11 + $0x4cc] ss:$16 sps:$4 sm:$0xff]   ;;  %v3559_v30 = vrot.slane %v7486_v42, 1 }
 0x598   : > { %4885 = vmatprep.subr.bf16.mxu0 %v7418_v41  ;;  %5104 = vmatprep.subr.bf16.mxu1 %v7421_v31  ;;  %v3560_v41 = vrot.slane %v8492_v32, 1  ;;  %v7478_v31 = vld [vmem:[#allocation11 + $0x4c0] ss:$16 sps:$4 sm:$0xff]   ;;  %v7544_v42 = vld [vmem:[#allocation4 + $0x34] ss:$8 sps:$4 sm:$0xff]  }
 0x59a   : > { %v3561_v0 = vsel %vm484_vm10, %v3559_v30, %v3560_v41 }
 0x59b   : > { %4886 = vmatpush1.bf16.msra.mxu0 %v7416_v44  ;;  %5105 = vmatpush1.bf16.msra.mxu1 %v7419_v10  ;;  %v7481_v44 = vld [vmem:[#allocation11 + $0x4c8] ss:$16 sps:$4 sm:$0xff]  }
 0x59c   : > { %4887 = vmatprep.subr.bf16.mxu0 %v7424_v34  ;;  %5106 = vmatprep.subr.bf16.mxu1 %v7427_v18  ;;  %v7489_v34 = vld [vmem:[#allocation11 + $0x4e4] ss:$16 sps:$4 sm:$0xff]   ;;  %v7492_v18 = vld [vmem:[#allocation11 + $0x4ec] ss:$16 sps:$4 sm:$0xff]  }
 0x59f   : > { %4888 = vmatpush1.bf16.msra.mxu0 %v7422_v59  ;;  %5107 = vmatpush1.bf16.msra.mxu1 %v7425_v3  ;;  %v7487_v59 = vld [vmem:[#allocation11 + $0x4e0] ss:$16 sps:$4 sm:$0xff]   ;;  %v7495_v3 = vld [vmem:[#allocation11 + $0x504] ss:$16 sps:$4 sm:$0xff]  }
 0x5a0   : > { %4889 = vmatprep.subr.bf16.mxu0 %v7430_v19  ;;  %5108 = vmatprep.subr.bf16.mxu1 %v7433_v37  ;;  %v7498_v19 = vld [vmem:[#allocation11 + $0x50c] ss:$16 sps:$4 sm:$0xff]   ;;  %v7493_v37 = vld [vmem:[#allocation11 + $0x500] ss:$16 sps:$4 sm:$0xff]  }
 0x5a3   : > { %4890 = vmatpush1.bf16.msra.mxu0 %v7428_v39  ;;  %5109 = vmatpush1.bf16.msra.mxu1 %v7431_v40  ;;  %v7496_v39 = vld [vmem:[#allocation11 + $0x508] ss:$16 sps:$4 sm:$0xff]   ;;  %v7501_v40 = vld [vmem:[#allocation11 + $0x524] ss:$16 sps:$4 sm:$0xff]  }
 0x5a4   : > { %4891 = vmatprep.subr.bf16.mxu0 %v7436_v43  ;;  %5110 = vmatprep.subr.bf16.mxu1 %v7439_v47  ;;  %v7504_v43 = vld [vmem:[#allocation11 + $0x52c] ss:$16 sps:$4 sm:$0xff]   ;;  %v7499_v47 = vld [vmem:[#allocation11 + $0x520] ss:$16 sps:$4 sm:$0xff]  }
 0x5a7   : > { %4892 = vmatpush1.bf16.msra.mxu0 %v7434_v50  ;;  %5111 = vmatpush1.bf16.msra.mxu1 %v7437_v51  ;;  %v7502_v50 = vld [vmem:[#allocation11 + $0x528] ss:$16 sps:$4 sm:$0xff]   ;;  %v7507_v51 = vld [vmem:[#allocation11 + $0x544] ss:$16 sps:$4 sm:$0xff]  }
 0x5a8   : > { %4934 = vmatprep.subr.bf16.mxu0 %v7442_v53  ;;  %5153 = vmatprep.subr.bf16.mxu1 %v7445_v60  ;;  %v7510_v53 = vld [vmem:[#allocation11 + $0x54c] ss:$16 sps:$4 sm:$0xff]   ;;  %v7505_v60 = vld [vmem:[#allocation11 + $0x540] ss:$16 sps:$4 sm:$0xff]  }
 0x5aa   : > { %4894 = vmatmul.mubr.bf16.vlgmr.msra.gmra.mrb[16].mxu0 %v8514_v9  ;;  %5113 = vmatmul.mubr.bf16.vlgmr.msra.gmra.mrb[32].mxu1 %v8514_v9  ;;  %v7460_v9 = vld [vmem:[#allocation11 + $0x464] ss:$16 sps:$4 sm:$0xff]  }
 0x5ab   : > { %4903 = vmatprep.mubr.bf16.mxu0 %v8534_v54  ;;  %4935 = vmatpush1.bf16.msra.mxu0 %v7440_v61  ;;  %v7508_v61 = vld [vmem:[#allocation11 + $0x548] ss:$16 sps:$4 sm:$0xff]  }
 0x5ac   : > { %5122 = vmatprep.mubr.bf16.mxu1 %v8534_v54  ;;  %5154 = vmatpush1.bf16.msra.mxu1 %v7443_v62  ;;  %v3490_v54 = vshll.u32 %v6298_v58, 16  ;;  %v7513_v62 = vld [vmem:[#allocation11 + $0x564] ss:$16 sps:$4 sm:$0xff]  }
 0x5ad   : > { %4936 = vmatprep.subr.bf16.mxu0 %v7448_v63  ;;  %5155 = vmatprep.subr.bf16.mxu1 %v7451_v1  ;;  %v7516_v63 = vld [vmem:[#allocation11 + $0x56c] ss:$16 sps:$4 sm:$0xff]   ;;  %v7511_v1 = vld [vmem:[#allocation11 + $0x560] ss:$16 sps:$4 sm:$0xff]   ;;  %v7525_v58 = vld [vmem:[#allocation11 + $0x5a4] ss:$16 sps:$4 sm:$0xff]  }
 0x5ae   : > { %v3492_v14 = vrot.slane %v3490_v54, 1  ;;  %v7534_v54 = vld [vmem:[#allocation11 + $0x5cc] ss:$16 sps:$4 sm:$0xff]  }
 0x5af   : > { %4937 = vmatpush1.bf16.msra.mxu0 %v7446_v5  ;;  %v7514_v5 = vld [vmem:[#allocation11 + $0x568] ss:$16 sps:$4 sm:$0xff]  }
 0x5b0   : > { %5156 = vmatpush1.bf16.msra.mxu1 %v7449_v2  ;;  %4938 = vmatprep.subr.bf16.mxu0 %v7454_v4  ;;  %v3493_v24 = vsel %vm455_vm11, %v3488_v23, %v3492_v14  ;;  %v7522_v2 = vld [vmem:[#allocation11 + $0x58c] ss:$16 sps:$4 sm:$0xff]   ;;  %v7517_v4 = vld [vmem:[#allocation11 + $0x580] ss:$16 sps:$4 sm:$0xff]   ;;  %v3557_v23 = vrot.slane %v8494_v48, 1 }
 0x5b1   : > { %5157 = vmatprep.subr.bf16.mxu1 %v7457_v7  ;;  %v7520_v7 = vld [vmem:[#allocation11 + $0x588] ss:$16 sps:$4 sm:$0xff]   ;;  %v7535_v14 = vld [vmem:[#allocation11 + $0x5e0] ss:$16 sps:$4 sm:$0xff]  }
 0x5b2   : > { %4904 = vmatmul.mubr.bf16.gmra.mrb[20].mxu0 %v8537_v57  ;;  %5123 = vmatmul.mubr.bf16.gmra.mrb[36].mxu1 %v8537_v57  ;;  %v7467_v57 = vld [vmem:[#allocation11 + $0x488] ss:$16 sps:$4 sm:$0xff]  }
 0x5b3   : > { %4913 = vmatprep.mubr.bf16.mxu0 %v8563_v33  ;;  %4939 = vmatpush1.bf16.msra.mxu0 %v7452_v26  ;;  %v7528_v26 = vld [vmem:[#allocation11 + $0x5ac] ss:$16 sps:$4 sm:$0xff]  }
 0x5b4   : > { %5132 = vmatprep.mubr.bf16.mxu1 %v8563_v33  ;;  %5158 = vmatpush1.bf16.msra.mxu1 %v7455_v55  ;;  %v7476_v33 = vld [vmem:[#allocation11 + $0x4ac] ss:$16 sps:$4 sm:$0xff]   ;;  %v7523_v55 = vld [vmem:[#allocation11 + $0x5a0] ss:$16 sps:$4 sm:$0xff]  }
 0x5b5   : > { %4940 = vmatprep.subr.bf16.mxu0 %v7460_v9  ;;  %5159 = vmatprep.subr.bf16.mxu1 %v7463_v15  ;;  %v7526_v9 = vld [vmem:[#allocation11 + $0x5a8] ss:$16 sps:$4 sm:$0xff]   ;;  %v7531_v15 = vld [vmem:[#allocation11 + $0x5c4] ss:$16 sps:$4 sm:$0xff]  }
 0x5b7   : > { %4941 = vmatpush1.bf16.msra.mxu0 %v7458_v6  ;;  %v7529_v6 = vld [vmem:[#allocation11 + $0x5c0] ss:$16 sps:$4 sm:$0xff]  }
 0x5b8   : > { %5160 = vmatpush1.bf16.msra.mxu1 %v7461_v56  ;;  %4942 = vmatprep.subr.bf16.mxu0 %v7466_v13  ;;  %v7532_v56 = vld [vmem:[#allocation11 + $0x5c8] ss:$16 sps:$4 sm:$0xff]   ;;  %v7537_v13 = vld [vmem:[#allocation11 + $0x5e4] ss:$16 sps:$4 sm:$0xff]  }
 0x5b9   : > { %5161 = vmatprep.subr.bf16.mxu1 %v7469_v35  ;;  %v7484_v35 = vld [vmem:[#allocation4] ss:$8 sps:$4 sm:$0xfe]  }
 0x5ba   : > { %4914 = vmatmul.mubr.bf16.gmra.mrb[24].mxu0 %v8567_v11  ;;  %5133 = vmatmul.mubr.bf16.gmra.mrb[40].mxu1 %v8567_v11  ;;  %v3480_v11 = vor.u32 %v3478_v8, %v8557_v52  ;;  %v7490_v52 = vld [vmem:[#allocation11 + $0x4e8] ss:$16 sps:$4 sm:$0xff]  }
 0x5bb   : > { %4923 = vmatprep.mubr.bf16.mxu0 %v3493_v24  ;;  %4943 = vmatpush1.bf16.msra.mxu0 %v7464_v20  ;;  %v7538_v20 = vld [vmem:[#allocation11 + $0x5e8] ss:$16 sps:$4 sm:$0xff]  }
 0x5bc   : > { %5142 = vmatprep.mubr.bf16.mxu1 %v3493_v24  ;;  %5162 = vmatpush1.bf16.msra.mxu1 %v7467_v57  ;;  %v3485_v10 = vsel %vm455_vm11, %v3480_v11, %v3484_v17  ;;  %v3556_v57 = vrot.slane %v7484_v35, 1  ;;  %v7546_v8 = vld [vmem:[#allocation4 + $0x30] ss:$8 sps:$4 sm:$0xff]  }
 0x5bd   : > { %4944 = vmatprep.subr.bf16.mxu0 %v7473_v38  ;;  %5163 = vmatprep.subr.bf16.mxu1 %v7476_v33  ;;  %v3564_v38 = vrot.slane %v7541_v36, 1  ;;  %v3566_v32 = vrot.slane %v7546_v8, 1 }
 0x5be   : > { %v3558_v33 = vsel %vm484_vm10, %v3556_v57, %v3557_v23 }
 0x5bf   : > { %4945 = vmatpush1.bf16.msra.mxu0 %v7471_v12  ;;  %v3565_v24 = vsel %vm484_vm10, %v3560_v41, %v3564_v38  ;;  %v3562_v12 = vrot.slane %v7543_v45, 1 }
 0x5c0   : > { %5164 = vmatpush1.bf16.msra.mxu1 %v7474_v25  ;;  %4946 = vmatprep.subr.bf16.mxu0 %v7480_v27  ;;  %v3568_v25 = vrot.slane %v7544_v42, 1  ;;  %v3518_v27 = vld [vmem:[#allocation4 + $0x40] sm:$0x11] }
 0x5c1   : > { %5165 = vmatprep.subr.bf16.mxu1 %v7483_v28  ;;  %v3563_v48 = vsel %vm484_vm10, %v3557_v23, %v3562_v12  ;;  %v6308_v28 = vcombine.high %v3518_v27, %v3518_v27  ;;  %v3567_v41 = vsel %vm484_vm10, %v3562_v12, %v3566_v32  ;;  %v6307_v11 = vcombine.low %v3518_v27, %v3518_v27 }
 0x5c2   : > { %4924 = vmatmul.mubr.bf16.gmra.mrb[28].mxu0 %v3485_v10  ;;  %5143 = vmatmul.mubr.bf16.gmra.mrb[44].mxu1 %v3485_v10  ;;  %v3569_v17 = vsel %vm484_vm10, %v3564_v38, %v3568_v25 }
 0x5c3   : > { %4947 = vmatpush1.bf16.msra.mxu0 %v7478_v31  ;;  %4966 = vmatprep.mubr.bf16.mxu0 %v3561_v0  ;;  %v3572_v30 = vrot.slane %v6308_v28, 1 }
 0x5c4   : > { %5166 = vmatpush1.bf16.msra.mxu1 %v7481_v44  ;;  %5185 = vmatprep.mubr.bf16.mxu1 %v3561_v0  ;;  %v3570_v44 = vrot.slane %v6307_v11, 1 }
 0x5c5   : > { %4948 = vmatprep.subr.bf16.mxu0 %v7489_v34  ;;  %5167 = vmatprep.subr.bf16.mxu1 %v7492_v18  ;;  %v3573_v31 = vsel %vm484_vm10, %v3568_v25, %v3572_v30  ;;  %v7811_v34 = vmov 0.0   ;;  %v3806_v18 = vld [vmem:[%s8975_s9] ss:$4 sm:$0xf] }
 0x5c6   : > { %v3571_v10 = vsel %vm484_vm10, %v3566_v32, %v3570_v44  ;;  %v8609_v0 = vrot.slane %v3806_v18, %v8166_v46 }
 0x5c7   : > { %4949 = vmatpush1.bf16.msra.mxu0 %v7487_v59  ;;  %v8612_v59 = vrot.slane %v3806_v18, %v8185_v21 }
 0x5c8   : > { %5168 = vmatpush1.bf16.msra.mxu1 %v7490_v52  ;;  %4950 = vmatprep.subr.bf16.mxu0 %v7495_v3  ;;  %v8615_v52 = vrot.slane %v3806_v18, %v8171_v49  ;;  %v8618_v3 = vrot.slane %v3806_v18, %v8187_v22 }
 0x5c9   : > { %5169 = vmatprep.subr.bf16.mxu1 %v7498_v19 }
 0x5cb   : > { %4951 = vmatpush1.bf16.msra.mxu0 %v7493_v37 }
 0x5cc   : > { %5170 = vmatpush1.bf16.msra.mxu1 %v7496_v39  ;;  %4952 = vmatprep.subr.bf16.mxu0 %v7501_v40 }
 0x5cd   : > { %5171 = vmatprep.subr.bf16.mxu1 %v7504_v43 }
 0x5cf   : > { %4953 = vmatpush1.bf16.msra.mxu0 %v7499_v47 }
 0x5d0   : > { %5172 = vmatpush1.bf16.msra.mxu1 %v7502_v50  ;;  %4954 = vmatprep.subr.bf16.mxu0 %v7507_v51 }
 0x5d1   : > { %5173 = vmatprep.subr.bf16.mxu1 %v7510_v53 }
 0x5d3   : > { %4955 = vmatpush1.bf16.msra.mxu0 %v7505_v60 }
 0x5d4   : > { %5174 = vmatpush1.bf16.msra.mxu1 %v7508_v61  ;;  %4956 = vmatprep.subr.bf16.mxu0 %v7513_v62 }
 0x5d5   : > { %5175 = vmatprep.subr.bf16.mxu1 %v7516_v63 }
 0x5d7   : > { %4957 = vmatpush1.bf16.msra.mxu0 %v7511_v1 }
 0x5d8   : > { %5176 = vmatpush1.bf16.msra.mxu1 %v7514_v5  ;;  %4958 = vmatprep.subr.bf16.mxu0 %v7519_v29 }
 0x5d9   : > { %5177 = vmatprep.subr.bf16.mxu1 %v7522_v2 }
 0x5db   : > { %4959 = vmatpush1.bf16.msra.mxu0 %v7517_v4 }
 0x5dc   : > { %5178 = vmatpush1.bf16.msra.mxu1 %v7520_v7  ;;  %4960 = vmatprep.subr.bf16.mxu0 %v7525_v58 }
 0x5dd   : > { %5179 = vmatprep.subr.bf16.mxu1 %v7528_v26 }
 0x5df   : > { %4961 = vmatpush1.bf16.msra.mxu0 %v7523_v55 }
 0x5e0   : > { %5180 = vmatpush1.bf16.msra.mxu1 %v7526_v9  ;;  %4962 = vmatprep.subr.bf16.mxu0 %v7531_v15 }
 0x5e1   : > { %5181 = vmatprep.subr.bf16.mxu1 %v7534_v54 }
 0x5e3   : > { %4963 = vmatpush1.bf16.msra.mxu0 %v7529_v6 }
 0x5e4   : > { %5182 = vmatpush1.bf16.msra.mxu1 %v7532_v56  ;;  %4964 = vmatprep.subr.bf16.mxu0 %v7537_v13 }
 0x5e5   : > { %5183 = vmatprep.subr.bf16.mxu1 %v7540_v16 }
 0x5e7   : > { %4965 = vmatpush1.bf16.msra.mxu0 %v7535_v14 }
 0x5e8   : > { %5184 = vmatpush1.bf16.msra.mxu1 %v7538_v20 }
 0x5ea   : > { %4967 = vmatmul.mubr.bf16.vlgmr.msra.gmra.mrb[16].mxu0 %v3558_v33 }
 0x5eb   : > { %5186 = vmatmul.mubr.bf16.vlgmr.msra.gmra.mrb[32].mxu1 %v3558_v33  ;;  %4976 = vmatprep.mubr.bf16.mxu0 %v3565_v24 }
 0x5ec   : > { %5195 = vmatprep.mubr.bf16.mxu1 %v3565_v24 }
 0x5f2   : > { %4977 = vmatmul.mubr.bf16.gmra.mrb[20].mxu0 %v3563_v48 }
 0x5f3   : > { %5196 = vmatmul.mubr.bf16.gmra.mrb[36].mxu1 %v3563_v48  ;;  %4986 = vmatprep.mubr.bf16.mxu0 %v3569_v17 }
 0x5f4   : > { %5205 = vmatprep.mubr.bf16.mxu1 %v3569_v17 }
 0x5fa   : > { %4987 = vmatmul.mubr.bf16.gmra.mrb[24].mxu0 %v3567_v41 }
 0x5fb   : > { %5206 = vmatmul.mubr.bf16.gmra.mrb[40].mxu1 %v3567_v41  ;;  %4996 = vmatprep.mubr.bf16.mxu0 %v3573_v31 }
 0x5fc   : > { %5215 = vmatprep.mubr.bf16.mxu1 %v3573_v31 }
 0x602   : > { %4997 = vmatmul.mubr.bf16.gmra.mrb[28].mxu0 %v3571_v10 }
 0x603   : > { %5216 = vmatmul.mubr.bf16.gmra.mrb[44].mxu1 %v3571_v10  ;;  %5530 = vmatprep.mubr.f32.mxu0 %v7811_v34 }
 0x6bd   : > { %v4968_v19 = vpop.f32.mrb[16].mxu0 }
 0x6be   : > { %v6616_v37 = vadd.f32 %v4968_v19, %v8609_v0  ;;  %v5187_v39 = vpop.f32.mrb[32].mxu1  ;;  %v4970_v40 = vpop.f32.mrb[17].mxu0 }
 0x6bf   : > { %v6632_v43 = vadd.f32 %v5187_v39, %v8612_v59  ;;  %v6617_v47 = vadd.f32 %v4970_v40, %v8615_v52  ;;  %v5189_v46 = vpop.f32.mrb[33].mxu1  ;;  %v4972_v50 = vpop.f32.mrb[18].mxu0 }
 0x6c0   : > { %v5226_v51 = vsub.f32 0.0, %v6616_v37  ;;  %v6633_v21 = vadd.f32 %v5189_v46, %v8618_v3  ;;  %v6618_v49 = vadd.f32 %v4972_v50, %v8609_v0  ;;  %v5191_v53 = vpop.f32.mrb[34].mxu1  ;;  %v4974_v60 = vpop.f32.mrb[19].mxu0 }
 0x6c1   : > { %v5228_v22 = vsub.f32 0.0, %v6632_v43  ;;  %v5227_v61 = vsub.f32 0.0, %v6617_v47  ;;  %v6634_v62 = vadd.f32 %v5191_v53, %v8612_v59  ;;  %v6619_v63 = vadd.f32 %v4974_v60, %v8615_v52  ;;  %v5193_v1 = vpop.f32.mrb[35].mxu1 }
 0x6c2   : > { %v5258_v5 = vmul.f32 1.442695, %v5226_v51  ;;  %v5229_v29 = vsub.f32 0.0, %v6633_v21  ;;  %v5230_v2 = vsub.f32 0.0, %v6618_v49  ;;  %v6635_v4 = vadd.f32 %v5193_v1, %v8618_v3 }
 0x6c3   : > { %v5262_v7 = vmul.f32 1.442695, %v5228_v22  ;;  %v5260_v58 = vmul.f32 1.442695, %v5227_v61  ;;  %v5232_v26 = vsub.f32 0.0, %v6634_v62  ;;  %v5231_v55 = vsub.f32 0.0, %v6619_v63 }
 0x6c4   : > { %7549 = vpow2.f32 %v5258_v5  ;;  %v5264_v9 = vmul.f32 1.442695, %v5229_v29  ;;  %v5266_v15 = vmul.f32 1.442695, %v5230_v2  ;;  %v5233_v54 = vsub.f32 0.0, %v6635_v4 }
 0x6c5   : > { %7551 = vpow2.f32 %v5262_v7  ;;  %v5270_v6 = vmul.f32 1.442695, %v5232_v26  ;;  %v4978_v56 = vpop.f32.mrb[20].mxu0  ;;  %v5268_v13 = vmul.f32 1.442695, %v5231_v55 }
 0x6c6   : > { %7553 = vpow2.f32 %v5260_v58  ;;  %v6620_v35 = vadd.f32 %v4978_v56, %v8609_v0  ;;  %v5197_v16 = vpop.f32.mrb[36].mxu1  ;;  %v4980_v36 = vpop.f32.mrb[21].mxu0  ;;  %v5272_v14 = vmul.f32 1.442695, %v5233_v54 }
 0x6c7   : > { %7555 = vpow2.f32 %v5264_v9  ;;  %v6636_v20 = vadd.f32 %v5197_v16, %v8612_v59  ;;  %v6621_v57 = vadd.f32 %v4980_v36, %v8615_v52  ;;  %v5199_v23 = vpop.f32.mrb[37].mxu1  ;;  %v4982_v38 = vpop.f32.mrb[22].mxu0 }
 0x6c8   : > { %7557 = vpow2.f32 %v5266_v15  ;;  %v5234_v33 = vsub.f32 0.0, %v6620_v35  ;;  %v6637_v45 = vadd.f32 %v5199_v23, %v8618_v3  ;;  %v6622_v24 = vadd.f32 %v4982_v38, %v8609_v0  ;;  %v5201_v42 = vpop.f32.mrb[38].mxu1  ;;  %v4984_v12 = vpop.f32.mrb[23].mxu0 }
 0x6c9   : > { %7559 = vpow2.f32 %v5270_v6  ;;  %v5236_v25 = vsub.f32 0.0, %v6636_v20  ;;  %v5235_v27 = vsub.f32 0.0, %v6621_v57  ;;  %v5203_v48 = vpop.f32.mrb[39].mxu1  ;;  %v6638_v10 = vadd.f32 %v5201_v42, %v8612_v59 }
 0x6ca   : > { %7561 = vpow2.f32 %v5268_v13  ;;  %v5274_v8 = vmul.f32 1.442695, %v5234_v33  ;;  %v5237_v17 = vsub.f32 0.0, %v6637_v45  ;;  %v5238_v28 = vsub.f32 0.0, %v6622_v24 }
 0x6cb   : > { %7563 = vpow2.f32 %v5272_v14  ;;  %v5278_v32 = vmul.f32 1.442695, %v5236_v25  ;;  %v5276_v30 = vmul.f32 1.442695, %v5235_v27  ;;  %v6623_v50 = vadd.f32 %v4984_v12, %v8615_v52 }
 0x6cc   : > { %7565 = vpow2.f32 %v5274_v8  ;;  %v5280_v41 = vmul.f32 1.442695, %v5237_v17  ;;  %v5282_v11 = vmul.f32 1.442695, %v5238_v28  ;;  %v5240_v62 = vsub.f32 0.0, %v6638_v10 }
 0x6cd   : > { %7567 = vpow2.f32 %v5278_v32  ;;  %v4988_v31 = vpop.f32.mrb[24].mxu0  ;;  %v6639_v5 = vadd.f32 %v5203_v48, %v8618_v3  ;;  %v5239_v4 = vsub.f32 0.0, %v6623_v50 }
 0x6ce   : > { %v7550_v44 = vpop.eup %7549  ;;  %7569 = vpow2.f32 %v5276_v30  ;;  %v5207_v18 = vpop.f32.mrb[40].mxu1  ;;  %v6624_v26 = vadd.f32 %v4988_v31, %v8609_v0  ;;  %v5286_v54 = vmul.f32 1.442695, %v5240_v62 }
 0x6cf   : > { %v4990_v19 = vpop.f32.mrb[25].mxu0  ;;  %v7552_v37 = vpop.eup %7551  ;;  %v5322_v39 = vadd.f32 1.0, %v7550_v44  ;;  %7571 = vpow2.f32 %v5280_v41  ;;  %v6640_v6 = vadd.f32 %v5207_v18, %v8612_v59  ;;  %v5241_v36 = vsub.f32 0.0, %v6639_v5 }
 0x6d0   : > { %v5209_v40 = vpop.f32.mrb[41].mxu1  ;;  %v4992_v43 = vpop.f32.mrb[26].mxu0  ;;  %v5324_v46 = vadd.f32 1.0, %v7552_v37  ;;  %7573 = vpow2.f32 %v5282_v11  ;;  %v6625_v14 = vadd.f32 %v4990_v19, %v8615_v52  ;;  %v5284_v33 = vmul.f32 1.442695, %v5239_v4 }
 0x6d1   : > { %v7554_v47 = vpop.eup %7553  ;;  %v5211_v51 = vpop.f32.mrb[42].mxu1  ;;  %7575 = vrcp.f32 %v5322_v39  ;;  %v6641_v45 = vadd.f32 %v5209_v40, %v8618_v3  ;;  %v5242_v27 = vsub.f32 0.0, %v6624_v26  ;;  %v6626_v48 = vadd.f32 %v4992_v43, %v8609_v0 }
 0x6d2   : > { %v4994_v21 = vpop.f32.mrb[27].mxu0  ;;  %v7556_v49 = vpop.eup %7555  ;;  %v5323_v53 = vadd.f32 1.0, %v7554_v47  ;;  %7577 = vrcp.f32 %v5324_v46  ;;  %v5244_v32 = vsub.f32 0.0, %v6640_v6  ;;  %v6642_v30 = vadd.f32 %v5211_v51, %v8612_v59 }
 0x6d3   : > { %v5213_v60 = vpop.f32.mrb[43].mxu1  ;;  %v7558_v22 = vpop.eup %7557  ;;  %v5325_v61 = vadd.f32 1.0, %v7556_v49  ;;  %v5243_v31 = vsub.f32 0.0, %v6625_v14  ;;  %v6627_v44 = vadd.f32 %v4994_v21, %v8615_v52  ;;  %v5288_v18 = vmul.f32 1.442695, %v5241_v36 }
 0x6d4   : > { %v7560_v63 = vpop.eup %7559  ;;  %7579 = vrcp.f32 %v5323_v53  ;;  %v5326_v1 = vadd.f32 1.0, %v7558_v22  ;;  %v5245_v19 = vsub.f32 0.0, %v6641_v45  ;;  %v6643_v37 = vadd.f32 %v5213_v60, %v8618_v3 }
 0x6d5   : > { %v7562_v29 = vpop.eup %7561  ;;  %7581 = vrcp.f32 %v5325_v61  ;;  %v5328_v2 = vadd.f32 1.0, %v7560_v63  ;;  %v4998_v55 = vpop.f32.mrb[28].mxu0  ;;  %v5290_v40 = vmul.f32 1.442695, %v5242_v27  ;;  %v5246_v43 = vsub.f32 0.0, %v6626_v48 }
 0x6d6   : > { %v7564_v7 = vpop.eup %7563  ;;  %7583 = vrcp.f32 %v5326_v1  ;;  %v5327_v58 = vadd.f32 1.0, %v7562_v29  ;;  %v5217_v56 = vpop.f32.mrb[44].mxu1  ;;  %v6628_v47 = vadd.f32 %v4998_v55, %v8609_v0  ;;  %v5294_v50 = vmul.f32 1.442695, %v5244_v32 }
 0x6d7   : > { %v7566_v9 = vpop.eup %7565  ;;  %7585 = vrcp.f32 %v5328_v2  ;;  %v5329_v15 = vadd.f32 1.0, %v7564_v7  ;;  %v8638_v13 = vpop.f32.mrb[29].mxu0  ;;  %v5248_v51 = vsub.f32 0.0, %v6642_v30  ;;  %v6644_v49 = vadd.f32 %v5217_v56, %v8612_v59 }
 0x6d8   : > { %v7568_v35 = vpop.eup %7567  ;;  %7587 = vrcp.f32 %v5327_v58  ;;  %v5330_v16 = vadd.f32 1.0, %v7566_v9  ;;  %v8641_v20 = vpop.f32.mrb[45].mxu1  ;;  %v5292_v53 = vmul.f32 1.442695, %v5243_v31  ;;  %v5247_v22 = vsub.f32 0.0, %v6627_v44 }
 0x6d9   : > { %v8643_v57 = vpop.f32.mrb[30].mxu0  ;;  %v7570_v23 = vpop.eup %7569  ;;  %7589 = vrcp.f32 %v5329_v15  ;;  %v5332_v38 = vadd.f32 1.0, %v7568_v35  ;;  %v5296_v60 = vmul.f32 1.442695, %v5245_v19  ;;  %v5249_v62 = vsub.f32 0.0, %v6643_v37 }
 0x6da   : > { %v8646_v24 = vpop.f32.mrb[46].mxu1  ;;  %v8648_v42 = vpop.f32.mrb[31].mxu0  ;;  %7591 = vrcp.f32 %v5330_v16  ;;  %v5331_v25 = vadd.f32 1.0, %v7570_v23  ;;  %v5298_v1 = vmul.f32 1.442695, %v5246_v43  ;;  %v5250_v5 = vsub.f32 0.0, %v6628_v47 }
 0x6db   : > { %v7572_v12 = vpop.eup %7571  ;;  %v8651_v8 = vpop.f32.mrb[47].mxu1  ;;  %7593 = vrcp.f32 %v5332_v38  ;;  %v5302_v2 = vmul.f32 1.442695, %v5248_v51  ;;  %v5252_v4 = vsub.f32 0.0, %v6644_v49  ;;  %v5300_v26 = vmul.f32 1.442695, %v5247_v22 }
 0x6dc   : > { %v7574_v17 = vpop.eup %7573  ;;  %v5333_v28 = vadd.f32 1.0, %v7572_v12  ;;  %7595 = vrcp.f32 %v5331_v25  ;;  %v5304_v15 = vmul.f32 1.442695, %v5249_v62  ;;  %v5306_v35 = vmul.f32 1.442695, %v5250_v5 }
 0x6dd   : > { %v8654_v41 = vpop.eup %7575  ;;  %v5334_v11 = vadd.f32 1.0, %v7574_v17  ;;  %v5310_v36 = vmul.f32 1.442695, %v5252_v4  ;;  %v6629_v32 = vadd.f32 %v8638_v13, %v8615_v52  ;;  %v6645_v31 = vadd.f32 %v8641_v20, %v8618_v3 }
 0x6de   : > { %v7578_v10 = vpop.eup %7577  ;;  %7597 = vrcp.f32 %v5333_v28 }
 0x6df   : > { %v8658_v39 = vpop.eup %7579  ;;  %7599 = vrcp.f32 %v5334_v11  ;;  %v5251_v47 = vsub.f32 0.0, %v6629_v32  ;;  %v5253_v51 = vsub.f32 0.0, %v6645_v31 }
 0x6e0   : > { %v7582_v46 = vpop.eup %7581  ;;  %7601 = vpow2.f32 %v5286_v54 }
 0x6e1   : > { %v8662_v21 = vpop.eup %7583  ;;  %7603 = vpow2.f32 %v5284_v33 }
 0x6e2   : > { %v7586_v61 = vpop.eup %7585  ;;  %7605 = vpow2.f32 %v5288_v18  ;;  %v6586_v6 = vpack.c.bf16 %v8662_v21, %v8654_v41  ;;  %v6630_v18 = vadd.f32 %v8643_v57, %v8609_v0  ;;  %v6647_v0 = vadd.f32 %v8651_v8, %v8618_v3  ;;  %v5404_v41 = vld [vmem:[%s8972_s6 + $0x90] sm:$0xff]  ;;  %v5406_v21 = vld [vmem:[%s8972_s6 + $0xa0] sm:$0xff] }
 0x6e3   : > { %v8664_v63 = vpop.eup %7587  ;;  %7607 = vpow2.f32 %v5290_v40  ;;  %v6570_v7 = vpack.c.bf16 %v7586_v61, %v7578_v10  ;;  %v6646_v40 = vadd.f32 %v8646_v24, %v8612_v59 }
 0x6e4   : > { %v7590_v29 = vpop.eup %7589  ;;  %7609 = vpow2.f32 %v5294_v50  ;;  %v6584_v54 = vpack.c.bf16 %v8664_v63, %v8658_v39  ;;  %v5405_v39 = vld [vmem:[%s8972_s6 + $0x98] sm:$0xff]  ;;  %v5407_v63 = vld [vmem:[%s8972_s6 + $0xa8] sm:$0xff] }
 0x6e5   : > { %v8666_v58 = vpop.eup %7591  ;;  %7611 = vpow2.f32 %v5292_v53  ;;  %v6568_v55 = vpack.c.bf16 %v7590_v29, %v7582_v46  ;;  %v6631_v46 = vadd.f32 %v8648_v42, %v8615_v52  ;;  %v5254_v53 = vsub.f32 0.0, %v6630_v18 }
 0x6e6   : > { %v8668_v9 = vpop.eup %7593  ;;  %7613 = vpow2.f32 %v5296_v60  ;;  %v5256_v24 = vsub.f32 0.0, %v6646_v40  ;;  %v5308_v60 = vmul.f32 1.442695, %v5251_v47  ;;  %v5312_v42 = vmul.f32 1.442695, %v5253_v51 }
 0x6e7   : > { %v8674_v56 = vpop.eup %7595  ;;  %7615 = vpow2.f32 %v5298_v1  ;;  %6569 = vmatprep.subr.bf16.mxu0 %v6568_v55  ;;  %v5255_v62 = vsub.f32 0.0, %v6631_v46  ;;  %v5257_v1 = vsub.f32 0.0, %v6647_v0  ;;  %v5314_v29 = vmul.f32 1.442695, %v5254_v53 }
 0x6e8   : > { %v8676_v16 = vpop.eup %7597  ;;  %7617 = vpow2.f32 %v5302_v2  ;;  %6571 = vmatpush1.bf16.msra.mxu0 %v6570_v7  ;;  %v5318_v2 = vmul.f32 1.442695, %v5256_v24 }
 0x6e9   : > { %v8678_v14 = vpop.eup %7599  ;;  %7619 = vpow2.f32 %v5300_v26  ;;  %v5316_v26 = vmul.f32 1.442695, %v5255_v62  ;;  %v5414_v62 = vld [vmem:[%s8972_s6 + $0xe0] sm:$0xff] }
 0x6ea   : > { %v7602_v23 = vpop.eup %7601  ;;  %7621 = vpow2.f32 %v5304_v15  ;;  %v6590_v38 = vpack.c.bf16 %v8678_v14, %v8666_v58  ;;  %v5408_v58 = vld [vmem:[%s8972_s6 + $0xb0] sm:$0xff] }
 0x6eb   : > { %v7604_v33 = vpop.eup %7603  ;;  %v5336_v45 = vadd.f32 1.0, %v7602_v23  ;;  %7623 = vpow2.f32 %v5306_v35  ;;  %v5320_v35 = vmul.f32 1.442695, %v5257_v1  ;;  %v5412_v14 = vld [vmem:[%s8972_s6 + $0xd0] sm:$0xff]  ;;  %v5417_v1 = vld [vmem:[%s8972_s6 + $0xf8] sm:$0xff] }
 0x6ec   : > { %v7606_v12 = vpop.eup %7605  ;;  %v5335_v25 = vadd.f32 1.0, %v7604_v33  ;;  %7625 = vpow2.f32 %v5310_v36 }
 0x6ed   : > { %v7608_v27 = vpop.eup %7607  ;;  %7627 = vrcp.f32 %v5336_v45  ;;  %v5337_v48 = vadd.f32 1.0, %v7606_v12 }
 0x6ee   : > { %v7610_v17 = vpop.eup %7609  ;;  %7629 = vrcp.f32 %v5335_v25  ;;  %v5338_v28 = vadd.f32 1.0, %v7608_v27 }
 0x6ef   : > { %v7612_v30 = vpop.eup %7611  ;;  %7631 = vrcp.f32 %v5337_v48  ;;  %v5340_v11 = vadd.f32 1.0, %v7610_v17 }
 0x6f0   : > { %v7614_v44 = vpop.eup %7613  ;;  %7633 = vrcp.f32 %v5338_v28  ;;  %v5339_v10 = vadd.f32 1.0, %v7612_v30 }
 0x6f1   : > { %v7616_v19 = vpop.eup %7615  ;;  %7635 = vrcp.f32 %v5340_v11  ;;  %v5341_v37 = vadd.f32 1.0, %v7614_v44 }
 0x6f2   : > { %v7618_v43 = vpop.eup %7617  ;;  %7637 = vrcp.f32 %v5339_v10  ;;  %v5342_v13 = vadd.f32 1.0, %v7616_v19 }
 0x6f3   : > { %v7620_v20 = vpop.eup %7619  ;;  %7639 = vrcp.f32 %v5341_v37  ;;  %v5344_v50 = vadd.f32 1.0, %v7618_v43 }
 0x6f4   : > { %v7622_v57 = vpop.eup %7621  ;;  %7641 = vrcp.f32 %v5342_v13  ;;  %v5343_v49 = vadd.f32 1.0, %v7620_v20 }
 0x6f5   : > { %v7624_v22 = vpop.eup %7623  ;;  %7643 = vrcp.f32 %v5344_v50  ;;  %v5345_v59 = vadd.f32 1.0, %v7622_v57 }
 0x6f6   : > { %v7626_v61 = vpop.eup %7625  ;;  %7645 = vrcp.f32 %v5343_v49 }
 0x6f7   : > { %v7628_v52 = vpop.eup %7627  ;;  %7647 = vrcp.f32 %v5345_v59  ;;  %v5348_v17 = vadd.f32 1.0, %v7626_v61  ;;  %v5402_v61 = vld [vmem:[%s8972_s6 + $0x80] sm:$0xff] }
 0x6f8   : > { %v8694_v5 = vpop.eup %7629  ;;  %v6574_v3 = vpack.c.bf16 %v7628_v52, %v8668_v9  ;;  %7649 = vpow2.f32 %v5308_v60  ;;  %v5403_v60 = vld [vmem:[%s8972_s6 + $0x88] sm:$0xff] }
 0x6f9   : > { %v7632_v8 = vpop.eup %7631  ;;  %v6588_v4 = vpack.c.bf16 %v8694_v5, %v8674_v56  ;;  %7651 = vpow2.f32 %v5312_v42  ;;  %v5411_v56 = vld [vmem:[%s8972_s6 + $0xc8] sm:$0xff]  ;;  %v5416_v42 = vld [vmem:[%s8972_s6 + $0xf0] sm:$0xff]  ;;  %v5386_v5 = vld [vmem:[%s8972_s6] sm:$0xff] }
 0x6fa   : > { %v8699_v7 = vpop.eup %7633  ;;  %v6572_v55 = vpack.c.bf16 %v7632_v8, %v8676_v16  ;;  %7653 = vpow2.f32 %v5314_v29  ;;  %v5346_v16 = vadd.f32 1.0, %v7624_v22  ;;  %v5415_v52 = vld [vmem:[%s8972_s6 + $0xe8] sm:$0xff]  ;;  %v5389_v8 = vld [vmem:[%s8972_s6 + $0x18] sm:$0xff] }
 0x6fb   : > { %v7636_v15 = vpop.eup %7635  ;;  %7655 = vpow2.f32 %v5318_v2  ;;  %v5387_v29 = vld [vmem:[%s8972_s6 + $0x8] sm:$0xff]  ;;  %v5390_v2 = vld [vmem:[%s8972_s6 + $0x20] sm:$0xff] }
 0x6fc   : > { %v8702_v36 = vpop.eup %7637  ;;  %6573 = vmatprep.subr.bf16.mxu0 %v6572_v55  ;;  %7657 = vpow2.f32 %v5316_v26  ;;  %v5393_v26 = vld [vmem:[%s8972_s6 + $0x38] sm:$0xff]  ;;  %v5394_v55 = vld [vmem:[%s8972_s6 + $0x40] sm:$0xff] }
 0x6fd   : > { %v7640_v23 = vpop.eup %7639  ;;  %6575 = vmatpush1.bf16.msra.mxu0 %v6574_v3  ;;  %7659 = vpow2.f32 %v5320_v35  ;;  %v5388_v3 = vld [vmem:[%s8972_s6 + $0x10] sm:$0xff] }
 0x6fe   : > { %v7642_v9 = vpop.eup %7641  ;;  %7661 = vrcp.f32 %v5346_v16  ;;  %v5396_v35 = vld [vmem:[%s8972_s6 + $0x50] sm:$0xff] }
 0x6ff   : > { %v7644_v33 = vpop.eup %7643  ;;  %v6594_v45 = vpack.c.bf16 %v7642_v9, %v8699_v7  ;;  %7663 = vrcp.f32 %v5348_v17  ;;  %v5392_v7 = vld [vmem:[%s8972_s6 + $0x30] sm:$0xff]  ;;  %v5399_v9 = vld [vmem:[%s8972_s6 + $0x68] sm:$0xff] }
 0x700   : > { %v7646_v12 = vpop.eup %7645  ;;  %v6578_v25 = vpack.c.bf16 %v7644_v33, %v7636_v15  ;;  %v5395_v15 = vld [vmem:[%s8972_s6 + $0x48] sm:$0xff]  ;;  %v5400_v33 = vld [vmem:[%s8972_s6 + $0x70] sm:$0xff] }
 0x701   : > { %v7648_v27 = vpop.eup %7647  ;;  %v6592_v48 = vpack.c.bf16 %v7646_v12, %v8702_v36  ;;  %v5397_v36 = vld [vmem:[%s8972_s6 + $0x58] sm:$0xff] }
 0x702   : > { %v6576_v28 = vpack.c.bf16 %v7648_v27, %v7640_v23  ;;  %v7650_v32 = vpop.eup %7649  ;;  %v5398_v23 = vld [vmem:[%s8972_s6 + $0x60] sm:$0xff] }
 0x703   : > { %v7652_v30 = vpop.eup %7651  ;;  %v5347_v11 = vadd.f32 1.0, %v7650_v32 }
 0x704   : > { %6577 = vmatprep.subr.bf16.mxu0 %v6576_v28  ;;  %v7654_v31 = vpop.eup %7653  ;;  %v5349_v44 = vadd.f32 1.0, %v7652_v30 }
 0x705   : > { %6579 = vmatpush1.bf16.msra.mxu0 %v6578_v25  ;;  %v7656_v10 = vpop.eup %7655  ;;  %7665 = vrcp.f32 %v5347_v11  ;;  %v5350_v18 = vadd.f32 1.0, %v7654_v31 }
 0x706   : > { %v7658_v19 = vpop.eup %7657  ;;  %7667 = vrcp.f32 %v5349_v44  ;;  %v5352_v37 = vadd.f32 1.0, %v7656_v10 }
 0x707   : > { %v7660_v40 = vpop.eup %7659  ;;  %7669 = vrcp.f32 %v5350_v18  ;;  %v5351_v43 = vadd.f32 1.0, %v7658_v19 }
 0x708   : > { %7671 = vrcp.f32 %v5352_v37  ;;  %v5353_v13 = vadd.f32 1.0, %v7660_v40  ;;  %v7662_v47 = vpop.eup %7661 }
 0x709   : > { %7673 = vrcp.f32 %v5351_v43  ;;  %v7664_v46 = vpop.eup %7663 }
 0x70a   : > { %7675 = vrcp.f32 %v5353_v13 }
 0x70f   : > { %v7666_v20 = vpop.eup %7665 }
 0x710   : > { %v7668_v50 = vpop.eup %7667 }
 0x711   : > { %v7670_v51 = vpop.eup %7669 }
 0x712   : > { %v7672_v0 = vpop.eup %7671  ;;  %v6598_v57 = vpack.c.bf16 %v7670_v51, %v7662_v47 }
 0x713   : > { %v7674_v49 = vpop.eup %7673  ;;  %v6582_v53 = vpack.c.bf16 %v7672_v0, %v7664_v46 }
 0x714   : > { %v7676_v22 = vpop.eup %7675  ;;  %v6596_v59 = vpack.c.bf16 %v7674_v49, %v7666_v20 }
 0x715   : > { %v6580_v24 = vpack.c.bf16 %v7676_v22, %v7668_v50 }
 0x717   : > { %6581 = vmatprep.subr.bf16.mxu0 %v6580_v24 }
 0x718   : > { %6583 = vmatpush1.bf16.msra.mxu0 %v6582_v53 }
 0x719   : > { %6585 = vmatprep.subr.bf16.mxu0 %v6584_v54  ;;  %v5409_v54 = vld [vmem:[%s8972_s6 + $0xb8] sm:$0xff] }
 0x71b   : > { %6501 = vmatmul.mubr.msk.f32.vlgmr.msra.gmra.mrb[32].mxu0 %vm442_vm9, %v5402_v61 }
 0x71c   : > { %6587 = vmatpush1.bf16.msra.mxu0 %v6586_v6  ;;  %5536 = vmatprep.mubr.f32.mxu0 %v7811_v34  ;;  %v5410_v6 = vld [vmem:[%s8972_s6 + $0xc0] sm:$0xff] }
 0x71d   : > { %6589 = vmatprep.subr.bf16.mxu0 %v6588_v4  ;;  %v5391_v4 = vld [vmem:[%s8972_s6 + $0x28] sm:$0xff] }
 0x71f   : > { %6502 = vmatmul.mubr.msk.f32.gmra.mrb[34].mxu0 %vm442_vm9, %v5403_v60 }
 0x720   : > { %6591 = vmatpush1.bf16.msra.mxu0 %v6590_v38  ;;  %5542 = vmatprep.mubr.f32.mxu0 %v7811_v34  ;;  %v5413_v38 = vld [vmem:[%s8972_s6 + $0xd8] sm:$0xff] }
 0x721   : > { %6593 = vmatprep.subr.bf16.mxu0 %v6592_v48 }
 0x723   : > { %6503 = vmatmul.mubr.msk.f32.gmra.mrb[36].mxu0 %vm442_vm9, %v5404_v41 }
 0x724   : > { %6595 = vmatpush1.bf16.msra.mxu0 %v6594_v45  ;;  %5548 = vmatprep.mubr.f32.mxu0 %v7811_v34  ;;  %v5401_v45 = vld [vmem:[%s8972_s6 + $0x78] sm:$0xff] }
 0x725   : > { %6597 = vmatprep.subr.bf16.mxu0 %v6596_v59 }
 0x727   : > { %6504 = vmatmul.mubr.msk.f32.gmra.mrb[38].mxu0 %vm442_vm9, %v5405_v39 }
 0x728   : > { %6599 = vmatpush1.bf16.msra.mxu0 %v6598_v57  ;;  %5554 = vmatprep.mubr.f32.mxu0 %v7811_v34 }
 0x72b   : > { %6505 = vmatmul.mubr.msk.f32.gmra.mrb[40].mxu0 %vm442_vm9, %v5406_v21 }
 0x72c   : > { %5560 = vmatprep.mubr.f32.mxu0 %v7811_v34 }
 0x72f   : > { %6506 = vmatmul.mubr.msk.f32.gmra.mrb[42].mxu0 %vm442_vm9, %v5407_v63 }
 0x730   : > { %5566 = vmatprep.mubr.f32.mxu0 %v7811_v34 }
 0x733   : > { %6507 = vmatmul.mubr.msk.f32.gmra.mrb[44].mxu0 %vm442_vm9, %v5408_v58 }
 0x734   : > { %5572 = vmatprep.mubr.f32.mxu0 %v7811_v34 }
 0x737   : > { %6508 = vmatmul.mubr.msk.f32.gmra.mrb[46].mxu0 %vm442_vm9, %v5409_v54 }
 0x738   : > { %5578 = vmatprep.mubr.f32.mxu0 %v7811_v34 }
 0x73b   : > { %6509 = vmatmul.mubr.msk.f32.gmra.mrb[48].mxu0 %vm442_vm9, %v5410_v6 }
 0x73c   : > { %5584 = vmatprep.mubr.f32.mxu0 %v7811_v34 }
 0x73f   : > { %6510 = vmatmul.mubr.msk.f32.gmra.mrb[50].mxu0 %vm442_vm9, %v5411_v56 }
 0x740   : > { %5590 = vmatprep.mubr.f32.mxu0 %v7811_v34 }
 0x743   : > { %6511 = vmatmul.mubr.msk.f32.gmra.mrb[52].mxu0 %vm442_vm9, %v5412_v14 }
 0x744   : > { %5596 = vmatprep.mubr.f32.mxu0 %v7811_v34 }
 0x747   : > { %6512 = vmatmul.mubr.msk.f32.gmra.mrb[54].mxu0 %vm442_vm9, %v5413_v38 }
 0x748   : > { %5602 = vmatprep.mubr.f32.mxu0 %v7811_v34 }
 0x74b   : > { %6513 = vmatmul.mubr.msk.f32.gmra.mrb[56].mxu0 %vm442_vm9, %v5414_v62 }
 0x74c   : > { %5608 = vmatprep.mubr.f32.mxu0 %v7811_v34 }
 0x74f   : > { %6514 = vmatmul.mubr.msk.f32.gmra.mrb[58].mxu0 %vm442_vm9, %v5415_v52 }
 0x750   : > { %5614 = vmatprep.mubr.f32.mxu0 %v7811_v34 }
 0x753   : > { %6515 = vmatmul.mubr.msk.f32.gmra.mrb[60].mxu0 %vm442_vm9, %v5416_v42 }
 0x754   : > { %5620 = vmatprep.mubr.f32.mxu0 %v7811_v34 }
 0x757   : > { %6516 = vmatmul.mubr.msk.f32.gmra.mrb[62].mxu0 %vm442_vm9, %v5417_v1 }
 0x758   : > { %5739 = vmatprep.mubr.f32.mxu0 %v7811_v34 }
 0x75b   : > { %6517 = vmatmul.mubr.msk.f32.vlgmr.msra.gmra.mrb[32].mxu0 %vm442_vm9, %v5386_v5 }
 0x75c   : > { %5745 = vmatprep.mubr.f32.mxu0 %v7811_v34 }
 0x75f   : > { %6518 = vmatmul.mubr.msk.f32.gmra.mrb[34].mxu0 %vm442_vm9, %v5387_v29 }
 0x760   : > { %5751 = vmatprep.mubr.f32.mxu0 %v7811_v34 }
 0x763   : > { %6519 = vmatmul.mubr.msk.f32.gmra.mrb[36].mxu0 %vm442_vm9, %v5388_v3 }
 0x764   : > { %5757 = vmatprep.mubr.f32.mxu0 %v7811_v34 }
 0x767   : > { %6520 = vmatmul.mubr.msk.f32.gmra.mrb[38].mxu0 %vm442_vm9, %v5389_v8 }
 0x768   : > { %5763 = vmatprep.mubr.f32.mxu0 %v7811_v34 }
 0x76b   : > { %6521 = vmatmul.mubr.msk.f32.gmra.mrb[40].mxu0 %vm442_vm9, %v5390_v2 }
 0x76c   : > { %5769 = vmatprep.mubr.f32.mxu0 %v7811_v34 }
 0x76f   : > { %6522 = vmatmul.mubr.msk.f32.gmra.mrb[42].mxu0 %vm442_vm9, %v5391_v4 }
 0x770   : > { %5775 = vmatprep.mubr.f32.mxu0 %v7811_v34 }
 0x773   : > { %6523 = vmatmul.mubr.msk.f32.gmra.mrb[44].mxu0 %vm442_vm9, %v5392_v7 }
 0x774   : > { %5781 = vmatprep.mubr.f32.mxu0 %v7811_v34 }
 0x777   : > { %6524 = vmatmul.mubr.msk.f32.gmra.mrb[46].mxu0 %vm442_vm9, %v5393_v26 }
 0x778   : > { %5787 = vmatprep.mubr.f32.mxu0 %v7811_v34 }
 0x77b   : > { %6525 = vmatmul.mubr.msk.f32.gmra.mrb[48].mxu0 %vm442_vm9, %v5394_v55 }
 0x77c   : > { %5793 = vmatprep.mubr.f32.mxu0 %v7811_v34 }
 0x77f   : > { %6526 = vmatmul.mubr.msk.f32.gmra.mrb[50].mxu0 %vm442_vm9, %v5395_v15 }
 0x780   : > { %5799 = vmatprep.mubr.f32.mxu0 %v7811_v34 }
 0x783   : > { %6527 = vmatmul.mubr.msk.f32.gmra.mrb[52].mxu0 %vm442_vm9, %v5396_v35 }
 0x784   : > { %5805 = vmatprep.mubr.f32.mxu0 %v7811_v34 }
 0x787   : > { %6528 = vmatmul.mubr.msk.f32.gmra.mrb[54].mxu0 %vm442_vm9, %v5397_v36 }
 0x788   : > { %5811 = vmatprep.mubr.f32.mxu0 %v7811_v34 }
 0x78b   : > { %6529 = vmatmul.mubr.msk.f32.gmra.mrb[56].mxu0 %vm442_vm9, %v5398_v23 }
 0x78c   : > { %5817 = vmatprep.mubr.f32.mxu0 %v7811_v34 }
 0x78f   : > { %6530 = vmatmul.mubr.msk.f32.gmra.mrb[58].mxu0 %vm442_vm9, %v5399_v9 }
 0x790   : > { %5823 = vmatprep.mubr.f32.mxu0 %v7811_v34 }
 0x793   : > { %6531 = vmatmul.mubr.msk.f32.gmra.mrb[60].mxu0 %vm442_vm9, %v5400_v33 }
 0x794   : > { %5829 = vmatprep.mubr.f32.mxu0 %v7811_v34 }
 0x797   : > { %6532 = vmatmul.mubr.msk.f32.gmra.mrb[62].mxu0 %vm442_vm9, %v5401_v45 }
 0x82e   : > { %v5741_v12 = vpop.f32.mrb[32].mxu0 }
 0x82f   : > { %5836 = vst [vmem:[%s8880_s29] sm:$0xff] %v5741_v12  ;;  %v5743_v34 = vpop.f32.mrb[33].mxu0 }
 0x830   : > { %6533 = vst [vmem:[%s8880_s29 + $0x80] sm:$0xff] %v5743_v34 }
 0x832   : > { %v5747_v25 = vpop.f32.mrb[34].mxu0 }
 0x833   : > { %5837 = vst [vmem:[%s8880_s29 + $0x8] sm:$0xff] %v5747_v25  ;;  %v5749_v27 = vpop.f32.mrb[35].mxu0 }
 0x834   : > { %6534 = vst [vmem:[%s8880_s29 + $0x88] sm:$0xff] %v5749_v27 }
 0x836   : > { %v5753_v16 = vpop.f32.mrb[36].mxu0 }
 0x837   : > { %5838 = vst [vmem:[%s8880_s29 + $0x10] sm:$0xff] %v5753_v16  ;;  %v5755_v48 = vpop.f32.mrb[37].mxu0 }
 0x838   : > { %6535 = vst [vmem:[%s8880_s29 + $0x90] sm:$0xff] %v5755_v48 }
 0x83a   : > { %v5759_v17 = vpop.f32.mrb[38].mxu0 }
 0x83b   : > { %5839 = vst [vmem:[%s8880_s29 + $0x18] sm:$0xff] %v5759_v17  ;;  %v5761_v28 = vpop.f32.mrb[39].mxu0 }
 0x83c   : > { %6536 = vst [vmem:[%s8880_s29 + $0x98] sm:$0xff] %v5761_v28 }
 0x83e   : > { %v5765_v32 = vpop.f32.mrb[40].mxu0 }
 0x83f   : > { %5840 = vst [vmem:[%s8880_s29 + $0x20] sm:$0xff] %v5765_v32  ;;  %v5767_v30 = vpop.f32.mrb[41].mxu0 }
 0x840   : > { %6537 = vst [vmem:[%s8880_s29 + $0xa0] sm:$0xff] %v5767_v30 }
 0x842   : > { %v5771_v11 = vpop.f32.mrb[42].mxu0 }
 0x843   : > { %5841 = vst [vmem:[%s8880_s29 + $0x28] sm:$0xff] %v5771_v11  ;;  %v5773_v31 = vpop.f32.mrb[43].mxu0 }
 0x844   : > { %6538 = vst [vmem:[%s8880_s29 + $0xa8] sm:$0xff] %v5773_v31 }
 0x846   : > { %v5777_v44 = vpop.f32.mrb[44].mxu0 }
 0x847   : > { %5842 = vst [vmem:[%s8880_s29 + $0x30] sm:$0xff] %v5777_v44  ;;  %v5779_v10 = vpop.f32.mrb[45].mxu0 }
 0x848   : > { %6539 = vst [vmem:[%s8880_s29 + $0xb0] sm:$0xff] %v5779_v10 }
 0x84a   : > { %v5783_v18 = vpop.f32.mrb[46].mxu0 }
 0x84b   : > { %5843 = vst [vmem:[%s8880_s29 + $0x38] sm:$0xff] %v5783_v18  ;;  %v5785_v19 = vpop.f32.mrb[47].mxu0 }
 0x84c   : > { %6540 = vst [vmem:[%s8880_s29 + $0xb8] sm:$0xff] %v5785_v19 }
 0x84e   : > { %v5789_v37 = vpop.f32.mrb[48].mxu0 }
 0x84f   : > { %5844 = vst [vmem:[%s8880_s29 + $0x40] sm:$0xff] %v5789_v37  ;;  %v5791_v40 = vpop.f32.mrb[49].mxu0 }
 0x850   : > { %6541 = vst [vmem:[%s8880_s29 + $0xc0] sm:$0xff] %v5791_v40 }
 0x852   : > { %v5795_v43 = vpop.f32.mrb[50].mxu0 }
 0x853   : > { %5845 = vst [vmem:[%s8880_s29 + $0x48] sm:$0xff] %v5795_v43  ;;  %v5797_v13 = vpop.f32.mrb[51].mxu0 }
 0x854   : > { %6542 = vst [vmem:[%s8880_s29 + $0xc8] sm:$0xff] %v5797_v13 }
 0x856   : > { %v5801_v47 = vpop.f32.mrb[52].mxu0 }
 0x857   : > { %5846 = vst [vmem:[%s8880_s29 + $0x50] sm:$0xff] %v5801_v47  ;;  %v5803_v46 = vpop.f32.mrb[53].mxu0 }
 0x858   : > { %6543 = vst [vmem:[%s8880_s29 + $0xd0] sm:$0xff] %v5803_v46 }
 0x85a   : > { %v5807_v20 = vpop.f32.mrb[54].mxu0 }
 0x85b   : > { %5847 = vst [vmem:[%s8880_s29 + $0x58] sm:$0xff] %v5807_v20  ;;  %v5809_v50 = vpop.f32.mrb[55].mxu0 }
 0x85c   : > { %6544 = vst [vmem:[%s8880_s29 + $0xd8] sm:$0xff] %v5809_v50 }
 0x85e   : > { %v5813_v51 = vpop.f32.mrb[56].mxu0 }
 0x85f   : > { %5848 = vst [vmem:[%s8880_s29 + $0x60] sm:$0xff] %v5813_v51  ;;  %v5815_v0 = vpop.f32.mrb[57].mxu0 }
 0x860   : > { %6545 = vst [vmem:[%s8880_s29 + $0xe0] sm:$0xff] %v5815_v0 }
 0x862   : > { %v5819_v57 = vpop.f32.mrb[58].mxu0 }
 0x863   : > { %5849 = vst [vmem:[%s8880_s29 + $0x68] sm:$0xff] %v5819_v57  ;;  %v5821_v49 = vpop.f32.mrb[59].mxu0 }
 0x864   : > { %6546 = vst [vmem:[%s8880_s29 + $0xe8] sm:$0xff] %v5821_v49 }
 0x866   : > { %v5825_v53 = vpop.f32.mrb[60].mxu0 }
 0x867   : > { %5850 = vst [vmem:[%s8880_s29 + $0x70] sm:$0xff] %v5825_v53  ;;  %v5827_v22 = vpop.f32.mrb[61].mxu0 }
 0x868   : > { %6547 = vst [vmem:[%s8880_s29 + $0xf0] sm:$0xff] %v5827_v22 }
 0x86a   : > { %v5831_v59 = vpop.f32.mrb[62].mxu0 }
 0x86b   : > { %5851 = vst [vmem:[%s8880_s29 + $0x78] sm:$0xff] %v5831_v59  ;;  %v5833_v24 = vpop.f32.mrb[63].mxu0 }
 0x86c   : > { %6548 = vst [vmem:[%s8880_s29 + $0xf8] sm:$0xff] %v5833_v24 }
 0x86d   : > { %7746 = shalt.err (!%p7743_p11)
}
 0x86e   : > { %s7747_s22 = scalar_lea.hbm %s8917_s25, 4096  ;;  %s7751_s21 = scalar_lea.hbm %s8976_s10, 8192 }
 0x86f   : > { %p7748_p13 = scmp.ne.s32.totalorder %s8917_s25, %s7747_s22  ;;  %p7752_p6 = scmp.lt.u32.totalorder %s8917_s25, %s8976_s10 }
 0x870   : > { %p7753_p9 = scmp.lt.u32.totalorder %s7751_s21, %s7747_s22  ;;  %p7755_p12 = scmp.lt.u32.totalorder %s7747_s22, %s8917_s25 }
 0x871   : > { %p7749_p5 = pnand %p7748_p13, %p9011_p1 }
 0x872   : > { %p7754_p10 = por %p7753_p9, %p7752_p6 }
 0x873   : > { %p7750_p0 = pneg %p7749_p5 }
 0x874   : > { %p7756_p2 = por %p7755_p12, %p7754_p10 }
 0x876   : > { %p7757_p3 = pnand %p7756_p2, %p7750_p0 }
 0x878   : > { %7760 = shalt.err (!%p7757_p3)
}
 0x879   : > { %s7813_s27 = smov 128   ;;  %s7814_s19 = smov 8  }
 0x87a   : > { %6808 = dma.vmem_to_hbm [thread:$0]  (%p9011_p1), %s8919_s15, 4096, %s8917_s25, %s8925_s17, %s7813_s27, %s7813_s27, %s7814_s19  }
 0x87b PF: > { %s9012_s24 = sld [smem:[#allocation20_spill]]  ;;  %p6825_p4 = scmp.ge.s32.totalorder %s7803_s16, 2 }
 0x87c   : > { %s5898_s28 = sand.u32 1, %s7791_s13  }
 0x87d   : > { %s5899_s30 = scalar_lea.sflag [#allocation10], %s5898_s28 }
 0x881   : > { %p9013_p7 = scmp.ne.s32.totalorder %s9012_s24, 0 }
 0x883   : > { %p6818_p8 = pnand %p6825_p4, %p9013_p7 }
 0x885   : > { %7786 = dma.done.wait (!%p6818_p8), %s5899_s30, 4096  }
 0x886   : > { %7788 = vsyncadd (!%p6818_p8), %s5899_s30, 4294963200  ;;  %s9014_s16 = sld [smem:[#allocation18_spill]]  ;;  %s9015_s11 = sld [smem:[#allocation17_spill]] }
 0x887   : > { %s9016_s15 = sld [smem:[#allocation19_spill]]  ;;  %s9017_s13 = smov %s7795_s14 }
 0x88c   : > { %p22_p11 = scmp.ge.s32.totalorder %s9014_s16, 4   ;;  %s9018_s14 = smov %s9015_s11 }
 0x88e   :  { %24 = sbr.rel (!%p22_p11) target bundleno = 5 (0x5), region = 109 }
 0x895   :  { %5904 = vsyncpa [#allocation9], 1 }
 0x896   :  { %5906 = vsyncpa [#allocation9 + $0x1], 1 }
 0x897   :  { %5907 = vsyncpa [#allocation12], 1 }
 0x898   :  { %5908 = vsyncpa [#allocation10], 1 }
 0x899   :  { %5910 = vsyncpa [#allocation10 + $0x1], 1 }

</bundles_post_ra>
